<compile_context>
chip_gen: v7x
topology: tpu7x:2x2x1
jax: 0.10.0
libtpu: 0.0.40
codegen_flags: <defaults>
</compile_context>

<pallas_src>
import functools
import math

import jax
import jax.numpy as jnp
from jax.experimental import pallas as pl
from jax.experimental.pallas import tpu as pltpu


def _layernorm(x, gamma, beta, eps=1e-5):
    mean = jnp.mean(x, axis=-1, keepdims=True)
    var = jnp.mean((x - mean) ** 2, axis=-1, keepdims=True)
    return (x - mean) * jax.lax.rsqrt(var + eps) * gamma + beta


def encoder_layer_kernel(x_ref,
                         wq_ref, wk_ref, wv_ref, wo_ref,
                         bq_ref, bk_ref, bv_ref, bo_ref,
                         g1_ref, be1_ref,
                         w1_ref, b1_ref, w2_ref, b2_ref,
                         g2_ref, be2_ref,
                         o_ref,
                         acc_ref,
                         *, num_heads, dmodel, seq_len, bblk, flat_io):
    H, D, L = num_heads, dmodel, seq_len
    R = bblk * L
    cdt = x_ref.dtype                       # MXU operand dtype (bf16 by default)

    x2 = x_ref[...].reshape(R, D)           # (R, D) activations, compute dtype

    # MHA accumulator lives in a VMEM f32 scratch ref so per-head values can
    # retire; seed it with the residual input and the W_o bias so that at the
    # end of the head loop acc == x + MHA(x).
    acc_ref[...] = x2.astype(jnp.float32) + bo_ref[...]

    for h in range(H):                      # static unroll over heads
        # Head selection = leading-axis ref index (free view, lane-aligned).
        # 1/sqrt(dk) is pre-folded into W_q / b_q by the wrapper.
        q = jnp.dot(x2, wq_ref[h], preferred_element_type=jnp.float32) + bq_ref[h]
        k = jnp.dot(x2, wk_ref[h], preferred_element_type=jnp.float32) + bk_ref[h]
        v = jnp.dot(x2, wv_ref[h], preferred_element_type=jnp.float32) + bv_ref[h]
        qb = q.reshape(bblk, L, D).astype(cdt)
        kb = k.reshape(bblk, L, D).astype(cdt)
        vb = v.reshape(bblk, L, D).astype(cdt)

        # TODO(synk): flash-style online softmax for long L (avoid (bblk,L,L)).
        s = jnp.einsum('bqd,bkd->bqk', qb, kb,
                       preferred_element_type=jnp.float32)        # (bblk, L, L)
        s = s - jnp.max(s, axis=-1, keepdims=True)
        p = jnp.exp(s)
        p = p * pl.reciprocal(jnp.sum(p, axis=-1, keepdims=True), approx=True)
        o_h = jnp.einsum('bqk,bkd->bqd', p.astype(cdt), vb,
                         preferred_element_type=jnp.float32)      # (bblk, L, D)

        # W_o applied as a per-head slice (== concat + matmul), accumulated
        # straight into the scratch ref.
        acc_ref[...] += jnp.dot(o_h.reshape(R, D).astype(cdt), wo_ref[h],
                                preferred_element_type=jnp.float32)

    # dropout_1 / dropout_2 / SDPA dropout are identity (deterministic forward)
    ln1 = _layernorm(acc_ref[...], g1_ref[...], be1_ref[...])

    # FeedForward: ReLU(x W1 + b1) W2 + b2   (bf16 operands, f32 accumulation)
    hid = jnp.dot(ln1.astype(cdt), w1_ref[...],
                  preferred_element_type=jnp.float32) + b1_ref[...]
    hid = jnp.maximum(hid, 0.0)
    ff = jnp.dot(hid.astype(cdt), w2_ref[...],
                 preferred_element_type=jnp.float32) + b2_ref[...]

    out = _layernorm(ln1 + ff, g2_ref[...], be2_ref[...])

    if flat_io:
        o_ref[...] = out.reshape(bblk, L * D).astype(o_ref.dtype)   # lane-dense
    else:
        o_ref[...] = out.reshape(bblk, L, D).astype(o_ref.dtype)


def _vmem_capacity_bytes():
    """Physical VMEM per TensorCore; conservative default if the query fails."""
    try:
        return int(pltpu.get_tpu_info().vmem_capacity_bytes)
    except Exception:
        return 64 * 1024 * 1024          # v7x per-TC size (most restrictive)


def encoder_single_layer(x, params, num_heads, compute_dtype=jnp.bfloat16):
    B, L, D = x.shape
    H = num_heads
    assert D % H == 0
    dk = D // H
    scale = 1.0 / math.sqrt(dk)
    cdt = jnp.dtype(compute_dtype)
    out_dtype = x.dtype

    # ---- one-time parameter repacking -------------------------------------
    # Per-head weights stay (H, D, D) so the kernel indexes heads on the
    # leading axis; matmul operands are cast to the compute dtype (bf16),
    # biases / LayerNorm params stay f32; 1/sqrt(dk) folded into W_q, b_q.
    f32 = jnp.float32
    wq = (params["wq"] * scale).astype(cdt)                     # (H, D, D)
    wk = params["wk"].astype(cdt)
    wv = params["wv"].astype(cdt)
    wo = params["wo"].reshape(H, D, D).astype(cdt)              # per-head W_o
    bq = (params["bq"] * scale).reshape(H, 1, D).astype(f32)
    bk = params["bk"].reshape(H, 1, D).astype(f32)
    bv = params["bv"].reshape(H, 1, D).astype(f32)
    bo = params["bo"].reshape(1, D).astype(f32)
    g1 = params["ln1_g"].reshape(1, D).astype(f32)
    be1 = params["ln1_b"].reshape(1, D).astype(f32)
    w1 = params["w1"].astype(cdt)
    b1 = params["b1"].reshape(1, 4 * D).astype(f32)
    w2 = params["w2"].astype(cdt)
    b2 = params["b2"].reshape(1, D).astype(f32)
    g2 = params["ln2_g"].reshape(1, D).astype(f32)
    be2 = params["ln2_b"].reshape(1, D).astype(f32)
    param_list = [wq, wk, wv, wo, bq, bk, bv, bo, g1, be1,
                  w1, b1, w2, b2, g2, be2]

    # ---- generation-aware VMEM budgeting & batch blocking ------------------
    vmem_cap = _vmem_capacity_bytes()
    vmem_limit = min(int(vmem_cap * 0.8), 112 * 1024 * 1024)   # scoped limit
    budget = int(vmem_limit * 0.85)                             # planning slack

    cds = cdt.itemsize
    ods = jnp.dtype(out_dtype).itemsize
    w_bytes = (4 * H + 8) * D * D * cds + (3 * H * D + 10 * D) * 4

    def footprint(c):
        """Rough per-grid-step VMEM estimate for batch block `c`."""
        r = c * L
        io = 2 * r * D * cds + 2 * r * D * ods      # double-buffered x / out
        scratch = r * D * 4                         # f32 MHA accumulator
        live = r * (48 * D + 8 * L)                 # q/k/v/o/ln/ffn + scores
        return w_bytes + io + scratch + live

    divisors = [c for c in range(1, B + 1) if B % c == 0]
    fits = [c for c in divisors if c * L <= 1024 and footprint(c) <= budget]
    if not fits:
        # TODO(synk): stream weights / tile the sequence when even bblk=1
        #             does not fit (very large D on v7x).
        fits = [1]
    multi = [c for c in fits if B // c >= 2]        # keep >=2 grid steps so
    bblk = max(multi) if multi else max(fits)       # both v7x TCs get work
    grid = (B // bblk,)

    # Lane-dense I/O when D is not a multiple of 128 and the flattened block
    # shape is legal (second-to-last dim must be %8==0 or the full B).
    flat_io = (D % 128 != 0) and (bblk == B or bblk % 8 == 0)

    x_in = x.astype(cdt)
    if flat_io:
        x_in = x_in.reshape(B, L * D)
        x_spec = pl.BlockSpec((bblk, L * D), lambda b: (b, 0))
        out_shape = jax.ShapeDtypeStruct((B, L * D), out_dtype)
        out_spec = pl.BlockSpec((bblk, L * D), lambda b: (b, 0))
    else:
        x_spec = pl.BlockSpec((bblk, L, D), lambda b: (b, 0, 0))
        out_shape = jax.ShapeDtypeStruct((B, L, D), out_dtype)
        out_spec = pl.BlockSpec((bblk, L, D), lambda b: (b, 0, 0))

    kernel = functools.partial(encoder_layer_kernel, num_heads=H, dmodel=D,
                               seq_len=L, bblk=bblk, flat_io=flat_io)

    def build_and_run(single_buffer_weights):
        def full_spec(arr):
            n = arr.ndim
            idx = lambda b, _n=n: (0,) * _n
            if single_buffer_weights:
                # Grid-invariant weights: double-buffering them wastes VMEM.
                return pl.BlockSpec(arr.shape, idx, pipeline_mode=pl.Buffered(1))
            return pl.BlockSpec(arr.shape, idx)

        return pl.pallas_call(
            kernel,
            out_shape=out_shape,
            grid=grid,
            in_specs=[x_spec] + [full_spec(p) for p in param_list],
            out_specs=out_spec,
            scratch_shapes=[pltpu.VMEM((bblk * L, D), jnp.float32)],
            compiler_params=pltpu.CompilerParams(
                dimension_semantics=("parallel",),
                vmem_limit_bytes=vmem_limit),
        )(x_in, *param_list)

    try:
        out = build_and_run(True)
    except Exception:
        # Fallback for Pallas builds without pipeline_mode / pl.Buffered(1).
        out = build_and_run(False)

    if flat_io:
        out = out.reshape(B, L, D)
    return out


def reference_forward(x, params, num_heads):
    """Pure-JAX f32 reference reproducing the PyTorch forward."""
    D = x.shape[-1]
    dk = D // num_heads
    heads = []
    for h in range(num_heads):
        q = x @ params["wq"][h] + params["bq"][h]
        k = x @ params["wk"][h] + params["bk"][h]
        v = x @ params["wv"][h] + params["bv"][h]
        s = (q @ jnp.swapaxes(k, -2, -1)) / math.sqrt(dk)
        a = jax.nn.softmax(s, axis=-1)
        heads.append(a @ v)
    mha = jnp.concatenate(heads, axis=-1) @ params["wo"] + params["bo"]
    r1 = x + mha
    ln1 = _layernorm(r1, params["ln1_g"], params["ln1_b"])
    ff = jnp.maximum(ln1 @ params["w1"] + params["b1"], 0.0) @ params["w2"] + params["b2"]
    r2 = ln1 + ff
    return _layernorm(r2, params["ln2_g"], params["ln2_b"])


def init_params(key, dmodel, num_heads):
    ks = jax.random.split(key, 12)
    s = 0.02
    return {
        "wq": jax.random.normal(ks[0], (num_heads, dmodel, dmodel), jnp.float32) * s,
        "bq": jax.random.normal(ks[1], (num_heads, dmodel), jnp.float32) * s,
        "wk": jax.random.normal(ks[2], (num_heads, dmodel, dmodel), jnp.float32) * s,
        "bk": jax.random.normal(ks[3], (num_heads, dmodel), jnp.float32) * s,
        "wv": jax.random.normal(ks[4], (num_heads, dmodel, dmodel), jnp.float32) * s,
        "bv": jax.random.normal(ks[5], (num_heads, dmodel), jnp.float32) * s,
        "wo": jax.random.normal(ks[6], (num_heads * dmodel, dmodel), jnp.float32) * s,
        "bo": jax.random.normal(ks[7], (dmodel,), jnp.float32) * s,
        "ln1_g": jnp.ones((dmodel,), jnp.float32),
        "ln1_b": jnp.zeros((dmodel,), jnp.float32),
        "w1": jax.random.normal(ks[8], (dmodel, 4 * dmodel), jnp.float32) * s,
        "b1": jax.random.normal(ks[9], (4 * dmodel,), jnp.float32) * s,
        "w2": jax.random.normal(ks[10], (4 * dmodel, dmodel), jnp.float32) * s,
        "b2": jax.random.normal(ks[11], (dmodel,), jnp.float32) * s,
        "ln2_g": jnp.ones((dmodel,), jnp.float32),
        "ln2_b": jnp.zeros((dmodel,), jnp.float32),
    }


if __name__ == "__main__":
    B, L, D, H = 2, 8, 32, 4          # batch, seq_len, dmodel, heads (dk = 8)

    key = jax.random.PRNGKey(0)
    k_x, k_p = jax.random.split(key)
    x = jax.random.normal(k_x, (B, L, D), jnp.float32)
    params = init_params(k_p, D, H)

    out = encoder_single_layer(x, params, H)            # bf16 MXU operands
    out = jax.block_until_ready(out)
    assert out.shape == (B, L, D) and out.dtype == x.dtype

    # Strict check: reference with the same bf16 operand quantization, f32 math.
    # Remaining gap = in-kernel bf16 recasts + approx softmax reciprocal.
    wkeys = ("wq", "wk", "wv", "wo", "w1", "w2")
    qparams = {k: (v.astype(jnp.bfloat16).astype(jnp.float32) if k in wkeys else v)
               for k, v in params.items()}
    xq = x.astype(jnp.bfloat16).astype(jnp.float32)
    ref_q = reference_forward(xq, qparams, H)
    assert jnp.allclose(out, ref_q, atol=5e-3, rtol=5e-3), \
        "mismatch vs bf16-operand reference"

    # Loose check vs the full-f32 reference; gap is the intentional bf16
    # quantization of x and the matmul weights.
    ref_f = reference_forward(x, params, H)
    assert jnp.allclose(out, ref_f, atol=5e-2, rtol=5e-2), \
        "mismatch vs f32 reference"

    print("KERNEL_OK")
</pallas_src>

<mosaic_0001>
module attributes {stable_mosaic.version = 11 : i64} {
  func.func @encoder_layer_kernel(%arg0: i32, %arg1: memref<1x8x32xbf16, #tpu.memory_space<vmem>>, %arg2: memref<4x32x32xbf16, #tpu.memory_space<vmem>>, %arg3: memref<4x32x32xbf16, #tpu.memory_space<vmem>>, %arg4: memref<4x32x32xbf16, #tpu.memory_space<vmem>>, %arg5: memref<4x32x32xbf16, #tpu.memory_space<vmem>>, %arg6: memref<4x1x32xf32, #tpu.memory_space<vmem>>, %arg7: memref<4x1x32xf32, #tpu.memory_space<vmem>>, %arg8: memref<4x1x32xf32, #tpu.memory_space<vmem>>, %arg9: memref<1x32xf32, #tpu.memory_space<vmem>>, %arg10: memref<1x32xf32, #tpu.memory_space<vmem>>, %arg11: memref<1x32xf32, #tpu.memory_space<vmem>>, %arg12: memref<32x128xbf16, #tpu.memory_space<vmem>>, %arg13: memref<1x128xf32, #tpu.memory_space<vmem>>, %arg14: memref<128x32xbf16, #tpu.memory_space<vmem>>, %arg15: memref<1x32xf32, #tpu.memory_space<vmem>>, %arg16: memref<1x32xf32, #tpu.memory_space<vmem>>, %arg17: memref<1x32xf32, #tpu.memory_space<vmem>>, %arg18: memref<1x8x32xf32, #tpu.memory_space<vmem>>, %arg19: memref<8x32xf32, #tpu.memory_space<vmem>>) attributes {dimension_semantics = [#tpu.dimension_semantics<parallel>], iteration_bounds = array<i64: 2>, scalar_prefetch = 0 : i64, scratch_operands = 1 : i64, tpu.core_type = #tpu.core_type<tc>, window_params = [{transform_indices = @transform_0, window_bounds = array<i64: 1, 8, 32>}, {pipeline_mode = #tpu.pipeline_mode<synchronous>, transform_indices = @transform_1, window_bounds = array<i64: 4, 32, 32>}, {pipeline_mode = #tpu.pipeline_mode<synchronous>, transform_indices = @transform_2, window_bounds = array<i64: 4, 32, 32>}, {pipeline_mode = #tpu.pipeline_mode<synchronous>, transform_indices = @transform_3, window_bounds = array<i64: 4, 32, 32>}, {pipeline_mode = #tpu.pipeline_mode<synchronous>, transform_indices = @transform_4, window_bounds = array<i64: 4, 32, 32>}, {pipeline_mode = #tpu.pipeline_mode<synchronous>, transform_indices = @transform_5, window_bounds = array<i64: 4, 1, 32>}, {pipeline_mode = #tpu.pipeline_mode<synchronous>, transform_indices = @transform_6, window_bounds = array<i64: 4, 1, 32>}, {pipeline_mode = #tpu.pipeline_mode<synchronous>, transform_indices = @transform_7, window_bounds = array<i64: 4, 1, 32>}, {pipeline_mode = #tpu.pipeline_mode<synchronous>, transform_indices = @transform_8, window_bounds = array<i64: 1, 32>}, {pipeline_mode = #tpu.pipeline_mode<synchronous>, transform_indices = @transform_9, window_bounds = array<i64: 1, 32>}, {pipeline_mode = #tpu.pipeline_mode<synchronous>, transform_indices = @transform_10, window_bounds = array<i64: 1, 32>}, {pipeline_mode = #tpu.pipeline_mode<synchronous>, transform_indices = @transform_11, window_bounds = array<i64: 32, 128>}, {pipeline_mode = #tpu.pipeline_mode<synchronous>, transform_indices = @transform_12, window_bounds = array<i64: 1, 128>}, {pipeline_mode = #tpu.pipeline_mode<synchronous>, transform_indices = @transform_13, window_bounds = array<i64: 128, 32>}, {pipeline_mode = #tpu.pipeline_mode<synchronous>, transform_indices = @transform_14, window_bounds = array<i64: 1, 32>}, {pipeline_mode = #tpu.pipeline_mode<synchronous>, transform_indices = @transform_15, window_bounds = array<i64: 1, 32>}, {pipeline_mode = #tpu.pipeline_mode<synchronous>, transform_indices = @transform_16, window_bounds = array<i64: 1, 32>}, {transform_indices = @transform_17, window_bounds = array<i64: 1, 8, 32>}]} {
    %c0 = arith.constant 0 : index
    %c0_0 = arith.constant 0 : index
    %c0_1 = arith.constant 0 : index
    %0 = vector.load %arg1[%c0, %c0_0, %c0_1] : memref<1x8x32xbf16, #tpu.memory_space<vmem>>, vector<1x8x32xbf16>
    %1 = vector.shape_cast %0 : vector<1x8x32xbf16> to vector<8x32xbf16>
    %2 = arith.extf %1 : vector<8x32xbf16> to vector<8x32xf32>
    %c0_2 = arith.constant 0 : index
    %c0_3 = arith.constant 0 : index
    %3 = vector.load %arg9[%c0_2, %c0_3] : memref<1x32xf32, #tpu.memory_space<vmem>>, vector<1x32xf32>
    %4 = vector.broadcast %3 : vector<1x32xf32> to vector<8x32xf32>
    %5 = arith.addf %2, %4 : vector<8x32xf32>
    %c0_4 = arith.constant 0 : index
    %c0_5 = arith.constant 0 : index
    %6 = vector.load %arg19[%c0_4, %c0_5] : memref<8x32xf32, #tpu.memory_space<vmem>>, vector<8x32xf32>
    tpu.vector_store %arg19[%c0_4, %c0_5], %5 {strides = array<i32>} : memref<8x32xf32, #tpu.memory_space<vmem>>, vector<8x32xf32>,
    %c0_6 = arith.constant 0 : index
    %c0_7 = arith.constant 0 : index
    %c0_8 = arith.constant 0 : index
    %7 = vector.load %arg2[%c0_6, %c0_7, %c0_8] : memref<4x32x32xbf16, #tpu.memory_space<vmem>>, vector<1x32x32xbf16>
    %8 = vector.shape_cast %7 : vector<1x32x32xbf16> to vector<32x32xbf16>
    %cst = arith.constant dense<0.000000e+00> : vector<8x32xf32>
    %9 = tpu.matmul %1, %8, %cst {dimension_numbers = #tpu.dot_dimension_numbers<[1], [0], [0], [1], [0, 0, 1, 1], [], []>} : vector<8x32xbf16>, vector<32x32xbf16>, vector<8x32xf32> -> vector<8x32xf32>
    %c0_9 = arith.constant 0 : index
    %c0_10 = arith.constant 0 : index
    %c0_11 = arith.constant 0 : index
    %10 = vector.load %arg6[%c0_9, %c0_10, %c0_11] : memref<4x1x32xf32, #tpu.memory_space<vmem>>, vector<1x1x32xf32>
    %11 = vector.shape_cast %10 : vector<1x1x32xf32> to vector<1x32xf32>
    %12 = vector.broadcast %11 : vector<1x32xf32> to vector<8x32xf32>
    %13 = arith.addf %9, %12 : vector<8x32xf32>
    %c0_12 = arith.constant 0 : index
    %c0_13 = arith.constant 0 : index
    %c0_14 = arith.constant 0 : index
    %14 = vector.load %arg3[%c0_12, %c0_13, %c0_14] : memref<4x32x32xbf16, #tpu.memory_space<vmem>>, vector<1x32x32xbf16>
    %15 = vector.shape_cast %14 : vector<1x32x32xbf16> to vector<32x32xbf16>
    %cst_15 = arith.constant dense<0.000000e+00> : vector<8x32xf32>
    %16 = tpu.matmul %1, %15, %cst_15 {dimension_numbers = #tpu.dot_dimension_numbers<[1], [0], [0], [1], [0, 0, 1, 1], [], []>} : vector<8x32xbf16>, vector<32x32xbf16>, vector<8x32xf32> -> vector<8x32xf32>
    %c0_16 = arith.constant 0 : index
    %c0_17 = arith.constant 0 : index
    %c0_18 = arith.constant 0 : index
    %17 = vector.load %arg7[%c0_16, %c0_17, %c0_18] : memref<4x1x32xf32, #tpu.memory_space<vmem>>, vector<1x1x32xf32>
    %18 = vector.shape_cast %17 : vector<1x1x32xf32> to vector<1x32xf32>
    %19 = vector.broadcast %18 : vector<1x32xf32> to vector<8x32xf32>
    %20 = arith.addf %16, %19 : vector<8x32xf32>
    %c0_19 = arith.constant 0 : index
    %c0_20 = arith.constant 0 : index
    %c0_21 = arith.constant 0 : index
    %21 = vector.load %arg4[%c0_19, %c0_20, %c0_21] : memref<4x32x32xbf16, #tpu.memory_space<vmem>>, vector<1x32x32xbf16>
    %22 = vector.shape_cast %21 : vector<1x32x32xbf16> to vector<32x32xbf16>
    %cst_22 = arith.constant dense<0.000000e+00> : vector<8x32xf32>
    %23 = tpu.matmul %1, %22, %cst_22 {dimension_numbers = #tpu.dot_dimension_numbers<[1], [0], [0], [1], [0, 0, 1, 1], [], []>} : vector<8x32xbf16>, vector<32x32xbf16>, vector<8x32xf32> -> vector<8x32xf32>
    %c0_23 = arith.constant 0 : index
    %c0_24 = arith.constant 0 : index
    %c0_25 = arith.constant 0 : index
    %24 = vector.load %arg8[%c0_23, %c0_24, %c0_25] : memref<4x1x32xf32, #tpu.memory_space<vmem>>, vector<1x1x32xf32>
    %25 = vector.shape_cast %24 : vector<1x1x32xf32> to vector<1x32xf32>
    %26 = vector.broadcast %25 : vector<1x32xf32> to vector<8x32xf32>
    %27 = arith.addf %23, %26 : vector<8x32xf32>
    %28 = vector.shape_cast %13 : vector<8x32xf32> to vector<1x8x32xf32>
    %29 = arith.truncf %28 : vector<1x8x32xf32> to vector<1x8x32xbf16>
    %30 = vector.shape_cast %20 : vector<8x32xf32> to vector<1x8x32xf32>
    %31 = arith.truncf %30 : vector<1x8x32xf32> to vector<1x8x32xbf16>
    %32 = vector.shape_cast %27 : vector<8x32xf32> to vector<1x8x32xf32>
    %33 = arith.truncf %32 : vector<1x8x32xf32> to vector<1x8x32xbf16>
    "tpu.trace_start"() <{level = 10 : i32, message = "bqd,bkd->bqk"}> : () -> ()
    %cst_26 = arith.constant dense<0.000000e+00> : vector<1x8x8xf32>
    %34 = tpu.matmul %29, %31, %cst_26 {dimension_numbers = #tpu.dot_dimension_numbers<[2], [2], [1], [1], [0, 0, 0, 1, 1, 1], [0], [0]>} : vector<1x8x32xbf16>, vector<1x8x32xbf16>, vector<1x8x8xf32> -> vector<1x8x8xf32>
    "tpu.trace_stop"() : () -> ()
    %cst_27 = arith.constant dense<0xFF800000> : vector<1x8xf32>
    %35 = vector.multi_reduction <maximumf>, %34, %cst_27 [2] : vector<1x8x8xf32> to vector<1x8xf32>
    %36 = vector.shape_cast %35 : vector<1x8xf32> to vector<1x8x1xf32>
    %37 = vector.broadcast %36 : vector<1x8x1xf32> to vector<1x8x8xf32>
    %38 = arith.subf %34, %37 : vector<1x8x8xf32>
    %39 = math.exp %38 : vector<1x8x8xf32>
    %cst_28 = arith.constant dense<0.000000e+00> : vector<1x8xf32>
    %40 = vector.multi_reduction <add>, %39, %cst_28 [2] : vector<1x8x8xf32> to vector<1x8xf32>
    %41 = vector.shape_cast %40 : vector<1x8xf32> to vector<1x8x1xf32>
    %42 = tpu.reciprocal %41 {approx = true} : vector<1x8x1xf32> -> vector<1x8x1xf32>
    %43 = vector.broadcast %42 : vector<1x8x1xf32> to vector<1x8x8xf32>
    %44 = arith.mulf %39, %43 : vector<1x8x8xf32>
    %45 = arith.truncf %44 : vector<1x8x8xf32> to vector<1x8x8xbf16>
    "tpu.trace_start"() <{level = 10 : i32, message = "bqk,bkd->bqd"}> : () -> ()
    %cst_29 = arith.constant dense<0.000000e+00> : vector<1x8x32xf32>
    %46 = tpu.matmul %45, %33, %cst_29 {dimension_numbers = #tpu.dot_dimension_numbers<[2], [1], [1], [2], [0, 0, 0, 1, 1, 2], [0], [0]>} : vector<1x8x8xbf16>, vector<1x8x32xbf16>, vector<1x8x32xf32> -> vector<1x8x32xf32>
    "tpu.trace_stop"() : () -> ()
    %c0_30 = arith.constant 0 : index
    %c0_31 = arith.constant 0 : index
    %47 = vector.load %arg19[%c0_30, %c0_31] : memref<8x32xf32, #tpu.memory_space<vmem>>, vector<8x32xf32>
    %48 = vector.shape_cast %46 : vector<1x8x32xf32> to vector<8x32xf32>
    %49 = arith.truncf %48 : vector<8x32xf32> to vector<8x32xbf16>
    %c0_32 = arith.constant 0 : index
    %c0_33 = arith.constant 0 : index
    %c0_34 = arith.constant 0 : index
    %50 = vector.load %arg5[%c0_32, %c0_33, %c0_34] : memref<4x32x32xbf16, #tpu.memory_space<vmem>>, vector<1x32x32xbf16>
    %51 = vector.shape_cast %50 : vector<1x32x32xbf16> to vector<32x32xbf16>
    %cst_35 = arith.constant dense<0.000000e+00> : vector<8x32xf32>
    %52 = tpu.matmul %49, %51, %cst_35 {dimension_numbers = #tpu.dot_dimension_numbers<[1], [0], [0], [1], [0, 0, 1, 1], [], []>} : vector<8x32xbf16>, vector<32x32xbf16>, vector<8x32xf32> -> vector<8x32xf32>
    %53 = arith.addf %47, %52 : vector<8x32xf32>
    %c0_36 = arith.constant 0 : index
    %c0_37 = arith.constant 0 : index
    %54 = vector.load %arg19[%c0_36, %c0_37] : memref<8x32xf32, #tpu.memory_space<vmem>>, vector<8x32xf32>
    tpu.vector_store %arg19[%c0_36, %c0_37], %53 {strides = array<i32>} : memref<8x32xf32, #tpu.memory_space<vmem>>, vector<8x32xf32>,
    %c1 = arith.constant 1 : index
    %c0_38 = arith.constant 0 : index
    %c0_39 = arith.constant 0 : index
    %55 = vector.load %arg2[%c1, %c0_38, %c0_39] : memref<4x32x32xbf16, #tpu.memory_space<vmem>>, vector<1x32x32xbf16>
    %56 = vector.shape_cast %55 : vector<1x32x32xbf16> to vector<32x32xbf16>
    %cst_40 = arith.constant dense<0.000000e+00> : vector<8x32xf32>
    %57 = tpu.matmul %1, %56, %cst_40 {dimension_numbers = #tpu.dot_dimension_numbers<[1], [0], [0], [1], [0, 0, 1, 1], [], []>} : vector<8x32xbf16>, vector<32x32xbf16>, vector<8x32xf32> -> vector<8x32xf32>
    %c1_41 = arith.constant 1 : index
    %c0_42 = arith.constant 0 : index
    %c0_43 = arith.constant 0 : index
    %58 = vector.load %arg6[%c1_41, %c0_42, %c0_43] : memref<4x1x32xf32, #tpu.memory_space<vmem>>, vector<1x1x32xf32>
    %59 = vector.shape_cast %58 : vector<1x1x32xf32> to vector<1x32xf32>
    %60 = vector.broadcast %59 : vector<1x32xf32> to vector<8x32xf32>
    %61 = arith.addf %57, %60 : vector<8x32xf32>
    %c1_44 = arith.constant 1 : index
    %c0_45 = arith.constant 0 : index
    %c0_46 = arith.constant 0 : index
    %62 = vector.load %arg3[%c1_44, %c0_45, %c0_46] : memref<4x32x32xbf16, #tpu.memory_space<vmem>>, vector<1x32x32xbf16>
    %63 = vector.shape_cast %62 : vector<1x32x32xbf16> to vector<32x32xbf16>
    %cst_47 = arith.constant dense<0.000000e+00> : vector<8x32xf32>
    %64 = tpu.matmul %1, %63, %cst_47 {dimension_numbers = #tpu.dot_dimension_numbers<[1], [0], [0], [1], [0, 0, 1, 1], [], []>} : vector<8x32xbf16>, vector<32x32xbf16>, vector<8x32xf32> -> vector<8x32xf32>
    %c1_48 = arith.constant 1 : index
    %c0_49 = arith.constant 0 : index
    %c0_50 = arith.constant 0 : index
    %65 = vector.load %arg7[%c1_48, %c0_49, %c0_50] : memref<4x1x32xf32, #tpu.memory_space<vmem>>, vector<1x1x32xf32>
    %66 = vector.shape_cast %65 : vector<1x1x32xf32> to vector<1x32xf32>
    %67 = vector.broadcast %66 : vector<1x32xf32> to vector<8x32xf32>
    %68 = arith.addf %64, %67 : vector<8x32xf32>
    %c1_51 = arith.constant 1 : index
    %c0_52 = arith.constant 0 : index
    %c0_53 = arith.constant 0 : index
    %69 = vector.load %arg4[%c1_51, %c0_52, %c0_53] : memref<4x32x32xbf16, #tpu.memory_space<vmem>>, vector<1x32x32xbf16>
    %70 = vector.shape_cast %69 : vector<1x32x32xbf16> to vector<32x32xbf16>
    %cst_54 = arith.constant dense<0.000000e+00> : vector<8x32xf32>
    %71 = tpu.matmul %1, %70, %cst_54 {dimension_numbers = #tpu.dot_dimension_numbers<[1], [0], [0], [1], [0, 0, 1, 1], [], []>} : vector<8x32xbf16>, vector<32x32xbf16>, vector<8x32xf32> -> vector<8x32xf32>
    %c1_55 = arith.constant 1 : index
    %c0_56 = arith.constant 0 : index
    %c0_57 = arith.constant 0 : index
    %72 = vector.load %arg8[%c1_55, %c0_56, %c0_57] : memref<4x1x32xf32, #tpu.memory_space<vmem>>, vector<1x1x32xf32>
    %73 = vector.shape_cast %72 : vector<1x1x32xf32> to vector<1x32xf32>
    %74 = vector.broadcast %73 : vector<1x32xf32> to vector<8x32xf32>
    %75 = arith.addf %71, %74 : vector<8x32xf32>
    %76 = vector.shape_cast %61 : vector<8x32xf32> to vector<1x8x32xf32>
    %77 = arith.truncf %76 : vector<1x8x32xf32> to vector<1x8x32xbf16>
    %78 = vector.shape_cast %68 : vector<8x32xf32> to vector<1x8x32xf32>
    %79 = arith.truncf %78 : vector<1x8x32xf32> to vector<1x8x32xbf16>
    %80 = vector.shape_cast %75 : vector<8x32xf32> to vector<1x8x32xf32>
    %81 = arith.truncf %80 : vector<1x8x32xf32> to vector<1x8x32xbf16>
    "tpu.trace_start"() <{level = 10 : i32, message = "bqd,bkd->bqk"}> : () -> ()
    %cst_58 = arith.constant dense<0.000000e+00> : vector<1x8x8xf32>
    %82 = tpu.matmul %77, %79, %cst_58 {dimension_numbers = #tpu.dot_dimension_numbers<[2], [2], [1], [1], [0, 0, 0, 1, 1, 1], [0], [0]>} : vector<1x8x32xbf16>, vector<1x8x32xbf16>, vector<1x8x8xf32> -> vector<1x8x8xf32>
    "tpu.trace_stop"() : () -> ()
    %cst_59 = arith.constant dense<0xFF800000> : vector<1x8xf32>
    %83 = vector.multi_reduction <maximumf>, %82, %cst_59 [2] : vector<1x8x8xf32> to vector<1x8xf32>
    %84 = vector.shape_cast %83 : vector<1x8xf32> to vector<1x8x1xf32>
    %85 = vector.broadcast %84 : vector<1x8x1xf32> to vector<1x8x8xf32>
    %86 = arith.subf %82, %85 : vector<1x8x8xf32>
    %87 = math.exp %86 : vector<1x8x8xf32>
    %cst_60 = arith.constant dense<0.000000e+00> : vector<1x8xf32>
    %88 = vector.multi_reduction <add>, %87, %cst_60 [2] : vector<1x8x8xf32> to vector<1x8xf32>
    %89 = vector.shape_cast %88 : vector<1x8xf32> to vector<1x8x1xf32>
    %90 = tpu.reciprocal %89 {approx = true} : vector<1x8x1xf32> -> vector<1x8x1xf32>
    %91 = vector.broadcast %90 : vector<1x8x1xf32> to vector<1x8x8xf32>
    %92 = arith.mulf %87, %91 : vector<1x8x8xf32>
    %93 = arith.truncf %92 : vector<1x8x8xf32> to vector<1x8x8xbf16>
    "tpu.trace_start"() <{level = 10 : i32, message = "bqk,bkd->bqd"}> : () -> ()
    %cst_61 = arith.constant dense<0.000000e+00> : vector<1x8x32xf32>
    %94 = tpu.matmul %93, %81, %cst_61 {dimension_numbers = #tpu.dot_dimension_numbers<[2], [1], [1], [2], [0, 0, 0, 1, 1, 2], [0], [0]>} : vector<1x8x8xbf16>, vector<1x8x32xbf16>, vector<1x8x32xf32> -> vector<1x8x32xf32>
    "tpu.trace_stop"() : () -> ()
    %c0_62 = arith.constant 0 : index
    %c0_63 = arith.constant 0 : index
    %95 = vector.load %arg19[%c0_62, %c0_63] : memref<8x32xf32, #tpu.memory_space<vmem>>, vector<8x32xf32>
    %96 = vector.shape_cast %94 : vector<1x8x32xf32> to vector<8x32xf32>
    %97 = arith.truncf %96 : vector<8x32xf32> to vector<8x32xbf16>
    %c1_64 = arith.constant 1 : index
    %c0_65 = arith.constant 0 : index
    %c0_66 = arith.constant 0 : index
    %98 = vector.load %arg5[%c1_64, %c0_65, %c0_66] : memref<4x32x32xbf16, #tpu.memory_space<vmem>>, vector<1x32x32xbf16>
    %99 = vector.shape_cast %98 : vector<1x32x32xbf16> to vector<32x32xbf16>
    %cst_67 = arith.constant dense<0.000000e+00> : vector<8x32xf32>
    %100 = tpu.matmul %97, %99, %cst_67 {dimension_numbers = #tpu.dot_dimension_numbers<[1], [0], [0], [1], [0, 0, 1, 1], [], []>} : vector<8x32xbf16>, vector<32x32xbf16>, vector<8x32xf32> -> vector<8x32xf32>
    %101 = arith.addf %95, %100 : vector<8x32xf32>
    %c0_68 = arith.constant 0 : index
    %c0_69 = arith.constant 0 : index
    %102 = vector.load %arg19[%c0_68, %c0_69] : memref<8x32xf32, #tpu.memory_space<vmem>>, vector<8x32xf32>
    tpu.vector_store %arg19[%c0_68, %c0_69], %101 {strides = array<i32>} : memref<8x32xf32, #tpu.memory_space<vmem>>, vector<8x32xf32>,
    %c2 = arith.constant 2 : index
    %c0_70 = arith.constant 0 : index
    %c0_71 = arith.constant 0 : index
    %103 = vector.load %arg2[%c2, %c0_70, %c0_71] : memref<4x32x32xbf16, #tpu.memory_space<vmem>>, vector<1x32x32xbf16>
    %104 = vector.shape_cast %103 : vector<1x32x32xbf16> to vector<32x32xbf16>
    %cst_72 = arith.constant dense<0.000000e+00> : vector<8x32xf32>
    %105 = tpu.matmul %1, %104, %cst_72 {dimension_numbers = #tpu.dot_dimension_numbers<[1], [0], [0], [1], [0, 0, 1, 1], [], []>} : vector<8x32xbf16>, vector<32x32xbf16>, vector<8x32xf32> -> vector<8x32xf32>
    %c2_73 = arith.constant 2 : index
    %c0_74 = arith.constant 0 : index
    %c0_75 = arith.constant 0 : index
    %106 = vector.load %arg6[%c2_73, %c0_74, %c0_75] : memref<4x1x32xf32, #tpu.memory_space<vmem>>, vector<1x1x32xf32>
    %107 = vector.shape_cast %106 : vector<1x1x32xf32> to vector<1x32xf32>
    %108 = vector.broadcast %107 : vector<1x32xf32> to vector<8x32xf32>
    %109 = arith.addf %105, %108 : vector<8x32xf32>
    %c2_76 = arith.constant 2 : index
    %c0_77 = arith.constant 0 : index
    %c0_78 = arith.constant 0 : index
    %110 = vector.load %arg3[%c2_76, %c0_77, %c0_78] : memref<4x32x32xbf16, #tpu.memory_space<vmem>>, vector<1x32x32xbf16>
    %111 = vector.shape_cast %110 : vector<1x32x32xbf16> to vector<32x32xbf16>
    %cst_79 = arith.constant dense<0.000000e+00> : vector<8x32xf32>
    %112 = tpu.matmul %1, %111, %cst_79 {dimension_numbers = #tpu.dot_dimension_numbers<[1], [0], [0], [1], [0, 0, 1, 1], [], []>} : vector<8x32xbf16>, vector<32x32xbf16>, vector<8x32xf32> -> vector<8x32xf32>
    %c2_80 = arith.constant 2 : index
    %c0_81 = arith.constant 0 : index
    %c0_82 = arith.constant 0 : index
    %113 = vector.load %arg7[%c2_80, %c0_81, %c0_82] : memref<4x1x32xf32, #tpu.memory_space<vmem>>, vector<1x1x32xf32>
    %114 = vector.shape_cast %113 : vector<1x1x32xf32> to vector<1x32xf32>
    %115 = vector.broadcast %114 : vector<1x32xf32> to vector<8x32xf32>
    %116 = arith.addf %112, %115 : vector<8x32xf32>
    %c2_83 = arith.constant 2 : index
    %c0_84 = arith.constant 0 : index
    %c0_85 = arith.constant 0 : index
    %117 = vector.load %arg4[%c2_83, %c0_84, %c0_85] : memref<4x32x32xbf16, #tpu.memory_space<vmem>>, vector<1x32x32xbf16>
    %118 = vector.shape_cast %117 : vector<1x32x32xbf16> to vector<32x32xbf16>
    %cst_86 = arith.constant dense<0.000000e+00> : vector<8x32xf32>
    %119 = tpu.matmul %1, %118, %cst_86 {dimension_numbers = #tpu.dot_dimension_numbers<[1], [0], [0], [1], [0, 0, 1, 1], [], []>} : vector<8x32xbf16>, vector<32x32xbf16>, vector<8x32xf32> -> vector<8x32xf32>
    %c2_87 = arith.constant 2 : index
    %c0_88 = arith.constant 0 : index
    %c0_89 = arith.constant 0 : index
    %120 = vector.load %arg8[%c2_87, %c0_88, %c0_89] : memref<4x1x32xf32, #tpu.memory_space<vmem>>, vector<1x1x32xf32>
    %121 = vector.shape_cast %120 : vector<1x1x32xf32> to vector<1x32xf32>
    %122 = vector.broadcast %121 : vector<1x32xf32> to vector<8x32xf32>
    %123 = arith.addf %119, %122 : vector<8x32xf32>
    %124 = vector.shape_cast %109 : vector<8x32xf32> to vector<1x8x32xf32>
    %125 = arith.truncf %124 : vector<1x8x32xf32> to vector<1x8x32xbf16>
    %126 = vector.shape_cast %116 : vector<8x32xf32> to vector<1x8x32xf32>
    %127 = arith.truncf %126 : vector<1x8x32xf32> to vector<1x8x32xbf16>
    %128 = vector.shape_cast %123 : vector<8x32xf32> to vector<1x8x32xf32>
    %129 = arith.truncf %128 : vector<1x8x32xf32> to vector<1x8x32xbf16>
    "tpu.trace_start"() <{level = 10 : i32, message = "bqd,bkd->bqk"}> : () -> ()
    %cst_90 = arith.constant dense<0.000000e+00> : vector<1x8x8xf32>
    %130 = tpu.matmul %125, %127, %cst_90 {dimension_numbers = #tpu.dot_dimension_numbers<[2], [2], [1], [1], [0, 0, 0, 1, 1, 1], [0], [0]>} : vector<1x8x32xbf16>, vector<1x8x32xbf16>, vector<1x8x8xf32> -> vector<1x8x8xf32>
    "tpu.trace_stop"() : () -> ()
    %cst_91 = arith.constant dense<0xFF800000> : vector<1x8xf32>
    %131 = vector.multi_reduction <maximumf>, %130, %cst_91 [2] : vector<1x8x8xf32> to vector<1x8xf32>
    %132 = vector.shape_cast %131 : vector<1x8xf32> to vector<1x8x1xf32>
    %133 = vector.broadcast %132 : vector<1x8x1xf32> to vector<1x8x8xf32>
    %134 = arith.subf %130, %133 : vector<1x8x8xf32>
    %135 = math.exp %134 : vector<1x8x8xf32>
    %cst_92 = arith.constant dense<0.000000e+00> : vector<1x8xf32>
    %136 = vector.multi_reduction <add>, %135, %cst_92 [2] : vector<1x8x8xf32> to vector<1x8xf32>
    %137 = vector.shape_cast %136 : vector<1x8xf32> to vector<1x8x1xf32>
    %138 = tpu.reciprocal %137 {approx = true} : vector<1x8x1xf32> -> vector<1x8x1xf32>
    %139 = vector.broadcast %138 : vector<1x8x1xf32> to vector<1x8x8xf32>
    %140 = arith.mulf %135, %139 : vector<1x8x8xf32>
    %141 = arith.truncf %140 : vector<1x8x8xf32> to vector<1x8x8xbf16>
    "tpu.trace_start"() <{level = 10 : i32, message = "bqk,bkd->bqd"}> : () -> ()
    %cst_93 = arith.constant dense<0.000000e+00> : vector<1x8x32xf32>
    %142 = tpu.matmul %141, %129, %cst_93 {dimension_numbers = #tpu.dot_dimension_numbers<[2], [1], [1], [2], [0, 0, 0, 1, 1, 2], [0], [0]>} : vector<1x8x8xbf16>, vector<1x8x32xbf16>, vector<1x8x32xf32> -> vector<1x8x32xf32>
    "tpu.trace_stop"() : () -> ()
    %c0_94 = arith.constant 0 : index
    %c0_95 = arith.constant 0 : index
    %143 = vector.load %arg19[%c0_94, %c0_95] : memref<8x32xf32, #tpu.memory_space<vmem>>, vector<8x32xf32>
    %144 = vector.shape_cast %142 : vector<1x8x32xf32> to vector<8x32xf32>
    %145 = arith.truncf %144 : vector<8x32xf32> to vector<8x32xbf16>
    %c2_96 = arith.constant 2 : index
    %c0_97 = arith.constant 0 : index
    %c0_98 = arith.constant 0 : index
    %146 = vector.load %arg5[%c2_96, %c0_97, %c0_98] : memref<4x32x32xbf16, #tpu.memory_space<vmem>>, vector<1x32x32xbf16>
    %147 = vector.shape_cast %146 : vector<1x32x32xbf16> to vector<32x32xbf16>
    %cst_99 = arith.constant dense<0.000000e+00> : vector<8x32xf32>
    %148 = tpu.matmul %145, %147, %cst_99 {dimension_numbers = #tpu.dot_dimension_numbers<[1], [0], [0], [1], [0, 0, 1, 1], [], []>} : vector<8x32xbf16>, vector<32x32xbf16>, vector<8x32xf32> -> vector<8x32xf32>
    %149 = arith.addf %143, %148 : vector<8x32xf32>
    %c0_100 = arith.constant 0 : index
    %c0_101 = arith.constant 0 : index
    %150 = vector.load %arg19[%c0_100, %c0_101] : memref<8x32xf32, #tpu.memory_space<vmem>>, vector<8x32xf32>
    tpu.vector_store %arg19[%c0_100, %c0_101], %149 {strides = array<i32>} : memref<8x32xf32, #tpu.memory_space<vmem>>, vector<8x32xf32>,
    %c3 = arith.constant 3 : index
    %c0_102 = arith.constant 0 : index
    %c0_103 = arith.constant 0 : index
    %151 = vector.load %arg2[%c3, %c0_102, %c0_103] : memref<4x32x32xbf16, #tpu.memory_space<vmem>>, vector<1x32x32xbf16>
    %152 = vector.shape_cast %151 : vector<1x32x32xbf16> to vector<32x32xbf16>
    %cst_104 = arith.constant dense<0.000000e+00> : vector<8x32xf32>
    %153 = tpu.matmul %1, %152, %cst_104 {dimension_numbers = #tpu.dot_dimension_numbers<[1], [0], [0], [1], [0, 0, 1, 1], [], []>} : vector<8x32xbf16>, vector<32x32xbf16>, vector<8x32xf32> -> vector<8x32xf32>
    %c3_105 = arith.constant 3 : index
    %c0_106 = arith.constant 0 : index
    %c0_107 = arith.constant 0 : index
    %154 = vector.load %arg6[%c3_105, %c0_106, %c0_107] : memref<4x1x32xf32, #tpu.memory_space<vmem>>, vector<1x1x32xf32>
    %155 = vector.shape_cast %154 : vector<1x1x32xf32> to vector<1x32xf32>
    %156 = vector.broadcast %155 : vector<1x32xf32> to vector<8x32xf32>
    %157 = arith.addf %153, %156 : vector<8x32xf32>
    %c3_108 = arith.constant 3 : index
    %c0_109 = arith.constant 0 : index
    %c0_110 = arith.constant 0 : index
    %158 = vector.load %arg3[%c3_108, %c0_109, %c0_110] : memref<4x32x32xbf16, #tpu.memory_space<vmem>>, vector<1x32x32xbf16>
    %159 = vector.shape_cast %158 : vector<1x32x32xbf16> to vector<32x32xbf16>
    %cst_111 = arith.constant dense<0.000000e+00> : vector<8x32xf32>
    %160 = tpu.matmul %1, %159, %cst_111 {dimension_numbers = #tpu.dot_dimension_numbers<[1], [0], [0], [1], [0, 0, 1, 1], [], []>} : vector<8x32xbf16>, vector<32x32xbf16>, vector<8x32xf32> -> vector<8x32xf32>
    %c3_112 = arith.constant 3 : index
    %c0_113 = arith.constant 0 : index
    %c0_114 = arith.constant 0 : index
    %161 = vector.load %arg7[%c3_112, %c0_113, %c0_114] : memref<4x1x32xf32, #tpu.memory_space<vmem>>, vector<1x1x32xf32>
    %162 = vector.shape_cast %161 : vector<1x1x32xf32> to vector<1x32xf32>
    %163 = vector.broadcast %162 : vector<1x32xf32> to vector<8x32xf32>
    %164 = arith.addf %160, %163 : vector<8x32xf32>
    %c3_115 = arith.constant 3 : index
    %c0_116 = arith.constant 0 : index
    %c0_117 = arith.constant 0 : index
    %165 = vector.load %arg4[%c3_115, %c0_116, %c0_117] : memref<4x32x32xbf16, #tpu.memory_space<vmem>>, vector<1x32x32xbf16>
    %166 = vector.shape_cast %165 : vector<1x32x32xbf16> to vector<32x32xbf16>
    %cst_118 = arith.constant dense<0.000000e+00> : vector<8x32xf32>
    %167 = tpu.matmul %1, %166, %cst_118 {dimension_numbers = #tpu.dot_dimension_numbers<[1], [0], [0], [1], [0, 0, 1, 1], [], []>} : vector<8x32xbf16>, vector<32x32xbf16>, vector<8x32xf32> -> vector<8x32xf32>
    %c3_119 = arith.constant 3 : index
    %c0_120 = arith.constant 0 : index
    %c0_121 = arith.constant 0 : index
    %168 = vector.load %arg8[%c3_119, %c0_120, %c0_121] : memref<4x1x32xf32, #tpu.memory_space<vmem>>, vector<1x1x32xf32>
    %169 = vector.shape_cast %168 : vector<1x1x32xf32> to vector<1x32xf32>
    %170 = vector.broadcast %169 : vector<1x32xf32> to vector<8x32xf32>
    %171 = arith.addf %167, %170 : vector<8x32xf32>
    %172 = vector.shape_cast %157 : vector<8x32xf32> to vector<1x8x32xf32>
    %173 = arith.truncf %172 : vector<1x8x32xf32> to vector<1x8x32xbf16>
    %174 = vector.shape_cast %164 : vector<8x32xf32> to vector<1x8x32xf32>
    %175 = arith.truncf %174 : vector<1x8x32xf32> to vector<1x8x32xbf16>
    %176 = vector.shape_cast %171 : vector<8x32xf32> to vector<1x8x32xf32>
    %177 = arith.truncf %176 : vector<1x8x32xf32> to vector<1x8x32xbf16>
    "tpu.trace_start"() <{level = 10 : i32, message = "bqd,bkd->bqk"}> : () -> ()
    %cst_122 = arith.constant dense<0.000000e+00> : vector<1x8x8xf32>
    %178 = tpu.matmul %173, %175, %cst_122 {dimension_numbers = #tpu.dot_dimension_numbers<[2], [2], [1], [1], [0, 0, 0, 1, 1, 1], [0], [0]>} : vector<1x8x32xbf16>, vector<1x8x32xbf16>, vector<1x8x8xf32> -> vector<1x8x8xf32>
    "tpu.trace_stop"() : () -> ()
    %cst_123 = arith.constant dense<0xFF800000> : vector<1x8xf32>
    %179 = vector.multi_reduction <maximumf>, %178, %cst_123 [2] : vector<1x8x8xf32> to vector<1x8xf32>
    %180 = vector.shape_cast %179 : vector<1x8xf32> to vector<1x8x1xf32>
    %181 = vector.broadcast %180 : vector<1x8x1xf32> to vector<1x8x8xf32>
    %182 = arith.subf %178, %181 : vector<1x8x8xf32>
    %183 = math.exp %182 : vector<1x8x8xf32>
    %cst_124 = arith.constant dense<0.000000e+00> : vector<1x8xf32>
    %184 = vector.multi_reduction <add>, %183, %cst_124 [2] : vector<1x8x8xf32> to vector<1x8xf32>
    %185 = vector.shape_cast %184 : vector<1x8xf32> to vector<1x8x1xf32>
    %186 = tpu.reciprocal %185 {approx = true} : vector<1x8x1xf32> -> vector<1x8x1xf32>
    %187 = vector.broadcast %186 : vector<1x8x1xf32> to vector<1x8x8xf32>
    %188 = arith.mulf %183, %187 : vector<1x8x8xf32>
    %189 = arith.truncf %188 : vector<1x8x8xf32> to vector<1x8x8xbf16>
    "tpu.trace_start"() <{level = 10 : i32, message = "bqk,bkd->bqd"}> : () -> ()
    %cst_125 = arith.constant dense<0.000000e+00> : vector<1x8x32xf32>
    %190 = tpu.matmul %189, %177, %cst_125 {dimension_numbers = #tpu.dot_dimension_numbers<[2], [1], [1], [2], [0, 0, 0, 1, 1, 2], [0], [0]>} : vector<1x8x8xbf16>, vector<1x8x32xbf16>, vector<1x8x32xf32> -> vector<1x8x32xf32>
    "tpu.trace_stop"() : () -> ()
    %c0_126 = arith.constant 0 : index
    %c0_127 = arith.constant 0 : index
    %191 = vector.load %arg19[%c0_126, %c0_127] : memref<8x32xf32, #tpu.memory_space<vmem>>, vector<8x32xf32>
    %192 = vector.shape_cast %190 : vector<1x8x32xf32> to vector<8x32xf32>
    %193 = arith.truncf %192 : vector<8x32xf32> to vector<8x32xbf16>
    %c3_128 = arith.constant 3 : index
    %c0_129 = arith.constant 0 : index
    %c0_130 = arith.constant 0 : index
    %194 = vector.load %arg5[%c3_128, %c0_129, %c0_130] : memref<4x32x32xbf16, #tpu.memory_space<vmem>>, vector<1x32x32xbf16>
    %195 = vector.shape_cast %194 : vector<1x32x32xbf16> to vector<32x32xbf16>
    %cst_131 = arith.constant dense<0.000000e+00> : vector<8x32xf32>
    %196 = tpu.matmul %193, %195, %cst_131 {dimension_numbers = #tpu.dot_dimension_numbers<[1], [0], [0], [1], [0, 0, 1, 1], [], []>} : vector<8x32xbf16>, vector<32x32xbf16>, vector<8x32xf32> -> vector<8x32xf32>
    %197 = arith.addf %191, %196 : vector<8x32xf32>
    %c0_132 = arith.constant 0 : index
    %c0_133 = arith.constant 0 : index
    %198 = vector.load %arg19[%c0_132, %c0_133] : memref<8x32xf32, #tpu.memory_space<vmem>>, vector<8x32xf32>
    tpu.vector_store %arg19[%c0_132, %c0_133], %197 {strides = array<i32>} : memref<8x32xf32, #tpu.memory_space<vmem>>, vector<8x32xf32>,
    %c0_134 = arith.constant 0 : index
    %c0_135 = arith.constant 0 : index
    %199 = vector.load %arg19[%c0_134, %c0_135] : memref<8x32xf32, #tpu.memory_space<vmem>>, vector<8x32xf32>
    %c0_136 = arith.constant 0 : index
    %c0_137 = arith.constant 0 : index
    %200 = vector.load %arg10[%c0_136, %c0_137] : memref<1x32xf32, #tpu.memory_space<vmem>>, vector<1x32xf32>
    %c0_138 = arith.constant 0 : index
    %c0_139 = arith.constant 0 : index
    %201 = vector.load %arg11[%c0_138, %c0_139] : memref<1x32xf32, #tpu.memory_space<vmem>>, vector<1x32xf32>
    %cst_140 = arith.constant dense<0.000000e+00> : vector<8xf32>
    %202 = vector.multi_reduction <add>, %199, %cst_140 [1] : vector<8x32xf32> to vector<8xf32>
    %203 = vector.shape_cast %202 : vector<8xf32> to vector<8x1xf32>
    %cst_141 = arith.constant 3.200000e+01 : f32
    %204 = vector.broadcast %cst_141 : f32 to vector<8x1xf32>
    %205 = arith.divf %203, %204 : vector<8x1xf32>
    %206 = vector.broadcast %205 : vector<8x1xf32> to vector<8x32xf32>
    %207 = arith.subf %199, %206 : vector<8x32xf32>
    %208 = arith.mulf %207, %207 : vector<8x32xf32>
    %cst_142 = arith.constant dense<0.000000e+00> : vector<8xf32>
    %209 = vector.multi_reduction <add>, %208, %cst_142 [1] : vector<8x32xf32> to vector<8xf32>
    %210 = vector.shape_cast %209 : vector<8xf32> to vector<8x1xf32>
    %cst_143 = arith.constant 3.200000e+01 : f32
    %211 = vector.broadcast %cst_143 : f32 to vector<8x1xf32>
    %212 = arith.divf %210, %211 : vector<8x1xf32>
    %213 = vector.broadcast %205 : vector<8x1xf32> to vector<8x32xf32>
    %214 = arith.subf %199, %213 : vector<8x32xf32>
    %cst_144 = arith.constant 9.99999974E-6 : f32
    %215 = vector.broadcast %cst_144 : f32 to vector<8x1xf32>
    %216 = arith.addf %212, %215 : vector<8x1xf32>
    %217 = math.rsqrt %216 : vector<8x1xf32>
    %218 = vector.broadcast %217 : vector<8x1xf32> to vector<8x32xf32>
    %219 = arith.mulf %214, %218 : vector<8x32xf32>
    %220 = vector.broadcast %200 : vector<1x32xf32> to vector<8x32xf32>
    %221 = arith.mulf %219, %220 : vector<8x32xf32>
    %222 = vector.broadcast %201 : vector<1x32xf32> to vector<8x32xf32>
    %223 = arith.addf %221, %222 : vector<8x32xf32>
    %224 = arith.truncf %223 : vector<8x32xf32> to vector<8x32xbf16>
    %c0_145 = arith.constant 0 : index
    %c0_146 = arith.constant 0 : index
    %225 = vector.load %arg12[%c0_145, %c0_146] : memref<32x128xbf16, #tpu.memory_space<vmem>>, vector<32x128xbf16>
    %cst_147 = arith.constant dense<0.000000e+00> : vector<8x128xf32>
    %226 = tpu.matmul %224, %225, %cst_147 {dimension_numbers = #tpu.dot_dimension_numbers<[1], [0], [0], [1], [0, 0, 1, 1], [], []>} : vector<8x32xbf16>, vector<32x128xbf16>, vector<8x128xf32> -> vector<8x128xf32>
    %c0_148 = arith.constant 0 : index
    %c0_149 = arith.constant 0 : index
    %227 = vector.load %arg13[%c0_148, %c0_149] : memref<1x128xf32, #tpu.memory_space<vmem>>, vector<1x128xf32>
    %228 = vector.broadcast %227 : vector<1x128xf32> to vector<8x128xf32>
    %229 = arith.addf %226, %228 : vector<8x128xf32>
    %cst_150 = arith.constant 0.000000e+00 : f32
    %230 = vector.broadcast %cst_150 : f32 to vector<8x128xf32>
    %231 = arith.maximumf %229, %230 : vector<8x128xf32>
    %232 = arith.truncf %231 : vector<8x128xf32> to vector<8x128xbf16>
    %c0_151 = arith.constant 0 : index
    %c0_152 = arith.constant 0 : index
    %233 = vector.load %arg14[%c0_151, %c0_152] : memref<128x32xbf16, #tpu.memory_space<vmem>>, vector<128x32xbf16>
    %cst_153 = arith.constant dense<0.000000e+00> : vector<8x32xf32>
    %234 = tpu.matmul %232, %233, %cst_153 {dimension_numbers = #tpu.dot_dimension_numbers<[1], [0], [0], [1], [0, 0, 1, 1], [], []>} : vector<8x128xbf16>, vector<128x32xbf16>, vector<8x32xf32> -> vector<8x32xf32>
    %c0_154 = arith.constant 0 : index
    %c0_155 = arith.constant 0 : index
    %235 = vector.load %arg15[%c0_154, %c0_155] : memref<1x32xf32, #tpu.memory_space<vmem>>, vector<1x32xf32>
    %236 = vector.broadcast %235 : vector<1x32xf32> to vector<8x32xf32>
    %237 = arith.addf %234, %236 : vector<8x32xf32>
    %238 = arith.addf %223, %237 : vector<8x32xf32>
    %c0_156 = arith.constant 0 : index
    %c0_157 = arith.constant 0 : index
    %239 = vector.load %arg16[%c0_156, %c0_157] : memref<1x32xf32, #tpu.memory_space<vmem>>, vector<1x32xf32>
    %c0_158 = arith.constant 0 : index
    %c0_159 = arith.constant 0 : index
    %240 = vector.load %arg17[%c0_158, %c0_159] : memref<1x32xf32, #tpu.memory_space<vmem>>, vector<1x32xf32>
    %cst_160 = arith.constant dense<0.000000e+00> : vector<8xf32>
    %241 = vector.multi_reduction <add>, %238, %cst_160 [1] : vector<8x32xf32> to vector<8xf32>
    %242 = vector.shape_cast %241 : vector<8xf32> to vector<8x1xf32>
    %cst_161 = arith.constant 3.200000e+01 : f32
    %243 = vector.broadcast %cst_161 : f32 to vector<8x1xf32>
    %244 = arith.divf %242, %243 : vector<8x1xf32>
    %245 = vector.broadcast %244 : vector<8x1xf32> to vector<8x32xf32>
    %246 = arith.subf %238, %245 : vector<8x32xf32>
    %247 = arith.mulf %246, %246 : vector<8x32xf32>
    %cst_162 = arith.constant dense<0.000000e+00> : vector<8xf32>
    %248 = vector.multi_reduction <add>, %247, %cst_162 [1] : vector<8x32xf32> to vector<8xf32>
    %249 = vector.shape_cast %248 : vector<8xf32> to vector<8x1xf32>
    %cst_163 = arith.constant 3.200000e+01 : f32
    %250 = vector.broadcast %cst_163 : f32 to vector<8x1xf32>
    %251 = arith.divf %249, %250 : vector<8x1xf32>
    %252 = vector.broadcast %244 : vector<8x1xf32> to vector<8x32xf32>
    %253 = arith.subf %238, %252 : vector<8x32xf32>
    %cst_164 = arith.constant 9.99999974E-6 : f32
    %254 = vector.broadcast %cst_164 : f32 to vector<8x1xf32>
    %255 = arith.addf %251, %254 : vector<8x1xf32>
    %256 = math.rsqrt %255 : vector<8x1xf32>
    %257 = vector.broadcast %256 : vector<8x1xf32> to vector<8x32xf32>
    %258 = arith.mulf %253, %257 : vector<8x32xf32>
    %259 = vector.broadcast %239 : vector<1x32xf32> to vector<8x32xf32>
    %260 = arith.mulf %258, %259 : vector<8x32xf32>
    %261 = vector.broadcast %240 : vector<1x32xf32> to vector<8x32xf32>
    %262 = arith.addf %260, %261 : vector<8x32xf32>
    %263 = vector.shape_cast %262 : vector<8x32xf32> to vector<1x8x32xf32>
    %c0_165 = arith.constant 0 : index
    %c0_166 = arith.constant 0 : index
    %c0_167 = arith.constant 0 : index
    %264 = vector.load %arg18[%c0_165, %c0_166, %c0_167] : memref<1x8x32xf32, #tpu.memory_space<vmem>>, vector<1x8x32xf32>
    tpu.vector_store %arg18[%c0_165, %c0_166, %c0_167], %263 {strides = array<i32>} : memref<1x8x32xf32, #tpu.memory_space<vmem>>, vector<1x8x32xf32>,
    return
  }
  func.func @transform_0(%arg0: i32) -> (i32, i32, i32) {
    %c0_i32 = arith.constant 0 : i32
    %c0_i32_0 = arith.constant 0 : i32
    %c0_i32_1 = arith.constant 0 : i32
    return %arg0, %c0_i32, %c0_i32_0 : i32, i32, i32
  }
  func.func @transform_1(%arg0: i32) -> (i32, i32, i32) {
    %c0_i32 = arith.constant 0 : i32
    %c0_i32_0 = arith.constant 0 : i32
    %c0_i32_1 = arith.constant 0 : i32
    %c0_i32_2 = arith.constant 0 : i32
    return %c0_i32, %c0_i32_0, %c0_i32_1 : i32, i32, i32
  }
  func.func @transform_2(%arg0: i32) -> (i32, i32, i32) {
    %c0_i32 = arith.constant 0 : i32
    %c0_i32_0 = arith.constant 0 : i32
    %c0_i32_1 = arith.constant 0 : i32
    %c0_i32_2 = arith.constant 0 : i32
    return %c0_i32, %c0_i32_0, %c0_i32_1 : i32, i32, i32
  }
  func.func @transform_3(%arg0: i32) -> (i32, i32, i32) {
    %c0_i32 = arith.constant 0 : i32
    %c0_i32_0 = arith.constant 0 : i32
    %c0_i32_1 = arith.constant 0 : i32
    %c0_i32_2 = arith.constant 0 : i32
    return %c0_i32, %c0_i32_0, %c0_i32_1 : i32, i32, i32
  }
  func.func @transform_4(%arg0: i32) -> (i32, i32, i32) {
    %c0_i32 = arith.constant 0 : i32
    %c0_i32_0 = arith.constant 0 : i32
    %c0_i32_1 = arith.constant 0 : i32
    %c0_i32_2 = arith.constant 0 : i32
    return %c0_i32, %c0_i32_0, %c0_i32_1 : i32, i32, i32
  }
  func.func @transform_5(%arg0: i32) -> (i32, i32, i32) {
    %c0_i32 = arith.constant 0 : i32
    %c0_i32_0 = arith.constant 0 : i32
    %c0_i32_1 = arith.constant 0 : i32
    %c0_i32_2 = arith.constant 0 : i32
    return %c0_i32, %c0_i32_0, %c0_i32_1 : i32, i32, i32
  }
  func.func @transform_6(%arg0: i32) -> (i32, i32, i32) {
    %c0_i32 = arith.constant 0 : i32
    %c0_i32_0 = arith.constant 0 : i32
    %c0_i32_1 = arith.constant 0 : i32
    %c0_i32_2 = arith.constant 0 : i32
    return %c0_i32, %c0_i32_0, %c0_i32_1 : i32, i32, i32
  }
  func.func @transform_7(%arg0: i32) -> (i32, i32, i32) {
    %c0_i32 = arith.constant 0 : i32
    %c0_i32_0 = arith.constant 0 : i32
    %c0_i32_1 = arith.constant 0 : i32
    %c0_i32_2 = arith.constant 0 : i32
    return %c0_i32, %c0_i32_0, %c0_i32_1 : i32, i32, i32
  }
  func.func @transform_8(%arg0: i32) -> (i32, i32) {
    %c0_i32 = arith.constant 0 : i32
    %c0_i32_0 = arith.constant 0 : i32
    %c0_i32_1 = arith.constant 0 : i32
    return %c0_i32, %c0_i32_0 : i32, i32
  }
  func.func @transform_9(%arg0: i32) -> (i32, i32) {
    %c0_i32 = arith.constant 0 : i32
    %c0_i32_0 = arith.constant 0 : i32
    %c0_i32_1 = arith.constant 0 : i32
    return %c0_i32, %c0_i32_0 : i32, i32
  }
  func.func @transform_10(%arg0: i32) -> (i32, i32) {
    %c0_i32 = arith.constant 0 : i32
    %c0_i32_0 = arith.constant 0 : i32
    %c0_i32_1 = arith.constant 0 : i32
    return %c0_i32, %c0_i32_0 : i32, i32
  }
  func.func @transform_11(%arg0: i32) -> (i32, i32) {
    %c0_i32 = arith.constant 0 : i32
    %c0_i32_0 = arith.constant 0 : i32
    %c0_i32_1 = arith.constant 0 : i32
    return %c0_i32, %c0_i32_0 : i32, i32
  }
  func.func @transform_12(%arg0: i32) -> (i32, i32) {
    %c0_i32 = arith.constant 0 : i32
    %c0_i32_0 = arith.constant 0 : i32
    %c0_i32_1 = arith.constant 0 : i32
    return %c0_i32, %c0_i32_0 : i32, i32
  }
  func.func @transform_13(%arg0: i32) -> (i32, i32) {
    %c0_i32 = arith.constant 0 : i32
    %c0_i32_0 = arith.constant 0 : i32
    %c0_i32_1 = arith.constant 0 : i32
    return %c0_i32, %c0_i32_0 : i32, i32
  }
  func.func @transform_14(%arg0: i32) -> (i32, i32) {
    %c0_i32 = arith.constant 0 : i32
    %c0_i32_0 = arith.constant 0 : i32
    %c0_i32_1 = arith.constant 0 : i32
    return %c0_i32, %c0_i32_0 : i32, i32
  }
  func.func @transform_15(%arg0: i32) -> (i32, i32) {
    %c0_i32 = arith.constant 0 : i32
    %c0_i32_0 = arith.constant 0 : i32
    %c0_i32_1 = arith.constant 0 : i32
    return %c0_i32, %c0_i32_0 : i32, i32
  }
  func.func @transform_16(%arg0: i32) -> (i32, i32) {
    %c0_i32 = arith.constant 0 : i32
    %c0_i32_0 = arith.constant 0 : i32
    %c0_i32_1 = arith.constant 0 : i32
    return %c0_i32, %c0_i32_0 : i32, i32
  }
  func.func @transform_17(%arg0: i32) -> (i32, i32, i32) {
    %c0_i32 = arith.constant 0 : i32
    %c0_i32_0 = arith.constant 0 : i32
    %c0_i32_1 = arith.constant 0 : i32
    return %arg0, %c0_i32, %c0_i32_0 : i32, i32, i32
  }
}

module attributes {stable_mosaic.version = 11 : i64} {
  func.func @encoder_layer_kernel(%arg0: i32, %arg1: memref<1x8x32xbf16, #tpu.memory_space<vmem>>, %arg2: memref<4x32x32xbf16, #tpu.memory_space<vmem>>, %arg3: memref<4x32x32xbf16, #tpu.memory_space<vmem>>, %arg4: memref<4x32x32xbf16, #tpu.memory_space<vmem>>, %arg5: memref<4x32x32xbf16, #tpu.memory_space<vmem>>, %arg6: memref<4x1x32xf32, #tpu.memory_space<vmem>>, %arg7: memref<4x1x32xf32, #tpu.memory_space<vmem>>, %arg8: memref<4x1x32xf32, #tpu.memory_space<vmem>>, %arg9: memref<1x32xf32, #tpu.memory_space<vmem>>, %arg10: memref<1x32xf32, #tpu.memory_space<vmem>>, %arg11: memref<1x32xf32, #tpu.memory_space<vmem>>, %arg12: memref<32x128xbf16, #tpu.memory_space<vmem>>, %arg13: memref<1x128xf32, #tpu.memory_space<vmem>>, %arg14: memref<128x32xbf16, #tpu.memory_space<vmem>>, %arg15: memref<1x32xf32, #tpu.memory_space<vmem>>, %arg16: memref<1x32xf32, #tpu.memory_space<vmem>>, %arg17: memref<1x32xf32, #tpu.memory_space<vmem>>, %arg18: memref<1x8x32xf32, #tpu.memory_space<vmem>>, %arg19: memref<8x32xf32, #tpu.memory_space<vmem>>) attributes {dimension_semantics = [#tpu.dimension_semantics<parallel>], iteration_bounds = array<i64: 2>, scalar_prefetch = 0 : i64, scratch_operands = 1 : i64, tpu.core_type = #tpu.core_type<tc>, window_params = [{transform_indices = @transform_0, window_bounds = array<i64: 1, 8, 32>}, {pipeline_mode = #tpu.pipeline_mode<synchronous>, transform_indices = @transform_1, window_bounds = array<i64: 4, 32, 32>}, {pipeline_mode = #tpu.pipeline_mode<synchronous>, transform_indices = @transform_2, window_bounds = array<i64: 4, 32, 32>}, {pipeline_mode = #tpu.pipeline_mode<synchronous>, transform_indices = @transform_3, window_bounds = array<i64: 4, 32, 32>}, {pipeline_mode = #tpu.pipeline_mode<synchronous>, transform_indices = @transform_4, window_bounds = array<i64: 4, 32, 32>}, {pipeline_mode = #tpu.pipeline_mode<synchronous>, transform_indices = @transform_5, window_bounds = array<i64: 4, 1, 32>}, {pipeline_mode = #tpu.pipeline_mode<synchronous>, transform_indices = @transform_6, window_bounds = array<i64: 4, 1, 32>}, {pipeline_mode = #tpu.pipeline_mode<synchronous>, transform_indices = @transform_7, window_bounds = array<i64: 4, 1, 32>}, {pipeline_mode = #tpu.pipeline_mode<synchronous>, transform_indices = @transform_8, window_bounds = array<i64: 1, 32>}, {pipeline_mode = #tpu.pipeline_mode<synchronous>, transform_indices = @transform_9, window_bounds = array<i64: 1, 32>}, {pipeline_mode = #tpu.pipeline_mode<synchronous>, transform_indices = @transform_10, window_bounds = array<i64: 1, 32>}, {pipeline_mode = #tpu.pipeline_mode<synchronous>, transform_indices = @transform_11, window_bounds = array<i64: 32, 128>}, {pipeline_mode = #tpu.pipeline_mode<synchronous>, transform_indices = @transform_12, window_bounds = array<i64: 1, 128>}, {pipeline_mode = #tpu.pipeline_mode<synchronous>, transform_indices = @transform_13, window_bounds = array<i64: 128, 32>}, {pipeline_mode = #tpu.pipeline_mode<synchronous>, transform_indices = @transform_14, window_bounds = array<i64: 1, 32>}, {pipeline_mode = #tpu.pipeline_mode<synchronous>, transform_indices = @transform_15, window_bounds = array<i64: 1, 32>}, {pipeline_mode = #tpu.pipeline_mode<synchronous>, transform_indices = @transform_16, window_bounds = array<i64: 1, 32>}, {transform_indices = @transform_17, window_bounds = array<i64: 1, 8, 32>}]} {
    %c0 = arith.constant 0 : index
    %c0_0 = arith.constant 0 : index
    %c0_1 = arith.constant 0 : index
    %0 = vector.load %arg1[%c0, %c0_0, %c0_1] : memref<1x8x32xbf16, #tpu.memory_space<vmem>>, vector<1x8x32xbf16>
    %1 = vector.shape_cast %0 : vector<1x8x32xbf16> to vector<8x32xbf16>
    %2 = arith.extf %1 : vector<8x32xbf16> to vector<8x32xf32>
    %c0_2 = arith.constant 0 : index
    %c0_3 = arith.constant 0 : index
    %3 = vector.load %arg9[%c0_2, %c0_3] : memref<1x32xf32, #tpu.memory_space<vmem>>, vector<1x32xf32>
    %4 = vector.broadcast %3 : vector<1x32xf32> to vector<8x32xf32>
    %5 = arith.addf %2, %4 : vector<8x32xf32>
    %c0_4 = arith.constant 0 : index
    %c0_5 = arith.constant 0 : index
    %6 = vector.load %arg19[%c0_4, %c0_5] : memref<8x32xf32, #tpu.memory_space<vmem>>, vector<8x32xf32>
    tpu.vector_store %arg19[%c0_4, %c0_5], %5 {strides = array<i32>} : memref<8x32xf32, #tpu.memory_space<vmem>>, vector<8x32xf32>,
    %c0_6 = arith.constant 0 : index
    %c0_7 = arith.constant 0 : index
    %c0_8 = arith.constant 0 : index
    %7 = vector.load %arg2[%c0_6, %c0_7, %c0_8] : memref<4x32x32xbf16, #tpu.memory_space<vmem>>, vector<1x32x32xbf16>
    %8 = vector.shape_cast %7 : vector<1x32x32xbf16> to vector<32x32xbf16>
    %cst = arith.constant dense<0.000000e+00> : vector<8x32xf32>
    %9 = tpu.matmul %1, %8, %cst {dimension_numbers = #tpu.dot_dimension_numbers<[1], [0], [0], [1], [0, 0, 1, 1], [], []>} : vector<8x32xbf16>, vector<32x32xbf16>, vector<8x32xf32> -> vector<8x32xf32>
    %c0_9 = arith.constant 0 : index
    %c0_10 = arith.constant 0 : index
    %c0_11 = arith.constant 0 : index
    %10 = vector.load %arg6[%c0_9, %c0_10, %c0_11] : memref<4x1x32xf32, #tpu.memory_space<vmem>>, vector<1x1x32xf32>
    %11 = vector.shape_cast %10 : vector<1x1x32xf32> to vector<1x32xf32>
    %12 = vector.broadcast %11 : vector<1x32xf32> to vector<8x32xf32>
    %13 = arith.addf %9, %12 : vector<8x32xf32>
    %c0_12 = arith.constant 0 : index
    %c0_13 = arith.constant 0 : index
    %c0_14 = arith.constant 0 : index
    %14 = vector.load %arg3[%c0_12, %c0_13, %c0_14] : memref<4x32x32xbf16, #tpu.memory_space<vmem>>, vector<1x32x32xbf16>
    %15 = vector.shape_cast %14 : vector<1x32x32xbf16> to vector<32x32xbf16>
    %cst_15 = arith.constant dense<0.000000e+00> : vector<8x32xf32>
    %16 = tpu.matmul %1, %15, %cst_15 {dimension_numbers = #tpu.dot_dimension_numbers<[1], [0], [0], [1], [0, 0, 1, 1], [], []>} : vector<8x32xbf16>, vector<32x32xbf16>, vector<8x32xf32> -> vector<8x32xf32>
    %c0_16 = arith.constant 0 : index
    %c0_17 = arith.constant 0 : index
    %c0_18 = arith.constant 0 : index
    %17 = vector.load %arg7[%c0_16, %c0_17, %c0_18] : memref<4x1x32xf32, #tpu.memory_space<vmem>>, vector<1x1x32xf32>
    %18 = vector.shape_cast %17 : vector<1x1x32xf32> to vector<1x32xf32>
    %19 = vector.broadcast %18 : vector<1x32xf32> to vector<8x32xf32>
    %20 = arith.addf %16, %19 : vector<8x32xf32>
    %c0_19 = arith.constant 0 : index
    %c0_20 = arith.constant 0 : index
    %c0_21 = arith.constant 0 : index
    %21 = vector.load %arg4[%c0_19, %c0_20, %c0_21] : memref<4x32x32xbf16, #tpu.memory_space<vmem>>, vector<1x32x32xbf16>
    %22 = vector.shape_cast %21 : vector<1x32x32xbf16> to vector<32x32xbf16>
    %cst_22 = arith.constant dense<0.000000e+00> : vector<8x32xf32>
    %23 = tpu.matmul %1, %22, %cst_22 {dimension_numbers = #tpu.dot_dimension_numbers<[1], [0], [0], [1], [0, 0, 1, 1], [], []>} : vector<8x32xbf16>, vector<32x32xbf16>, vector<8x32xf32> -> vector<8x32xf32>
    %c0_23 = arith.constant 0 : index
    %c0_24 = arith.constant 0 : index
    %c0_25 = arith.constant 0 : index
    %24 = vector.load %arg8[%c0_23, %c0_24, %c0_25] : memref<4x1x32xf32, #tpu.memory_space<vmem>>, vector<1x1x32xf32>
    %25 = vector.shape_cast %24 : vector<1x1x32xf32> to vector<1x32xf32>
    %26 = vector.broadcast %25 : vector<1x32xf32> to vector<8x32xf32>
    %27 = arith.addf %23, %26 : vector<8x32xf32>
    %28 = vector.shape_cast %13 : vector<8x32xf32> to vector<1x8x32xf32>
    %29 = arith.truncf %28 : vector<1x8x32xf32> to vector<1x8x32xbf16>
    %30 = vector.shape_cast %20 : vector<8x32xf32> to vector<1x8x32xf32>
    %31 = arith.truncf %30 : vector<1x8x32xf32> to vector<1x8x32xbf16>
    %32 = vector.shape_cast %27 : vector<8x32xf32> to vector<1x8x32xf32>
    %33 = arith.truncf %32 : vector<1x8x32xf32> to vector<1x8x32xbf16>
    "tpu.trace_start"() <{level = 10 : i32, message = "bqd,bkd->bqk"}> : () -> ()
    %cst_26 = arith.constant dense<0.000000e+00> : vector<1x8x8xf32>
    %34 = tpu.matmul %29, %31, %cst_26 {dimension_numbers = #tpu.dot_dimension_numbers<[2], [2], [1], [1], [0, 0, 0, 1, 1, 1], [0], [0]>} : vector<1x8x32xbf16>, vector<1x8x32xbf16>, vector<1x8x8xf32> -> vector<1x8x8xf32>
    "tpu.trace_stop"() : () -> ()
    %cst_27 = arith.constant dense<0xFF800000> : vector<1x8xf32>
    %35 = vector.multi_reduction <maximumf>, %34, %cst_27 [2] : vector<1x8x8xf32> to vector<1x8xf32>
    %36 = vector.shape_cast %35 : vector<1x8xf32> to vector<1x8x1xf32>
    %37 = vector.broadcast %36 : vector<1x8x1xf32> to vector<1x8x8xf32>
    %38 = arith.subf %34, %37 : vector<1x8x8xf32>
    %39 = math.exp %38 : vector<1x8x8xf32>
    %cst_28 = arith.constant dense<0.000000e+00> : vector<1x8xf32>
    %40 = vector.multi_reduction <add>, %39, %cst_28 [2] : vector<1x8x8xf32> to vector<1x8xf32>
    %41 = vector.shape_cast %40 : vector<1x8xf32> to vector<1x8x1xf32>
    %42 = tpu.reciprocal %41 {approx = true} : vector<1x8x1xf32> -> vector<1x8x1xf32>
    %43 = vector.broadcast %42 : vector<1x8x1xf32> to vector<1x8x8xf32>
    %44 = arith.mulf %39, %43 : vector<1x8x8xf32>
    %45 = arith.truncf %44 : vector<1x8x8xf32> to vector<1x8x8xbf16>
    "tpu.trace_start"() <{level = 10 : i32, message = "bqk,bkd->bqd"}> : () -> ()
    %cst_29 = arith.constant dense<0.000000e+00> : vector<1x8x32xf32>
    %46 = tpu.matmul %45, %33, %cst_29 {dimension_numbers = #tpu.dot_dimension_numbers<[2], [1], [1], [2], [0, 0, 0, 1, 1, 2], [0], [0]>} : vector<1x8x8xbf16>, vector<1x8x32xbf16>, vector<1x8x32xf32> -> vector<1x8x32xf32>
    "tpu.trace_stop"() : () -> ()
    %c0_30 = arith.constant 0 : index
    %c0_31 = arith.constant 0 : index
    %47 = vector.load %arg19[%c0_30, %c0_31] : memref<8x32xf32, #tpu.memory_space<vmem>>, vector<8x32xf32>
    %48 = vector.shape_cast %46 : vector<1x8x32xf32> to vector<8x32xf32>
    %49 = arith.truncf %48 : vector<8x32xf32> to vector<8x32xbf16>
    %c0_32 = arith.constant 0 : index
    %c0_33 = arith.constant 0 : index
    %c0_34 = arith.constant 0 : index
    %50 = vector.load %arg5[%c0_32, %c0_33, %c0_34] : memref<4x32x32xbf16, #tpu.memory_space<vmem>>, vector<1x32x32xbf16>
    %51 = vector.shape_cast %50 : vector<1x32x32xbf16> to vector<32x32xbf16>
    %cst_35 = arith.constant dense<0.000000e+00> : vector<8x32xf32>
    %52 = tpu.matmul %49, %51, %cst_35 {dimension_numbers = #tpu.dot_dimension_numbers<[1], [0], [0], [1], [0, 0, 1, 1], [], []>} : vector<8x32xbf16>, vector<32x32xbf16>, vector<8x32xf32> -> vector<8x32xf32>
    %53 = arith.addf %47, %52 : vector<8x32xf32>
    %c0_36 = arith.constant 0 : index
    %c0_37 = arith.constant 0 : index
    %54 = vector.load %arg19[%c0_36, %c0_37] : memref<8x32xf32, #tpu.memory_space<vmem>>, vector<8x32xf32>
    tpu.vector_store %arg19[%c0_36, %c0_37], %53 {strides = array<i32>} : memref<8x32xf32, #tpu.memory_space<vmem>>, vector<8x32xf32>,
    %c1 = arith.constant 1 : index
    %c0_38 = arith.constant 0 : index
    %c0_39 = arith.constant 0 : index
    %55 = vector.load %arg2[%c1, %c0_38, %c0_39] : memref<4x32x32xbf16, #tpu.memory_space<vmem>>, vector<1x32x32xbf16>
    %56 = vector.shape_cast %55 : vector<1x32x32xbf16> to vector<32x32xbf16>
    %cst_40 = arith.constant dense<0.000000e+00> : vector<8x32xf32>
    %57 = tpu.matmul %1, %56, %cst_40 {dimension_numbers = #tpu.dot_dimension_numbers<[1], [0], [0], [1], [0, 0, 1, 1], [], []>} : vector<8x32xbf16>, vector<32x32xbf16>, vector<8x32xf32> -> vector<8x32xf32>
    %c1_41 = arith.constant 1 : index
    %c0_42 = arith.constant 0 : index
    %c0_43 = arith.constant 0 : index
    %58 = vector.load %arg6[%c1_41, %c0_42, %c0_43] : memref<4x1x32xf32, #tpu.memory_space<vmem>>, vector<1x1x32xf32>
    %59 = vector.shape_cast %58 : vector<1x1x32xf32> to vector<1x32xf32>
    %60 = vector.broadcast %59 : vector<1x32xf32> to vector<8x32xf32>
    %61 = arith.addf %57, %60 : vector<8x32xf32>
    %c1_44 = arith.constant 1 : index
    %c0_45 = arith.constant 0 : index
    %c0_46 = arith.constant 0 : index
    %62 = vector.load %arg3[%c1_44, %c0_45, %c0_46] : memref<4x32x32xbf16, #tpu.memory_space<vmem>>, vector<1x32x32xbf16>
    %63 = vector.shape_cast %62 : vector<1x32x32xbf16> to vector<32x32xbf16>
    %cst_47 = arith.constant dense<0.000000e+00> : vector<8x32xf32>
    %64 = tpu.matmul %1, %63, %cst_47 {dimension_numbers = #tpu.dot_dimension_numbers<[1], [0], [0], [1], [0, 0, 1, 1], [], []>} : vector<8x32xbf16>, vector<32x32xbf16>, vector<8x32xf32> -> vector<8x32xf32>
    %c1_48 = arith.constant 1 : index
    %c0_49 = arith.constant 0 : index
    %c0_50 = arith.constant 0 : index
    %65 = vector.load %arg7[%c1_48, %c0_49, %c0_50] : memref<4x1x32xf32, #tpu.memory_space<vmem>>, vector<1x1x32xf32>
    %66 = vector.shape_cast %65 : vector<1x1x32xf32> to vector<1x32xf32>
    %67 = vector.broadcast %66 : vector<1x32xf32> to vector<8x32xf32>
    %68 = arith.addf %64, %67 : vector<8x32xf32>
    %c1_51 = arith.constant 1 : index
    %c0_52 = arith.constant 0 : index
    %c0_53 = arith.constant 0 : index
    %69 = vector.load %arg4[%c1_51, %c0_52, %c0_53] : memref<4x32x32xbf16, #tpu.memory_space<vmem>>, vector<1x32x32xbf16>
    %70 = vector.shape_cast %69 : vector<1x32x32xbf16> to vector<32x32xbf16>
    %cst_54 = arith.constant dense<0.000000e+00> : vector<8x32xf32>
    %71 = tpu.matmul %1, %70, %cst_54 {dimension_numbers = #tpu.dot_dimension_numbers<[1], [0], [0], [1], [0, 0, 1, 1], [], []>} : vector<8x32xbf16>, vector<32x32xbf16>, vector<8x32xf32> -> vector<8x32xf32>
    %c1_55 = arith.constant 1 : index
    %c0_56 = arith.constant 0 : index
    %c0_57 = arith.constant 0 : index
    %72 = vector.load %arg8[%c1_55, %c0_56, %c0_57] : memref<4x1x32xf32, #tpu.memory_space<vmem>>, vector<1x1x32xf32>
    %73 = vector.shape_cast %72 : vector<1x1x32xf32> to vector<1x32xf32>
    %74 = vector.broadcast %73 : vector<1x32xf32> to vector<8x32xf32>
    %75 = arith.addf %71, %74 : vector<8x32xf32>
    %76 = vector.shape_cast %61 : vector<8x32xf32> to vector<1x8x32xf32>
    %77 = arith.truncf %76 : vector<1x8x32xf32> to vector<1x8x32xbf16>
    %78 = vector.shape_cast %68 : vector<8x32xf32> to vector<1x8x32xf32>
    %79 = arith.truncf %78 : vector<1x8x32xf32> to vector<1x8x32xbf16>
    %80 = vector.shape_cast %75 : vector<8x32xf32> to vector<1x8x32xf32>
    %81 = arith.truncf %80 : vector<1x8x32xf32> to vector<1x8x32xbf16>
    "tpu.trace_start"() <{level = 10 : i32, message = "bqd,bkd->bqk"}> : () -> ()
    %cst_58 = arith.constant dense<0.000000e+00> : vector<1x8x8xf32>
    %82 = tpu.matmul %77, %79, %cst_58 {dimension_numbers = #tpu.dot_dimension_numbers<[2], [2], [1], [1], [0, 0, 0, 1, 1, 1], [0], [0]>} : vector<1x8x32xbf16>, vector<1x8x32xbf16>, vector<1x8x8xf32> -> vector<1x8x8xf32>
    "tpu.trace_stop"() : () -> ()
    %cst_59 = arith.constant dense<0xFF800000> : vector<1x8xf32>
    %83 = vector.multi_reduction <maximumf>, %82, %cst_59 [2] : vector<1x8x8xf32> to vector<1x8xf32>
    %84 = vector.shape_cast %83 : vector<1x8xf32> to vector<1x8x1xf32>
    %85 = vector.broadcast %84 : vector<1x8x1xf32> to vector<1x8x8xf32>
    %86 = arith.subf %82, %85 : vector<1x8x8xf32>
    %87 = math.exp %86 : vector<1x8x8xf32>
    %cst_60 = arith.constant dense<0.000000e+00> : vector<1x8xf32>
    %88 = vector.multi_reduction <add>, %87, %cst_60 [2] : vector<1x8x8xf32> to vector<1x8xf32>
    %89 = vector.shape_cast %88 : vector<1x8xf32> to vector<1x8x1xf32>
    %90 = tpu.reciprocal %89 {approx = true} : vector<1x8x1xf32> -> vector<1x8x1xf32>
    %91 = vector.broadcast %90 : vector<1x8x1xf32> to vector<1x8x8xf32>
    %92 = arith.mulf %87, %91 : vector<1x8x8xf32>
    %93 = arith.truncf %92 : vector<1x8x8xf32> to vector<1x8x8xbf16>
    "tpu.trace_start"() <{level = 10 : i32, message = "bqk,bkd->bqd"}> : () -> ()
    %cst_61 = arith.constant dense<0.000000e+00> : vector<1x8x32xf32>
    %94 = tpu.matmul %93, %81, %cst_61 {dimension_numbers = #tpu.dot_dimension_numbers<[2], [1], [1], [2], [0, 0, 0, 1, 1, 2], [0], [0]>} : vector<1x8x8xbf16>, vector<1x8x32xbf16>, vector<1x8x32xf32> -> vector<1x8x32xf32>
    "tpu.trace_stop"() : () -> ()
    %c0_62 = arith.constant 0 : index
    %c0_63 = arith.constant 0 : index
    %95 = vector.load %arg19[%c0_62, %c0_63] : memref<8x32xf32, #tpu.memory_space<vmem>>, vector<8x32xf32>
    %96 = vector.shape_cast %94 : vector<1x8x32xf32> to vector<8x32xf32>
    %97 = arith.truncf %96 : vector<8x32xf32> to vector<8x32xbf16>
    %c1_64 = arith.constant 1 : index
    %c0_65 = arith.constant 0 : index
    %c0_66 = arith.constant 0 : index
    %98 = vector.load %arg5[%c1_64, %c0_65, %c0_66] : memref<4x32x32xbf16, #tpu.memory_space<vmem>>, vector<1x32x32xbf16>
    %99 = vector.shape_cast %98 : vector<1x32x32xbf16> to vector<32x32xbf16>
    %cst_67 = arith.constant dense<0.000000e+00> : vector<8x32xf32>
    %100 = tpu.matmul %97, %99, %cst_67 {dimension_numbers = #tpu.dot_dimension_numbers<[1], [0], [0], [1], [0, 0, 1, 1], [], []>} : vector<8x32xbf16>, vector<32x32xbf16>, vector<8x32xf32> -> vector<8x32xf32>
    %101 = arith.addf %95, %100 : vector<8x32xf32>
    %c0_68 = arith.constant 0 : index
    %c0_69 = arith.constant 0 : index
    %102 = vector.load %arg19[%c0_68, %c0_69] : memref<8x32xf32, #tpu.memory_space<vmem>>, vector<8x32xf32>
    tpu.vector_store %arg19[%c0_68, %c0_69], %101 {strides = array<i32>} : memref<8x32xf32, #tpu.memory_space<vmem>>, vector<8x32xf32>,
    %c2 = arith.constant 2 : index
    %c0_70 = arith.constant 0 : index
    %c0_71 = arith.constant 0 : index
    %103 = vector.load %arg2[%c2, %c0_70, %c0_71] : memref<4x32x32xbf16, #tpu.memory_space<vmem>>, vector<1x32x32xbf16>
    %104 = vector.shape_cast %103 : vector<1x32x32xbf16> to vector<32x32xbf16>
    %cst_72 = arith.constant dense<0.000000e+00> : vector<8x32xf32>
    %105 = tpu.matmul %1, %104, %cst_72 {dimension_numbers = #tpu.dot_dimension_numbers<[1], [0], [0], [1], [0, 0, 1, 1], [], []>} : vector<8x32xbf16>, vector<32x32xbf16>, vector<8x32xf32> -> vector<8x32xf32>
    %c2_73 = arith.constant 2 : index
    %c0_74 = arith.constant 0 : index
    %c0_75 = arith.constant 0 : index
    %106 = vector.load %arg6[%c2_73, %c0_74, %c0_75] : memref<4x1x32xf32, #tpu.memory_space<vmem>>, vector<1x1x32xf32>
    %107 = vector.shape_cast %106 : vector<1x1x32xf32> to vector<1x32xf32>
    %108 = vector.broadcast %107 : vector<1x32xf32> to vector<8x32xf32>
    %109 = arith.addf %105, %108 : vector<8x32xf32>
    %c2_76 = arith.constant 2 : index
    %c0_77 = arith.constant 0 : index
    %c0_78 = arith.constant 0 : index
    %110 = vector.load %arg3[%c2_76, %c0_77, %c0_78] : memref<4x32x32xbf16, #tpu.memory_space<vmem>>, vector<1x32x32xbf16>
    %111 = vector.shape_cast %110 : vector<1x32x32xbf16> to vector<32x32xbf16>
    %cst_79 = arith.constant dense<0.000000e+00> : vector<8x32xf32>
    %112 = tpu.matmul %1, %111, %cst_79 {dimension_numbers = #tpu.dot_dimension_numbers<[1], [0], [0], [1], [0, 0, 1, 1], [], []>} : vector<8x32xbf16>, vector<32x32xbf16>, vector<8x32xf32> -> vector<8x32xf32>
    %c2_80 = arith.constant 2 : index
    %c0_81 = arith.constant 0 : index
    %c0_82 = arith.constant 0 : index
    %113 = vector.load %arg7[%c2_80, %c0_81, %c0_82] : memref<4x1x32xf32, #tpu.memory_space<vmem>>, vector<1x1x32xf32>
    %114 = vector.shape_cast %113 : vector<1x1x32xf32> to vector<1x32xf32>
    %115 = vector.broadcast %114 : vector<1x32xf32> to vector<8x32xf32>
    %116 = arith.addf %112, %115 : vector<8x32xf32>
    %c2_83 = arith.constant 2 : index
    %c0_84 = arith.constant 0 : index
    %c0_85 = arith.constant 0 : index
    %117 = vector.load %arg4[%c2_83, %c0_84, %c0_85] : memref<4x32x32xbf16, #tpu.memory_space<vmem>>, vector<1x32x32xbf16>
    %118 = vector.shape_cast %117 : vector<1x32x32xbf16> to vector<32x32xbf16>
    %cst_86 = arith.constant dense<0.000000e+00> : vector<8x32xf32>
    %119 = tpu.matmul %1, %118, %cst_86 {dimension_numbers = #tpu.dot_dimension_numbers<[1], [0], [0], [1], [0, 0, 1, 1], [], []>} : vector<8x32xbf16>, vector<32x32xbf16>, vector<8x32xf32> -> vector<8x32xf32>
    %c2_87 = arith.constant 2 : index
    %c0_88 = arith.constant 0 : index
    %c0_89 = arith.constant 0 : index
    %120 = vector.load %arg8[%c2_87, %c0_88, %c0_89] : memref<4x1x32xf32, #tpu.memory_space<vmem>>, vector<1x1x32xf32>
    %121 = vector.shape_cast %120 : vector<1x1x32xf32> to vector<1x32xf32>
    %122 = vector.broadcast %121 : vector<1x32xf32> to vector<8x32xf32>
    %123 = arith.addf %119, %122 : vector<8x32xf32>
    %124 = vector.shape_cast %109 : vector<8x32xf32> to vector<1x8x32xf32>
    %125 = arith.truncf %124 : vector<1x8x32xf32> to vector<1x8x32xbf16>
    %126 = vector.shape_cast %116 : vector<8x32xf32> to vector<1x8x32xf32>
    %127 = arith.truncf %126 : vector<1x8x32xf32> to vector<1x8x32xbf16>
    %128 = vector.shape_cast %123 : vector<8x32xf32> to vector<1x8x32xf32>
    %129 = arith.truncf %128 : vector<1x8x32xf32> to vector<1x8x32xbf16>
    "tpu.trace_start"() <{level = 10 : i32, message = "bqd,bkd->bqk"}> : () -> ()
    %cst_90 = arith.constant dense<0.000000e+00> : vector<1x8x8xf32>
    %130 = tpu.matmul %125, %127, %cst_90 {dimension_numbers = #tpu.dot_dimension_numbers<[2], [2], [1], [1], [0, 0, 0, 1, 1, 1], [0], [0]>} : vector<1x8x32xbf16>, vector<1x8x32xbf16>, vector<1x8x8xf32> -> vector<1x8x8xf32>
    "tpu.trace_stop"() : () -> ()
    %cst_91 = arith.constant dense<0xFF800000> : vector<1x8xf32>
    %131 = vector.multi_reduction <maximumf>, %130, %cst_91 [2] : vector<1x8x8xf32> to vector<1x8xf32>
    %132 = vector.shape_cast %131 : vector<1x8xf32> to vector<1x8x1xf32>
    %133 = vector.broadcast %132 : vector<1x8x1xf32> to vector<1x8x8xf32>
    %134 = arith.subf %130, %133 : vector<1x8x8xf32>
    %135 = math.exp %134 : vector<1x8x8xf32>
    %cst_92 = arith.constant dense<0.000000e+00> : vector<1x8xf32>
    %136 = vector.multi_reduction <add>, %135, %cst_92 [2] : vector<1x8x8xf32> to vector<1x8xf32>
    %137 = vector.shape_cast %136 : vector<1x8xf32> to vector<1x8x1xf32>
    %138 = tpu.reciprocal %137 {approx = true} : vector<1x8x1xf32> -> vector<1x8x1xf32>
    %139 = vector.broadcast %138 : vector<1x8x1xf32> to vector<1x8x8xf32>
    %140 = arith.mulf %135, %139 : vector<1x8x8xf32>
    %141 = arith.truncf %140 : vector<1x8x8xf32> to vector<1x8x8xbf16>
    "tpu.trace_start"() <{level = 10 : i32, message = "bqk,bkd->bqd"}> : () -> ()
    %cst_93 = arith.constant dense<0.000000e+00> : vector<1x8x32xf32>
    %142 = tpu.matmul %141, %129, %cst_93 {dimension_numbers = #tpu.dot_dimension_numbers<[2], [1], [1], [2], [0, 0, 0, 1, 1, 2], [0], [0]>} : vector<1x8x8xbf16>, vector<1x8x32xbf16>, vector<1x8x32xf32> -> vector<1x8x32xf32>
    "tpu.trace_stop"() : () -> ()
    %c0_94 = arith.constant 0 : index
    %c0_95 = arith.constant 0 : index
    %143 = vector.load %arg19[%c0_94, %c0_95] : memref<8x32xf32, #tpu.memory_space<vmem>>, vector<8x32xf32>
    %144 = vector.shape_cast %142 : vector<1x8x32xf32> to vector<8x32xf32>
    %145 = arith.truncf %144 : vector<8x32xf32> to vector<8x32xbf16>
    %c2_96 = arith.constant 2 : index
    %c0_97 = arith.constant 0 : index
    %c0_98 = arith.constant 0 : index
    %146 = vector.load %arg5[%c2_96, %c0_97, %c0_98] : memref<4x32x32xbf16, #tpu.memory_space<vmem>>, vector<1x32x32xbf16>
    %147 = vector.shape_cast %146 : vector<1x32x32xbf16> to vector<32x32xbf16>
    %cst_99 = arith.constant dense<0.000000e+00> : vector<8x32xf32>
    %148 = tpu.matmul %145, %147, %cst_99 {dimension_numbers = #tpu.dot_dimension_numbers<[1], [0], [0], [1], [0, 0, 1, 1], [], []>} : vector<8x32xbf16>, vector<32x32xbf16>, vector<8x32xf32> -> vector<8x32xf32>
    %149 = arith.addf %143, %148 : vector<8x32xf32>
    %c0_100 = arith.constant 0 : index
    %c0_101 = arith.constant 0 : index
    %150 = vector.load %arg19[%c0_100, %c0_101] : memref<8x32xf32, #tpu.memory_space<vmem>>, vector<8x32xf32>
    tpu.vector_store %arg19[%c0_100, %c0_101], %149 {strides = array<i32>} : memref<8x32xf32, #tpu.memory_space<vmem>>, vector<8x32xf32>,
    %c3 = arith.constant 3 : index
    %c0_102 = arith.constant 0 : index
    %c0_103 = arith.constant 0 : index
    %151 = vector.load %arg2[%c3, %c0_102, %c0_103] : memref<4x32x32xbf16, #tpu.memory_space<vmem>>, vector<1x32x32xbf16>
    %152 = vector.shape_cast %151 : vector<1x32x32xbf16> to vector<32x32xbf16>
    %cst_104 = arith.constant dense<0.000000e+00> : vector<8x32xf32>
    %153 = tpu.matmul %1, %152, %cst_104 {dimension_numbers = #tpu.dot_dimension_numbers<[1], [0], [0], [1], [0, 0, 1, 1], [], []>} : vector<8x32xbf16>, vector<32x32xbf16>, vector<8x32xf32> -> vector<8x32xf32>
    %c3_105 = arith.constant 3 : index
    %c0_106 = arith.constant 0 : index
    %c0_107 = arith.constant 0 : index
    %154 = vector.load %arg6[%c3_105, %c0_106, %c0_107] : memref<4x1x32xf32, #tpu.memory_space<vmem>>, vector<1x1x32xf32>
    %155 = vector.shape_cast %154 : vector<1x1x32xf32> to vector<1x32xf32>
    %156 = vector.broadcast %155 : vector<1x32xf32> to vector<8x32xf32>
    %157 = arith.addf %153, %156 : vector<8x32xf32>
    %c3_108 = arith.constant 3 : index
    %c0_109 = arith.constant 0 : index
    %c0_110 = arith.constant 0 : index
    %158 = vector.load %arg3[%c3_108, %c0_109, %c0_110] : memref<4x32x32xbf16, #tpu.memory_space<vmem>>, vector<1x32x32xbf16>
    %159 = vector.shape_cast %158 : vector<1x32x32xbf16> to vector<32x32xbf16>
    %cst_111 = arith.constant dense<0.000000e+00> : vector<8x32xf32>
    %160 = tpu.matmul %1, %159, %cst_111 {dimension_numbers = #tpu.dot_dimension_numbers<[1], [0], [0], [1], [0, 0, 1, 1], [], []>} : vector<8x32xbf16>, vector<32x32xbf16>, vector<8x32xf32> -> vector<8x32xf32>
    %c3_112 = arith.constant 3 : index
    %c0_113 = arith.constant 0 : index
    %c0_114 = arith.constant 0 : index
    %161 = vector.load %arg7[%c3_112, %c0_113, %c0_114] : memref<4x1x32xf32, #tpu.memory_space<vmem>>, vector<1x1x32xf32>
    %162 = vector.shape_cast %161 : vector<1x1x32xf32> to vector<1x32xf32>
    %163 = vector.broadcast %162 : vector<1x32xf32> to vector<8x32xf32>
    %164 = arith.addf %160, %163 : vector<8x32xf32>
    %c3_115 = arith.constant 3 : index
    %c0_116 = arith.constant 0 : index
    %c0_117 = arith.constant 0 : index
    %165 = vector.load %arg4[%c3_115, %c0_116, %c0_117] : memref<4x32x32xbf16, #tpu.memory_space<vmem>>, vector<1x32x32xbf16>
    %166 = vector.shape_cast %165 : vector<1x32x32xbf16> to vector<32x32xbf16>
    %cst_118 = arith.constant dense<0.000000e+00> : vector<8x32xf32>
    %167 = tpu.matmul %1, %166, %cst_118 {dimension_numbers = #tpu.dot_dimension_numbers<[1], [0], [0], [1], [0, 0, 1, 1], [], []>} : vector<8x32xbf16>, vector<32x32xbf16>, vector<8x32xf32> -> vector<8x32xf32>
    %c3_119 = arith.constant 3 : index
    %c0_120 = arith.constant 0 : index
    %c0_121 = arith.constant 0 : index
    %168 = vector.load %arg8[%c3_119, %c0_120, %c0_121] : memref<4x1x32xf32, #tpu.memory_space<vmem>>, vector<1x1x32xf32>
    %169 = vector.shape_cast %168 : vector<1x1x32xf32> to vector<1x32xf32>
    %170 = vector.broadcast %169 : vector<1x32xf32> to vector<8x32xf32>
    %171 = arith.addf %167, %170 : vector<8x32xf32>
    %172 = vector.shape_cast %157 : vector<8x32xf32> to vector<1x8x32xf32>
    %173 = arith.truncf %172 : vector<1x8x32xf32> to vector<1x8x32xbf16>
    %174 = vector.shape_cast %164 : vector<8x32xf32> to vector<1x8x32xf32>
    %175 = arith.truncf %174 : vector<1x8x32xf32> to vector<1x8x32xbf16>
    %176 = vector.shape_cast %171 : vector<8x32xf32> to vector<1x8x32xf32>
    %177 = arith.truncf %176 : vector<1x8x32xf32> to vector<1x8x32xbf16>
    "tpu.trace_start"() <{level = 10 : i32, message = "bqd,bkd->bqk"}> : () -> ()
    %cst_122 = arith.constant dense<0.000000e+00> : vector<1x8x8xf32>
    %178 = tpu.matmul %173, %175, %cst_122 {dimension_numbers = #tpu.dot_dimension_numbers<[2], [2], [1], [1], [0, 0, 0, 1, 1, 1], [0], [0]>} : vector<1x8x32xbf16>, vector<1x8x32xbf16>, vector<1x8x8xf32> -> vector<1x8x8xf32>
    "tpu.trace_stop"() : () -> ()
    %cst_123 = arith.constant dense<0xFF800000> : vector<1x8xf32>
    %179 = vector.multi_reduction <maximumf>, %178, %cst_123 [2] : vector<1x8x8xf32> to vector<1x8xf32>
    %180 = vector.shape_cast %179 : vector<1x8xf32> to vector<1x8x1xf32>
    %181 = vector.broadcast %180 : vector<1x8x1xf32> to vector<1x8x8xf32>
    %182 = arith.subf %178, %181 : vector<1x8x8xf32>
    %183 = math.exp %182 : vector<1x8x8xf32>
    %cst_124 = arith.constant dense<0.000000e+00> : vector<1x8xf32>
    %184 = vector.multi_reduction <add>, %183, %cst_124 [2] : vector<1x8x8xf32> to vector<1x8xf32>
    %185 = vector.shape_cast %184 : vector<1x8xf32> to vector<1x8x1xf32>
    %186 = tpu.reciprocal %185 {approx = true} : vector<1x8x1xf32> -> vector<1x8x1xf32>
    %187 = vector.broadcast %186 : vector<1x8x1xf32> to vector<1x8x8xf32>
    %188 = arith.mulf %183, %187 : vector<1x8x8xf32>
    %189 = arith.truncf %188 : vector<1x8x8xf32> to vector<1x8x8xbf16>
    "tpu.trace_start"() <{level = 10 : i32, message = "bqk,bkd->bqd"}> : () -> ()
    %cst_125 = arith.constant dense<0.000000e+00> : vector<1x8x32xf32>
    %190 = tpu.matmul %189, %177, %cst_125 {dimension_numbers = #tpu.dot_dimension_numbers<[2], [1], [1], [2], [0, 0, 0, 1, 1, 2], [0], [0]>} : vector<1x8x8xbf16>, vector<1x8x32xbf16>, vector<1x8x32xf32> -> vector<1x8x32xf32>
    "tpu.trace_stop"() : () -> ()
    %c0_126 = arith.constant 0 : index
    %c0_127 = arith.constant 0 : index
    %191 = vector.load %arg19[%c0_126, %c0_127] : memref<8x32xf32, #tpu.memory_space<vmem>>, vector<8x32xf32>
    %192 = vector.shape_cast %190 : vector<1x8x32xf32> to vector<8x32xf32>
    %193 = arith.truncf %192 : vector<8x32xf32> to vector<8x32xbf16>
    %c3_128 = arith.constant 3 : index
    %c0_129 = arith.constant 0 : index
    %c0_130 = arith.constant 0 : index
    %194 = vector.load %arg5[%c3_128, %c0_129, %c0_130] : memref<4x32x32xbf16, #tpu.memory_space<vmem>>, vector<1x32x32xbf16>
    %195 = vector.shape_cast %194 : vector<1x32x32xbf16> to vector<32x32xbf16>
    %cst_131 = arith.constant dense<0.000000e+00> : vector<8x32xf32>
    %196 = tpu.matmul %193, %195, %cst_131 {dimension_numbers = #tpu.dot_dimension_numbers<[1], [0], [0], [1], [0, 0, 1, 1], [], []>} : vector<8x32xbf16>, vector<32x32xbf16>, vector<8x32xf32> -> vector<8x32xf32>
    %197 = arith.addf %191, %196 : vector<8x32xf32>
    %c0_132 = arith.constant 0 : index
    %c0_133 = arith.constant 0 : index
    %198 = vector.load %arg19[%c0_132, %c0_133] : memref<8x32xf32, #tpu.memory_space<vmem>>, vector<8x32xf32>
    tpu.vector_store %arg19[%c0_132, %c0_133], %197 {strides = array<i32>} : memref<8x32xf32, #tpu.memory_space<vmem>>, vector<8x32xf32>,
    %c0_134 = arith.constant 0 : index
    %c0_135 = arith.constant 0 : index
    %199 = vector.load %arg19[%c0_134, %c0_135] : memref<8x32xf32, #tpu.memory_space<vmem>>, vector<8x32xf32>
    %c0_136 = arith.constant 0 : index
    %c0_137 = arith.constant 0 : index
    %200 = vector.load %arg10[%c0_136, %c0_137] : memref<1x32xf32, #tpu.memory_space<vmem>>, vector<1x32xf32>
    %c0_138 = arith.constant 0 : index
    %c0_139 = arith.constant 0 : index
    %201 = vector.load %arg11[%c0_138, %c0_139] : memref<1x32xf32, #tpu.memory_space<vmem>>, vector<1x32xf32>
    %cst_140 = arith.constant dense<0.000000e+00> : vector<8xf32>
    %202 = vector.multi_reduction <add>, %199, %cst_140 [1] : vector<8x32xf32> to vector<8xf32>
    %203 = vector.shape_cast %202 : vector<8xf32> to vector<8x1xf32>
    %cst_141 = arith.constant 3.200000e+01 : f32
    %204 = vector.broadcast %cst_141 : f32 to vector<8x1xf32>
    %205 = arith.divf %203, %204 : vector<8x1xf32>
    %206 = vector.broadcast %205 : vector<8x1xf32> to vector<8x32xf32>
    %207 = arith.subf %199, %206 : vector<8x32xf32>
    %208 = arith.mulf %207, %207 : vector<8x32xf32>
    %cst_142 = arith.constant dense<0.000000e+00> : vector<8xf32>
    %209 = vector.multi_reduction <add>, %208, %cst_142 [1] : vector<8x32xf32> to vector<8xf32>
    %210 = vector.shape_cast %209 : vector<8xf32> to vector<8x1xf32>
    %cst_143 = arith.constant 3.200000e+01 : f32
    %211 = vector.broadcast %cst_143 : f32 to vector<8x1xf32>
    %212 = arith.divf %210, %211 : vector<8x1xf32>
    %213 = vector.broadcast %205 : vector<8x1xf32> to vector<8x32xf32>
    %214 = arith.subf %199, %213 : vector<8x32xf32>
    %cst_144 = arith.constant 9.99999974E-6 : f32
    %215 = vector.broadcast %cst_144 : f32 to vector<8x1xf32>
    %216 = arith.addf %212, %215 : vector<8x1xf32>
    %217 = math.rsqrt %216 : vector<8x1xf32>
    %218 = vector.broadcast %217 : vector<8x1xf32> to vector<8x32xf32>
    %219 = arith.mulf %214, %218 : vector<8x32xf32>
    %220 = vector.broadcast %200 : vector<1x32xf32> to vector<8x32xf32>
    %221 = arith.mulf %219, %220 : vector<8x32xf32>
    %222 = vector.broadcast %201 : vector<1x32xf32> to vector<8x32xf32>
    %223 = arith.addf %221, %222 : vector<8x32xf32>
    %224 = arith.truncf %223 : vector<8x32xf32> to vector<8x32xbf16>
    %c0_145 = arith.constant 0 : index
    %c0_146 = arith.constant 0 : index
    %225 = vector.load %arg12[%c0_145, %c0_146] : memref<32x128xbf16, #tpu.memory_space<vmem>>, vector<32x128xbf16>
    %cst_147 = arith.constant dense<0.000000e+00> : vector<8x128xf32>
    %226 = tpu.matmul %224, %225, %cst_147 {dimension_numbers = #tpu.dot_dimension_numbers<[1], [0], [0], [1], [0, 0, 1, 1], [], []>} : vector<8x32xbf16>, vector<32x128xbf16>, vector<8x128xf32> -> vector<8x128xf32>
    %c0_148 = arith.constant 0 : index
    %c0_149 = arith.constant 0 : index
    %227 = vector.load %arg13[%c0_148, %c0_149] : memref<1x128xf32, #tpu.memory_space<vmem>>, vector<1x128xf32>
    %228 = vector.broadcast %227 : vector<1x128xf32> to vector<8x128xf32>
    %229 = arith.addf %226, %228 : vector<8x128xf32>
    %cst_150 = arith.constant 0.000000e+00 : f32
    %230 = vector.broadcast %cst_150 : f32 to vector<8x128xf32>
    %231 = arith.maximumf %229, %230 : vector<8x128xf32>
    %232 = arith.truncf %231 : vector<8x128xf32> to vector<8x128xbf16>
    %c0_151 = arith.constant 0 : index
    %c0_152 = arith.constant 0 : index
    %233 = vector.load %arg14[%c0_151, %c0_152] : memref<128x32xbf16, #tpu.memory_space<vmem>>, vector<128x32xbf16>
    %cst_153 = arith.constant dense<0.000000e+00> : vector<8x32xf32>
    %234 = tpu.matmul %232, %233, %cst_153 {dimension_numbers = #tpu.dot_dimension_numbers<[1], [0], [0], [1], [0, 0, 1, 1], [], []>} : vector<8x128xbf16>, vector<128x32xbf16>, vector<8x32xf32> -> vector<8x32xf32>
    %c0_154 = arith.constant 0 : index
    %c0_155 = arith.constant 0 : index
    %235 = vector.load %arg15[%c0_154, %c0_155] : memref<1x32xf32, #tpu.memory_space<vmem>>, vector<1x32xf32>
    %236 = vector.broadcast %235 : vector<1x32xf32> to vector<8x32xf32>
    %237 = arith.addf %234, %236 : vector<8x32xf32>
    %238 = arith.addf %223, %237 : vector<8x32xf32>
    %c0_156 = arith.constant 0 : index
    %c0_157 = arith.constant 0 : index
    %239 = vector.load %arg16[%c0_156, %c0_157] : memref<1x32xf32, #tpu.memory_space<vmem>>, vector<1x32xf32>
    %c0_158 = arith.constant 0 : index
    %c0_159 = arith.constant 0 : index
    %240 = vector.load %arg17[%c0_158, %c0_159] : memref<1x32xf32, #tpu.memory_space<vmem>>, vector<1x32xf32>
    %cst_160 = arith.constant dense<0.000000e+00> : vector<8xf32>
    %241 = vector.multi_reduction <add>, %238, %cst_160 [1] : vector<8x32xf32> to vector<8xf32>
    %242 = vector.shape_cast %241 : vector<8xf32> to vector<8x1xf32>
    %cst_161 = arith.constant 3.200000e+01 : f32
    %243 = vector.broadcast %cst_161 : f32 to vector<8x1xf32>
    %244 = arith.divf %242, %243 : vector<8x1xf32>
    %245 = vector.broadcast %244 : vector<8x1xf32> to vector<8x32xf32>
    %246 = arith.subf %238, %245 : vector<8x32xf32>
    %247 = arith.mulf %246, %246 : vector<8x32xf32>
    %cst_162 = arith.constant dense<0.000000e+00> : vector<8xf32>
    %248 = vector.multi_reduction <add>, %247, %cst_162 [1] : vector<8x32xf32> to vector<8xf32>
    %249 = vector.shape_cast %248 : vector<8xf32> to vector<8x1xf32>
    %cst_163 = arith.constant 3.200000e+01 : f32
    %250 = vector.broadcast %cst_163 : f32 to vector<8x1xf32>
    %251 = arith.divf %249, %250 : vector<8x1xf32>
    %252 = vector.broadcast %244 : vector<8x1xf32> to vector<8x32xf32>
    %253 = arith.subf %238, %252 : vector<8x32xf32>
    %cst_164 = arith.constant 9.99999974E-6 : f32
    %254 = vector.broadcast %cst_164 : f32 to vector<8x1xf32>
    %255 = arith.addf %251, %254 : vector<8x1xf32>
    %256 = math.rsqrt %255 : vector<8x1xf32>
    %257 = vector.broadcast %256 : vector<8x1xf32> to vector<8x32xf32>
    %258 = arith.mulf %253, %257 : vector<8x32xf32>
    %259 = vector.broadcast %239 : vector<1x32xf32> to vector<8x32xf32>
    %260 = arith.mulf %258, %259 : vector<8x32xf32>
    %261 = vector.broadcast %240 : vector<1x32xf32> to vector<8x32xf32>
    %262 = arith.addf %260, %261 : vector<8x32xf32>
    %263 = vector.shape_cast %262 : vector<8x32xf32> to vector<1x8x32xf32>
    %c0_165 = arith.constant 0 : index
    %c0_166 = arith.constant 0 : index
    %c0_167 = arith.constant 0 : index
    %264 = vector.load %arg18[%c0_165, %c0_166, %c0_167] : memref<1x8x32xf32, #tpu.memory_space<vmem>>, vector<1x8x32xf32>
    tpu.vector_store %arg18[%c0_165, %c0_166, %c0_167], %263 {strides = array<i32>} : memref<1x8x32xf32, #tpu.memory_space<vmem>>, vector<1x8x32xf32>,
    return
  }
  func.func @transform_0(%arg0: i32) -> (i32, i32, i32) {
    %c0_i32 = arith.constant 0 : i32
    %c0_i32_0 = arith.constant 0 : i32
    %c0_i32_1 = arith.constant 0 : i32
    return %arg0, %c0_i32, %c0_i32_0 : i32, i32, i32
  }
  func.func @transform_1(%arg0: i32) -> (i32, i32, i32) {
    %c0_i32 = arith.constant 0 : i32
    %c0_i32_0 = arith.constant 0 : i32
    %c0_i32_1 = arith.constant 0 : i32
    %c0_i32_2 = arith.constant 0 : i32
    return %c0_i32, %c0_i32_0, %c0_i32_1 : i32, i32, i32
  }
  func.func @transform_2(%arg0: i32) -> (i32, i32, i32) {
    %c0_i32 = arith.constant 0 : i32
    %c0_i32_0 = arith.constant 0 : i32
    %c0_i32_1 = arith.constant 0 : i32
    %c0_i32_2 = arith.constant 0 : i32
    return %c0_i32, %c0_i32_0, %c0_i32_1 : i32, i32, i32
  }
  func.func @transform_3(%arg0: i32) -> (i32, i32, i32) {
    %c0_i32 = arith.constant 0 : i32
    %c0_i32_0 = arith.constant 0 : i32
    %c0_i32_1 = arith.constant 0 : i32
    %c0_i32_2 = arith.constant 0 : i32
    return %c0_i32, %c0_i32_0, %c0_i32_1 : i32, i32, i32
  }
  func.func @transform_4(%arg0: i32) -> (i32, i32, i32) {
    %c0_i32 = arith.constant 0 : i32
    %c0_i32_0 = arith.constant 0 : i32
    %c0_i32_1 = arith.constant 0 : i32
    %c0_i32_2 = arith.constant 0 : i32
    return %c0_i32, %c0_i32_0, %c0_i32_1 : i32, i32, i32
  }
  func.func @transform_5(%arg0: i32) -> (i32, i32, i32) {
    %c0_i32 = arith.constant 0 : i32
    %c0_i32_0 = arith.constant 0 : i32
    %c0_i32_1 = arith.constant 0 : i32
    %c0_i32_2 = arith.constant 0 : i32
    return %c0_i32, %c0_i32_0, %c0_i32_1 : i32, i32, i32
  }
  func.func @transform_6(%arg0: i32) -> (i32, i32, i32) {
    %c0_i32 = arith.constant 0 : i32
    %c0_i32_0 = arith.constant 0 : i32
    %c0_i32_1 = arith.constant 0 : i32
    %c0_i32_2 = arith.constant 0 : i32
    return %c0_i32, %c0_i32_0, %c0_i32_1 : i32, i32, i32
  }
  func.func @transform_7(%arg0: i32) -> (i32, i32, i32) {
    %c0_i32 = arith.constant 0 : i32
    %c0_i32_0 = arith.constant 0 : i32
    %c0_i32_1 = arith.constant 0 : i32
    %c0_i32_2 = arith.constant 0 : i32
    return %c0_i32, %c0_i32_0, %c0_i32_1 : i32, i32, i32
  }
  func.func @transform_8(%arg0: i32) -> (i32, i32) {
    %c0_i32 = arith.constant 0 : i32
    %c0_i32_0 = arith.constant 0 : i32
    %c0_i32_1 = arith.constant 0 : i32
    return %c0_i32, %c0_i32_0 : i32, i32
  }
  func.func @transform_9(%arg0: i32) -> (i32, i32) {
    %c0_i32 = arith.constant 0 : i32
    %c0_i32_0 = arith.constant 0 : i32
    %c0_i32_1 = arith.constant 0 : i32
    return %c0_i32, %c0_i32_0 : i32, i32
  }
  func.func @transform_10(%arg0: i32) -> (i32, i32) {
    %c0_i32 = arith.constant 0 : i32
    %c0_i32_0 = arith.constant 0 : i32
    %c0_i32_1 = arith.constant 0 : i32
    return %c0_i32, %c0_i32_0 : i32, i32
  }
  func.func @transform_11(%arg0: i32) -> (i32, i32) {
    %c0_i32 = arith.constant 0 : i32
    %c0_i32_0 = arith.constant 0 : i32
    %c0_i32_1 = arith.constant 0 : i32
    return %c0_i32, %c0_i32_0 : i32, i32
  }
  func.func @transform_12(%arg0: i32) -> (i32, i32) {
    %c0_i32 = arith.constant 0 : i32
    %c0_i32_0 = arith.constant 0 : i32
    %c0_i32_1 = arith.constant 0 : i32
    return %c0_i32, %c0_i32_0 : i32, i32
  }
  func.func @transform_13(%arg0: i32) -> (i32, i32) {
    %c0_i32 = arith.constant 0 : i32
    %c0_i32_0 = arith.constant 0 : i32
    %c0_i32_1 = arith.constant 0 : i32
    return %c0_i32, %c0_i32_0 : i32, i32
  }
  func.func @transform_14(%arg0: i32) -> (i32, i32) {
    %c0_i32 = arith.constant 0 : i32
    %c0_i32_0 = arith.constant 0 : i32
    %c0_i32_1 = arith.constant 0 : i32
    return %c0_i32, %c0_i32_0 : i32, i32
  }
  func.func @transform_15(%arg0: i32) -> (i32, i32) {
    %c0_i32 = arith.constant 0 : i32
    %c0_i32_0 = arith.constant 0 : i32
    %c0_i32_1 = arith.constant 0 : i32
    return %c0_i32, %c0_i32_0 : i32, i32
  }
  func.func @transform_16(%arg0: i32) -> (i32, i32) {
    %c0_i32 = arith.constant 0 : i32
    %c0_i32_0 = arith.constant 0 : i32
    %c0_i32_1 = arith.constant 0 : i32
    return %c0_i32, %c0_i32_0 : i32, i32
  }
  func.func @transform_17(%arg0: i32) -> (i32, i32, i32) {
    %c0_i32 = arith.constant 0 : i32
    %c0_i32_0 = arith.constant 0 : i32
    %c0_i32_1 = arith.constant 0 : i32
    return %arg0, %c0_i32, %c0_i32_0 : i32, i32, i32
  }
}

</mosaic_0001>

<bundles_post_ra>
// kernel: tpu_custom_call.1
= control target key start
LH: loop header
LB: loop body
LE: loop exit
PB: predicated region body
PF: predicated region fallthrough
CT: control target
= control target key end

     0   :  { %s3818_s0 = inlined_call_operand.hbm [shape: bf16[2,8,32], index: 0, kind: input, shape index: {}]   ;;  %s3819_s1 = inlined_call_operand.vmem [shape: bf16[4,32,32], index: 1, kind: input, shape index: {}]   ;;  %s3820_s2 = inlined_call_operand.hbm [shape: bf16[4,32,32], index: 2, kind: input, shape index: {}]   ;;  %s3821_s3 = inlined_call_operand.hbm [shape: bf16[4,32,32], index: 3, kind: input, shape index: {}]   ;;  %s3822_s4 = inlined_call_operand.hbm [shape: bf16[4,32,32], index: 4, kind: input, shape index: {}]   ;;  %s3823_s5 = inlined_call_operand.vmem [shape: f32[4,1,32], index: 5, kind: input, shape index: {}]   ;;  %s3824_s6 = inlined_call_operand.vmem [shape: f32[4,1,32], index: 6, kind: input, shape index: {}]   ;;  %s3825_s7 = inlined_call_operand.vmem [shape: f32[4,1,32], index: 7, kind: input, shape index: {}]   ;;  %s3826_s8 = inlined_call_operand.vmem [shape: f32[1,32], index: 8, kind: input, shape index: {}]   ;;  %s3827_s9 = inlined_call_operand.vmem [shape: f32[1,32], index: 9, kind: input, shape index: {}]   ;;  %s3828_s10 = inlined_call_operand.vmem [shape: f32[1,32], index: 10, kind: input, shape index: {}]   ;;  %s3829_s11 = inlined_call_operand.vmem [shape: bf16[32,128], index: 11, kind: input, shape index: {}]   ;;  %s3830_s12 = inlined_call_operand.vmem [shape: f32[1,128], index: 12, kind: input, shape index: {}]   ;;  %s3831_s13 = inlined_call_operand.vmem [shape: bf16[128,32], index: 13, kind: input, shape index: {}]   ;;  %s3832_s14 = inlined_call_operand.vmem [shape: f32[1,32], index: 14, kind: input, shape index: {}]   ;;  %s3833_s15 = inlined_call_operand.vmem [shape: f32[1,32], index: 15, kind: input, shape index: {}]   ;;  %s3834_s16 = inlined_call_operand.vmem [shape: f32[1,32], index: 16, kind: input, shape index: {}]   ;;  %s3835_s17 = inlined_call_operand.hbm [shape: f32[2,8,32], index: 17, kind: output, shape index: {}]  }
   0x1   :  { %3844 = sst [smem:[#allocation18_spill]] %s3818_s0 }
   0x2   :  { %3845 = sst [smem:[#allocation19_spill]] %s3819_s1 }
   0x3   :  { %3846 = sst [smem:[#allocation20_spill]] %s3820_s2 }
   0x4   :  { %3847 = sst [smem:[#allocation21_spill]] %s3821_s3 }
   0x5   :  { %3848 = sst [smem:[#allocation22_spill]] %s3827_s9 }
   0x6   :  { %3849 = sst [smem:[#allocation23_spill]] %s3828_s10 }
   0x7   :  { %3850 = sst [smem:[#allocation24_spill]] %s3830_s12 }
   0x8   :  { %3851 = sst [smem:[#allocation25_spill]] %s3832_s14 }
   0x9   :  { %3852 = sst [smem:[#allocation26_spill]] %s3833_s15 }
   0xa   :  { %3853 = sst [smem:[#allocation27_spill]] %s3834_s16 }
   0xb   :  { %3854 = sst [smem:[#allocation28_spill]] %s3835_s17 }
   0xc   :  { %22 = vsyncpa [#allocation4], 0 }
   0xd   :  { %24 = vsyncpa [#allocation4 + $0x1], 0 }
   0xe   :  { %25 = vsyncpa [#allocation7], 0 }
   0xf   :  { %26 = vsyncpa [#allocation10], 0 }
  0x10   :  { %27 = vsyncpa [#allocation5], 0 }
  0x11   :  { %29 = vsyncpa [#allocation5 + $0x1], 0  ;;  %s3275_s24 = smov 0   ;;  %s3277_s25 = smov 0  }
  0x12   :  { %s3279_s26 = smov 0   ;;  %s3281_s27 = smov 0  }
  0x13 LB: > { %3855 = sst [smem:[#allocation16_spill]] %s3162_s24  ;;  %s3296_s28 = sadd.s32 4294967295, %s3174_s27   ;;  %s3174_s27 = sphi %s3281_s27, %s3889_s27   ;;  %s3170_s26 = sphi %s3279_s26, %s3888_s26   ;;  %s3166_s25 = sphi %s3277_s25, %s3887_s25   ;;  %s3162_s24 = sphi %s3275_s24, %s3886_s24  }
  0x14   : > { %s2438_s29 = sadd.s32 4294967294, %s3174_s27   ;;  %p55_p0 = scmp.ne.s32.totalorder %s3166_s25, %s3162_s24 }
  0x15   : > { %p3841_p1 = scmp.eq.s32.totalorder %s3296_s28, 0  ;;  %p421_p3 = scmp.eq.s32.totalorder %s2438_s29, 1 }
  0x16   : > { %p2439_p5 = scmp.ge.s32.totalorder %s3174_s27, 1  ;;  %p428_p7 = scmp.lt.s32.totalorder %s3174_s27, 3 }
  0x17   : > { %p3305_p4 = por %p3841_p1, %p55_p0  ;;  %p3310_p6 = por %p421_p3, %p55_p0 }
  0x18   : > { %p3315_p8 = pnand %p2439_p5, %p428_p7  ;;  %s3176_s19 = smov [#allocation6]  }
  0x19   : > { %s3856_s0 = scalar_select %p3305_p4, 1, 0 }
  0x1a   : > { %s3857_s30 = scalar_select %p3310_p6, 1, 0 }
  0x1b   : > { %s3859_s18 = scalar_select %p3315_p8, 1, 0 }
  0x1c   : > { %3858 = sst [smem:[#allocation17_spill]] %s3857_s30  ;;  %s443_s1 = sshll.u32 %s3176_s19, 4  ;;  %s3319_s1 = int_to_ptr.vmem [resolvable:$true] %s443_s1 }
  0x1d   : > { %p2859_p9 = pneg %p3315_p8  ;;  %s3177_s21 = smov [#allocation8]  }
  0x1e   : > { %s456_s22 = sshll.u32 %s3177_s21, 4  ;;  %s3178_s23 = smov [#allocation9]   ;;  %s3330_s22 = int_to_ptr.vmem [resolvable:$true] %s456_s22 }
  0x1f   : > { %p3326_p11 = pnand %p2859_p9, %p3841_p1  ;;  %s3332_s29 = sshll.u32 %s3178_s23, 4  ;;  %s470_s29 = int_to_ptr.vmem [resolvable:$true] %s3332_s29 }
  0x20   : > { %s3861_s2 = sld [smem:[#allocation20_spill]] }
  0x21   : > { %p3342_p13 = pneg %p3326_p11 }
  0x26   : > { %s2986_s24 = scalar_lea.hbm %s3861_s2, 1024 }
  0x27   : > { %p2987_p12 = scmp.ne.s32.totalorder %s3861_s2, %s2986_s24  ;;  %p2993_p5 = scmp.lt.u32.totalorder %s2986_s24, %s3861_s2 }
  0x29   : > { %p2989_p0 = pnand %p3342_p13, %p2987_p12 }
  0x2b   : > { %p2990_p3 = pneg %p2989_p0 }
  0x2d   : > { %p2995_p7 = pnand %p2993_p5, %p2990_p3 }
  0x2f   : > { %2998 = shalt.err (!%p2995_p7)
}
  0x30   : > { %s2999_s16 = scalar_lea.vmem %s3319_s1, 1024  ;;  %p3007_p2 = scmp.lt.s32.totalorder %s3319_s1, %s3319_s1 }
  0x31   : > { %p3000_p9 = scmp.ne.s32.totalorder %s3319_s1, %s2999_s16  ;;  %p3008_p6 = scmp.lt.s32.totalorder %s2999_s16, %s2999_s16 }
  0x33   : > { %p3002_p10 = pnand %p3000_p9, %p3342_p13  ;;  %p3009_p12 = por %p3008_p6, %p3007_p2 }
  0x35   : > { %p3003_p1 = pneg %p3002_p10 }
  0x37   : > { %p3010_p0 = pnand %p3009_p12, %p3003_p1 }
  0x39   : > { %3013 = shalt.err (!%p3010_p0)
}
  0x3a   : > { %s3179_s17 = smov 64   ;;  %s3180_s24 = smov 4  }
  0x3b   : > { %2862 = dma.hbm_to_vmem [thread:$0]  (!%p3326_p11), %s3861_s2, 1024, %s3319_s1, [#allocation7], %s3179_s17, %s3179_s17, %s3180_s24  }
  0x3c   : > { %s3863_s3 = sld [smem:[#allocation21_spill]] }
  0x42   : > { %s3014_s16 = scalar_lea.hbm %s3863_s3, 1024 }
  0x43   : > { %p3015_p1 = scmp.ne.s32.totalorder %s3863_s3, %s3014_s16  ;;  %p3021_p10 = scmp.lt.u32.totalorder %s3014_s16, %s3863_s3 }
  0x45   : > { %p3017_p2 = pnand %p3015_p1, %p3342_p13 }
  0x47   : > { %p3018_p6 = pneg %p3017_p2 }
  0x49   : > { %p3023_p3 = pnand %p3021_p10, %p3018_p6 }
  0x4b   : > { %3026 = shalt.err (!%p3023_p3)
}
  0x4c   : > { %s3027_s1 = scalar_lea.vmem %s3330_s22, 1024  ;;  %p3035_p12 = scmp.lt.s32.totalorder %s3330_s22, %s3330_s22 }
  0x4d   : > { %p3028_p5 = scmp.ne.s32.totalorder %s3330_s22, %s3027_s1  ;;  %p3036_p0 = scmp.lt.s32.totalorder %s3027_s1, %s3027_s1 }
  0x4f   : > { %p3030_p7 = pnand %p3028_p5, %p3342_p13  ;;  %p3037_p1 = por %p3036_p0, %p3035_p12 }
  0x51   : > { %p3031_p9 = pneg %p3030_p7 }
  0x53   : > { %p3038_p2 = pnand %p3037_p1, %p3031_p9 }
  0x55   : > { %3041 = shalt.err (!%p3038_p2)
}
  0x56   : > { %2865 = dma.hbm_to_vmem [thread:$0]  (!%p3326_p11), %s3863_s3, 1024, %s3330_s22, [#allocation7], %s3179_s17, %s3179_s17, %s3180_s24  }
  0x57   : > { %s3042_s30 = scalar_lea.hbm %s3822_s4, 1024 }
  0x58   : > { %p3043_p6 = scmp.ne.s32.totalorder %s3822_s4, %s3042_s30  ;;  %p3049_p5 = scmp.lt.u32.totalorder %s3042_s30, %s3822_s4 }
  0x5a   : > { %p3045_p10 = pnand %p3043_p6, %p3342_p13 }
  0x5c   : > { %p3046_p3 = pneg %p3045_p10 }
  0x5e   : > { %p3051_p7 = pnand %p3049_p5, %p3046_p3 }
  0x60   : > { %3054 = shalt.err (!%p3051_p7)
}
  0x61   : > { %s3055_s1 = scalar_lea.vmem %s470_s29, 1024  ;;  %p3063_p1 = scmp.lt.s32.totalorder %s470_s29, %s470_s29 }
  0x62   : > { %p3056_p9 = scmp.ne.s32.totalorder %s470_s29, %s3055_s1  ;;  %p3064_p2 = scmp.lt.s32.totalorder %s3055_s1, %s3055_s1 }
  0x64   : > { %p3058_p12 = pnand %p3056_p9, %p3342_p13  ;;  %p3065_p4 = por %p3064_p2, %p3063_p1 }
  0x66   : > { %p3059_p0 = pneg %p3058_p12 }
  0x68   : > { %p3066_p8 = pnand %p3065_p4, %p3059_p0 }
  0x6a   : > { %3069 = shalt.err (!%p3066_p8)
}
  0x6b   : > { %2868 = dma.hbm_to_vmem [thread:$0]  (!%p3326_p11), %s3822_s4, 1024, %s470_s29, [#allocation10], %s3179_s17, %s3179_s17, %s3180_s24  }
  0x6c   : > { %s3415_s15 = sadd.s32 1, %s3174_s27   ;;  %s42_s10 = sadd.s32 1, %s3170_s26 }
  0x6d   : > { %s39_s20 = ssub.s32 %s3174_s27, %s3415_s15  ;;  %p49_p8 = scmp.ne.s32.totalorder %s3170_s26, %s3166_s25 }
  0x6e   : > { %p40_p4 = scmp.eq.s32.totalorder %s39_s20, 0  ;;  %p50_p13 = scmp.eq.s32.totalorder %s3174_s27, 0 }
  0x6f   : > { %p2880_p6 = scmp.lt.s32.totalorder %s3174_s27, 2  ;;  %p3864_p3 = scmp.eq.s32.totalorder %s3296_s28, 1 }
  0x70   : > { %s3425_s12 = scalar_select %p40_p4, %s3170_s26, %s42_s10  }
  0x71   : > { %p51_p10 = por %p50_p13, %p49_p8  ;;  %p3429_p5 = por %p3864_p3, %p49_p8 }
  0x72   : > { %s519_s30 = sand.u32 1, %s3170_s26   ;;  %s2445_s19 = sshll.u32 %s3174_s27, 6 }
  0x73   : > { %s2444_s29 = sshll.u32 %s519_s30, 2  ;;  %s3866_s21 = sld [smem:[#allocation18_spill]] }
  0x74   : > { %s523_s16 = scalar_lea.vmem [#allocation3], %s2444_s29  ;;  %p3440_p11 = pnand %p2880_p6, %p51_p10 }
  0x75   : > { %s530_s1 = sshll.u32 %s523_s16, 4  ;;  %s520_s9 = scalar_lea.sflag [#allocation4], %s519_s30  ;;  %s3444_s1 = int_to_ptr.vmem [resolvable:$true] %s530_s1 }
  0x76   : > { %p3072_p9 = pneg %p3440_p11 }
  0x79   : > { %s3438_s23 = scalar_lea.hbm %s3866_s21, %s2445_s19  ;;  %s3075_s29 = scalar_lea.hbm %s3866_s21, 128 }
  0x7a   : > { %s3070_s20 = scalar_lea.hbm %s3438_s23, 64  ;;  %p3076_p1 = scmp.lt.u32.totalorder %s3438_s23, %s3866_s21 }
  0x7b   : > { %p3071_p7 = scmp.ne.s32.totalorder %s3438_s23, %s3070_s20  ;;  %p3077_p2 = scmp.lt.u32.totalorder %s3075_s29, %s3070_s20 }
  0x7c   : > { %p3079_p8 = scmp.lt.u32.totalorder %s3070_s20, %s3438_s23 }
  0x7d   : > { %p3073_p12 = pnand %p3072_p9, %p3071_p7  ;;  %p3078_p4 = por %p3077_p2, %p3076_p1 }
  0x7f   : > { %p3074_p0 = pneg %p3073_p12  ;;  %p3080_p13 = por %p3079_p8, %p3078_p4 }
  0x81   : > { %p3081_p6 = pnand %p3080_p13, %p3074_p0 }
  0x83   : > { %3084 = shalt.err (!%p3081_p6)
}
  0x84   : > { %s3085_s30 = scalar_lea.vmem %s3444_s1, 64  ;;  %s3181_s16 = smov [#allocation3]  }
  0x85   : > { %p3086_p10 = scmp.ne.s32.totalorder %s3444_s1, %s3085_s30  ;;  %s3090_s10 = sshll.u32 %s3181_s16, 4  ;;  %s3091_s10 = int_to_ptr.vmem [resolvable:$false] %s3090_s10 }
  0x86   : > { %s3092_s19 = scalar_lea.vmem %s3091_s10, 128  ;;  %p3093_p12 = scmp.lt.s32.totalorder %s3444_s1, %s3091_s10 }
  0x87   : > { %p3088_p3 = pnand %p3086_p10, %p3072_p9  ;;  %p3094_p1 = scmp.lt.s32.totalorder %s3092_s19, %s3085_s30 }
  0x89   : > { %p3089_p7 = pneg %p3088_p3  ;;  %p3095_p2 = por %p3094_p1, %p3093_p12 }
  0x8b   : > { %p3096_p4 = pnand %p3095_p2, %p3089_p7 }
  0x8d   : > { %3099 = shalt.err (!%p3096_p4)
}
  0x8e   : > { %2872 = dma.hbm_to_vmem [thread:$0]  (!%p3440_p11), %s3438_s23, 64, %s3444_s1, %s520_s9  }
  0x8f   : > { %p3868_p0 = scmp.ne.s32.totalorder %s3859_s18, 0 }
  0x90   : > { %s3474_s20 = sand.u32 (!%p3868_p0), 1, %s3166_s25   ;;  %p3869_p9 = scmp.ne.s32.totalorder (!%p3868_p0), %s3856_s0, 0 }
  0x91   : > { %539 = sbr.rel (%p3868_p0) target bundleno = 5367 (0x14f7), region = 88  ;;  %s2447_s29 = sshll.u32 (!%p3868_p0), %s3474_s20, 2 }
  0x92   : > { %s542_s17 = scalar_lea.sflag (!%p3868_p0), [#allocation4], %s3474_s20  ;;  %s545_s24 = scalar_lea.vmem (!%p3868_p0), [#allocation3], %s2447_s29 }
  0x98   : > { %3145 = dma.done.wait (%p3869_p9), %s542_s17, 64  }
  0x99   : > { %3147 = vsyncadd (%p3869_p9), %s542_s17, 4294967232  ;;  %p3870_p8 = scmp.eq.s32.totalorder %s3296_s28, 0 }
  0x9b   : > { %3149 = dma.done.wait (%p3870_p8), [#allocation7], 2048   ;;  %p3871_p11 = pmov %p3870_p8 }
  0x9c   : > { %p3872_p13 = pmov %p3870_p8 }
  0x9d   : > { %3151 = vsyncadd (%p3871_p11), [#allocation7], 4294965248 }
  0x9e   : > { %3153 = dma.done.wait (%p3872_p13), [#allocation10], 1024   ;;  %p3873_p6 = pmov %p3870_p8 }
  0x9f   : > { %v3182_v0 = vmov 0.0   ;;  %vm3183_vm0 = vmmov 0   ;;  %s3874_s23 = sld [smem:[#allocation19_spill]]  ;;  %v3503_v3 = vld [vmem:[%s545_s24] sm:$0xf]  ;;  %vm619_vm1 = vcmask 261120  }
  0xa0   : > { %3155 = vsyncadd (%p3873_p6), [#allocation10], 4294966272  ;;  %2639 = vmatprep.subr.bf16.mxu0 %v3182_v0  ;;  %2643 = vmatprep.mubr.msk.bf16.mxu0 %vm3183_vm0, %v3182_v0  ;;  %v2926_v4 = vld [vmem:[#allocation6] sm:$0xff]   ;;  %v2927_v5 = vld [vmem:[#allocation6 + $0x8] sm:$0xff]   ;;  %vm862_vm2 = vcmask 64512   ;;  %vm878_vm3 = vcmask 1043456   ;;  %v610_v49 = vunpack.c.l.bf16 %v3503_v3 }
  0xa1   : > { %2663 = vmatprep.subr.bf16.mxu1 %v3182_v0  ;;  %2665 = vmatprep.mubr.msk.bf16.mxu1 %vm3183_vm0, %v3182_v0  ;;  %v2457_v10 = vld [vmem:[%s3824_s6] ss:$0 sm:$0xff]  ;;  %v2928_v21 = vld [vmem:[#allocation8] sm:$0xff]   ;;  %v2929_v22 = vld [vmem:[#allocation8 + $0x8] sm:$0xff]   ;;  %s3875_s0 = sld [smem:[#allocation22_spill]]  ;;  %s3876_s22 = sld [smem:[#allocation23_spill]] }
  0xa2   : > { %v2453_v17 = vld [vmem:[%s3823_s5] ss:$0 sm:$0xff]  ;;  %v2930_v41 = vld [vmem:[#allocation9] sm:$0xff]   ;;  %v2931_v46 = vld [vmem:[#allocation9 + $0x8] sm:$0xff]   ;;  %s3877_s17 = sld [smem:[#allocation24_spill]]  ;;  %s3878_s18 = sld [smem:[#allocation25_spill]] }
  0xa3   : > { %v2461_v36 = vld [vmem:[%s3825_s7] ss:$0 sm:$0xff]  ;;  %v2933_v58 = vld [vmem:[#allocation6 + $0x18] sm:$0xff]   ;;  %s2451_s1 = sshll.u32 %s3474_s20, 3  ;;  %s3879_s30 = sld [smem:[#allocation26_spill]] }
  0xa4   : > { %v2452_v50 = vld [vmem:[%s3826_s8] ss:$0 sm:$0xff]  ;;  %s3880_s19 = sld [smem:[#allocation27_spill]]  ;;  %s2560_s29 = sshll.u32 %s3296_s28, 7 }
  0xa5   : > { %v2924_v1 = vld [vmem:[%s3874_s23] sm:$0xff]   ;;  %v2925_v2 = vld [vmem:[%s3874_s23 + $0x8] sm:$0xff]   ;;  %v2934_v47 = vld [vmem:[%s3874_s23 + $0x10] sm:$0xff]   ;;  %v618_v51 = vadd.f32 %v2452_v50, %v610_v49  ;;  %s3881_s2 = sld [smem:[#allocation28_spill]]  ;;  %s3184_s28 = smov [#allocation11]  }
  0xa6   : > { %2640 = vmatpush3.bf16.msra.mxu0 %v2924_v1  ;;  %v2935_v48 = vld [vmem:[%s3874_s23 + $0x18] sm:$0xff]   ;;  %v2932_v53 = vld [vmem:[#allocation6 + $0x10] sm:$0xff]  }
  0xa7   : > { %2641 = vmatprep.subr.bf16.mxu0 %v3182_v0  ;;  %620 = vst.msk [vmem:[#allocation2] sm:$0xff] %vm619_vm1, %v618_v51 }
  0xaa   : > { %2642 = vmatpush3.bf16.msra.mxu0 %v2925_v2 }
  0xab   : > { %2647 = vmatprep.subr.bf16.mxu0 %v3182_v0  ;;  %s3773_s3 = scalar_lea.hbm %s3881_s2, %s2560_s29 }
  0xad   : > { %2644 = vmatmul.mubr.msk.bf16.vlgmr.msra.gmra.mrb[0].mxu0 %vm619_vm1, %v3503_v3 }
  0xae   : > { %2648 = vmatpush3.bf16.msra.mxu0 %v2926_v4  ;;  %2651 = vmatprep.mubr.msk.bf16.mxu0 %vm3183_vm0, %v3182_v0  ;;  %v922_v63 = vld [vmem:[#allocation2] sm:$0xff] }
  0xaf   : > { %2649 = vmatprep.subr.bf16.mxu0 %v3182_v0 }
  0xb2   : > { %2650 = vmatpush3.bf16.msra.mxu0 %v2927_v5 }
  0xb3   : > { %2655 = vmatprep.subr.bf16.mxu0 %v3182_v0 }
  0xb5   : > { %2652 = vmatmul.mubr.msk.bf16.vlgmr.msra.gmra.mrb[4].mxu0 %vm619_vm1, %v3503_v3 }
  0xb6   : > { %2659 = vmatprep.mubr.msk.bf16.mxu0 %vm3183_vm0, %v3182_v0  ;;  %2656 = vmatpush3.bf16.msra.mxu0 %v2928_v21 }
  0xb7   : > { %2657 = vmatprep.subr.bf16.mxu0 %v3182_v0 }
  0xba   : > { %2658 = vmatpush3.bf16.msra.mxu0 %v2929_v22 }
  0xbb   : > { %2669 = vmatprep.subr.bf16.mxu0 %v3182_v0 }
  0xbd   : > { %2660 = vmatmul.mubr.msk.bf16.vlgmr.msra.gmra.mrb[8].mxu0 %vm619_vm1, %v3503_v3 }
  0xbe   : > { %2671 = vmatprep.mubr.msk.bf16.mxu0 %vm3183_vm0, %v3182_v0 }
 0x180   : > { %v681_v6 = vpop.f32.mrb[0].mxu0 }
 0x181   : > { %v2645_v7 = vpop.f32.mrb[1].mxu0  ;;  %v682_v19 = vadd.f32 %v2453_v17, %v681_v6 }
 0x182   : > { %v684_v8 = vpop.f32.mrb[2].mxu0  ;;  %v2480_v7 = vld [vmem:[%s3824_s6 + $0x1] ss:$0 sm:$0xff] }
 0x183   : > { %v2646_v9 = vpop.f32.mrb[3].mxu0  ;;  %v813_v20 = vpack.c.bf16 %v682_v19, %v682_v19  ;;  %v2937_v19 = vld [vmem:[#allocation8 + $0x18] sm:$0xff]  }
 0x188   : > { %v744_v11 = vpop.f32.mrb[4].mxu0 }
 0x189   : > { %v745_v12 = vadd.f32 %v2457_v10, %v744_v11  ;;  %v2653_v13 = vpop.f32.mrb[5].mxu0 }
 0x18a   : > { %v747_v14 = vpop.f32.mrb[6].mxu0 }
 0x18b   : > { %v814_v15 = vpack.c.bf16 %v745_v12, %v745_v12  ;;  %v2654_v16 = vpop.f32.mrb[7].mxu0  ;;  %v2475_v12 = vld [vmem:[%s3823_s5 + $0x1] ss:$0 sm:$0xff] }
 0x18d   : > { %v820_v18 = vsel %vm619_vm1, %v814_v15, 0 }
 0x18e   : > { %2664 = vmatpush3.bf16.xpose.msra.mxu1 %v820_v18  ;;  %v2936_v18 = vld [vmem:[#allocation8 + $0x10] sm:$0xff]  }
 0x18f   : > { %2675 = vmatprep.subr.bf16.mxu1 %v3182_v0 }
 0x190   : > { %v807_v33 = vpop.f32.mrb[8].mxu0 }
 0x191   : > { %v2661_v34 = vpop.f32.mrb[9].mxu0  ;;  %v808_v38 = vadd.f32 %v2461_v36, %v807_v33  ;;  %v2485_v33 = vld [vmem:[%s3825_s7 + $0x1] ss:$0 sm:$0xff] }
 0x192   : > { %v810_v35 = vpop.f32.mrb[10].mxu0 }
 0x193   : > { %v2662_v37 = vpop.f32.mrb[11].mxu0  ;;  %v815_v39 = vpack.c.bf16 %v808_v38, %v808_v38  ;;  %v2938_v38 = vld [vmem:[#allocation9 + $0x10] sm:$0xff]  }
 0x195   : > { %2666 = vmatmul.mubr.msk.bf16.vlgmr.msra.gmra.mrb[0].mxu1 %vm619_vm1, %v813_v20  ;;  %v880_v40 = vsel %vm878_vm3, %v815_v39, 0 }
 0x196   : > { %2679 = vmatprep.mubr.msk.bf16.mxu1 %vm3183_vm0, %v3182_v0  ;;  %2670 = vmatpush3.bf16.msra.mxu0 %v880_v40 }
 0x197   : > { %2683 = vmatprep.subr.bf16.mxu0 %v3182_v0  ;;  %2676 = vmatpush3.bf16.msra.mxu1 %v2930_v41 }
 0x198   : > { %2677 = vmatprep.subr.bf16.mxu1 %v3182_v0 }
 0x19b   : > { %2678 = vmatpush3.bf16.msra.mxu1 %v2931_v46 }
 0x19c   : > { %2691 = vmatprep.subr.bf16.mxu1 %v3182_v0 }
 0x268   : > { %v856_v23 = vpop.f32.mrb[0].mxu1 }
 0x269   : > { %v2667_v24 = vpop.f32.mrb[1].mxu1  ;;  %v863_v25 = vsel %vm862_vm2, %v856_v23, -inf }
 0x26a   : > { %864 = vmax.xlane.f32.xlu0 %v863_v25  ;;  %v859_v26 = vpop.f32.mrb[2].mxu1 }
 0x26b   : > { %v2668_v27 = vpop.f32.mrb[3].mxu1 }
 0x2f7   : > { %v865_v28 = vpop.xlane.xlu0 %864 }
 0x2f8   : > { %v866_v29 = vsub.f32 %v856_v23, %v865_v28 }
 0x2fa   : > { %v867_v30 = vmul.f32 1.442695, %v866_v29 }
 0x2fc   : > { %2966 = vpow2.f32 %v867_v30 }
 0x306   : > { %v2967_v31 = vpop.eup %2966 }
 0x307   : > { %v869_v32 = vsel %vm862_vm2, %v2967_v31, 0.0 }
 0x308   : > { %870 = vadd.xlane.f32.xlu0 %v869_v32 }
 0x395   : > { %v871_v42 = vpop.xlane.xlu0 %870 }
 0x396   : > { %2968 = vrcp.f32 %v871_v42 }
 0x3a0   : > { %v2969_v43 = vpop.eup %2968 }
 0x3a1   : > { %v873_v44 = vmul.f32 %v2969_v43, %v2967_v31  ;;  %v2939_v43 = vld [vmem:[#allocation9 + $0x18] sm:$0xff]  }
 0x3a3   : > { %v874_v45 = vpack.c.bf16 %v873_v44, %v873_v44  ;;  %v2942_v44 = vld [vmem:[%s3874_s23 + $0x20] sm:$0xff]  }
 0x3a5   : > { %2672 = vmatmul.mubr.msk.bf16.vlgmr.msra.gmra.mrb[12].mxu0 %vm862_vm2, %v874_v45  ;;  %v2943_v45 = vld [vmem:[%s3874_s23 + $0x28] sm:$0xff]  }
 0x3a6   : > { %2687 = vmatprep.mubr.msk.bf16.mxu0 %vm3183_vm0, %v3182_v0  ;;  %2684 = vmatpush3.bf16.msra.mxu0 %v2934_v47  ;;  %v2940_v47 = vld [vmem:[#allocation6 + $0x20] sm:$0xff]  }
 0x3a7   : > { %2685 = vmatprep.subr.bf16.mxu0 %v3182_v0 }
 0x3aa   : > { %2686 = vmatpush3.bf16.msra.mxu0 %v2935_v48 }
 0x3ab   : > { %2699 = vmatprep.subr.bf16.mxu0 %v3182_v0 }
 0x3ad   : > { %2688 = vmatmul.mubr.msk.bf16.vlgmr.msra.gmra.mrb[16].mxu0 %vm619_vm1, %v3503_v3 }
 0x3ae   : > { %2703 = vmatprep.mubr.msk.bf16.mxu0 %vm3183_vm0, %v3182_v0  ;;  %2700 = vmatpush3.bf16.msra.mxu0 %v2936_v18 }
 0x3af   : > { %2701 = vmatprep.subr.bf16.mxu0 %v3182_v0 }
 0x3b2   : > { %2702 = vmatpush3.bf16.msra.mxu0 %v2937_v19 }
 0x3b3   : > { %2713 = vmatprep.subr.bf16.mxu0 %v3182_v0 }
 0x3b5   : > { %2704 = vmatmul.mubr.msk.bf16.vlgmr.msra.gmra.mrb[20].mxu0 %vm619_vm1, %v3503_v3 }
 0x3b6   : > { %2715 = vmatprep.mubr.msk.bf16.mxu0 %vm3183_vm0, %v3182_v0 }
 0x478   : > { %v916_v52 = vpop.f32.mrb[12].mxu0 }
 0x479   : > { %v923_v54 = vpack.c.bf16 %v916_v52, %v916_v52  ;;  %v2673_v55 = vpop.f32.mrb[13].mxu0  ;;  %v2941_v52 = vld [vmem:[#allocation6 + $0x28] sm:$0xff]  }
 0x47a   : > { %v919_v56 = vpop.f32.mrb[14].mxu0 }
 0x47b   : > { %v2674_v57 = vpop.f32.mrb[15].mxu0  ;;  %2680 = vmatmul.mubr.msk.bf16.vlgmr.msra.gmra.mrb[4].mxu1 %vm619_vm1, %v923_v54 }
 0x47c   : > { %2692 = vmatpush3.bf16.msra.mxu1 %v2932_v53  ;;  %2695 = vmatprep.mubr.msk.bf16.mxu1 %vm3183_vm0, %v3182_v0 }
 0x47d   : > { %2693 = vmatprep.subr.bf16.mxu1 %v3182_v0 }
 0x480   : > { %2694 = vmatpush3.bf16.msra.mxu1 %v2933_v58  ;;  %v1044_v59 = vpop.f32.mrb[16].mxu0 }
 0x481   : > { %2707 = vmatprep.subr.bf16.mxu1 %v3182_v0  ;;  %v2689_v60 = vpop.f32.mrb[17].mxu0  ;;  %v1045_v16 = vadd.f32 %v2475_v12, %v1044_v59  ;;  %v2944_v12 = vld [vmem:[#allocation8 + $0x20] sm:$0xff]  }
 0x482   : > { %v1047_v61 = vpop.f32.mrb[18].mxu0 }
 0x483   : > { %2696 = vmatmul.mubr.msk.bf16.vlgmr.msra.gmra.mrb[8].mxu1 %vm619_vm1, %v3503_v3  ;;  %v2690_v62 = vpop.f32.mrb[19].mxu0  ;;  %v1180_v17 = vpack.c.bf16 %v1045_v16, %v1045_v16 }
 0x484   : > { %2709 = vmatprep.mubr.msk.bf16.mxu1 %vm3183_vm0, %v3182_v0 }
 0x488   : > { %v1174_v30 = vpop.f32.mrb[20].mxu0 }
 0x489   : > { %v2705_v31 = vpop.f32.mrb[21].mxu0  ;;  %v1175_v35 = vadd.f32 %v2485_v33, %v1174_v30 }
 0x48a   : > { %v1177_v32 = vpop.f32.mrb[22].mxu0 }
 0x48b   : > { %v2706_v34 = vpop.f32.mrb[23].mxu0  ;;  %v1182_v36 = vpack.c.bf16 %v1175_v35, %v1175_v35  ;;  %v2946_v32 = vld [vmem:[#allocation9 + $0x20] sm:$0xff]  }
 0x48d   : > { %v1245_v37 = vsel %vm878_vm3, %v1182_v36, 0 }
 0x48e   : > { %2714 = vmatpush3.bf16.msra.mxu0 %v1245_v37  ;;  %v2947_v37 = vld [vmem:[#allocation9 + $0x28] sm:$0xff]  }
 0x48f   : > { %2727 = vmatprep.subr.bf16.mxu0 %v3182_v0 }
 0x54e   : > { %v977_v1 = vpop.f32.mrb[4].mxu1 }
 0x54f   : > { %v983_v2 = vadd.f32 %v977_v1, %v922_v63  ;;  %v2681_v4 = vpop.f32.mrb[5].mxu1  ;;  %v2504_v63 = vld [vmem:[%s3824_s6 + $0x2] ss:$0 sm:$0xff] }
 0x550   : > { %v980_v5 = vpop.f32.mrb[6].mxu1 }
 0x551   : > { %984 = vst.msk [vmem:[#allocation2] sm:$0xff] %vm619_vm1, %v983_v2  ;;  %v2682_v6 = vpop.f32.mrb[7].mxu1 }
 0x552   : > { %v2499_v6 = vld [vmem:[%s3823_s5 + $0x2] ss:$0 sm:$0xff] }
 0x556   : > { %v1109_v8 = vpop.f32.mrb[8].mxu1 }
 0x557   : > { %v1110_v9 = vadd.f32 %v2480_v7, %v1109_v8  ;;  %v2697_v10 = vpop.f32.mrb[9].mxu1 }
 0x558   : > { %v1112_v11 = vpop.f32.mrb[10].mxu1  ;;  %v1287_v57 = vld [vmem:[#allocation2] sm:$0xff] }
 0x559   : > { %v1181_v13 = vpack.c.bf16 %v1110_v9, %v1110_v9  ;;  %v2698_v14 = vpop.f32.mrb[11].mxu1 }
 0x55b   : > { %v1187_v15 = vsel %vm619_vm1, %v1181_v13, 0  ;;  %v2945_v13 = vld [vmem:[#allocation8 + $0x28] sm:$0xff]  }
 0x55c   : > { %2708 = vmatpush3.bf16.xpose.msra.mxu1 %v1187_v15 }
 0x55d   : > { %2719 = vmatprep.subr.bf16.mxu1 %v3182_v0 }
 0x563   : > { %2710 = vmatmul.mubr.msk.bf16.vlgmr.msra.gmra.mrb[12].mxu1 %vm619_vm1, %v1180_v17 }
 0x564   : > { %2723 = vmatprep.mubr.msk.bf16.mxu1 %vm3183_vm0, %v3182_v0  ;;  %2720 = vmatpush3.bf16.msra.mxu1 %v2938_v38  ;;  %v2950_v38 = vld [vmem:[%s3874_s23 + $0x30] sm:$0xff]  }
 0x565   : > { %2721 = vmatprep.subr.bf16.mxu1 %v3182_v0 }
 0x568   : > { %2722 = vmatpush3.bf16.msra.mxu1 %v2939_v43 }
 0x569   : > { %2735 = vmatprep.subr.bf16.mxu1 %v3182_v0 }
 0x636   : > { %v1223_v20 = vpop.f32.mrb[12].mxu1 }
 0x637   : > { %v2711_v21 = vpop.f32.mrb[13].mxu1  ;;  %v1229_v22 = vsel %vm862_vm2, %v1223_v20, -inf }
 0x638   : > { %1230 = vmax.xlane.f32.xlu1 %v1229_v22  ;;  %v1226_v23 = vpop.f32.mrb[14].mxu1 }
 0x639   : > { %v2712_v24 = vpop.f32.mrb[15].mxu1 }
 0x6c5   : > { %v1231_v25 = vpop.xlane.xlu1 %1230 }
 0x6c6   : > { %v1232_v26 = vsub.f32 %v1223_v20, %v1231_v25 }
 0x6c8   : > { %v1233_v27 = vmul.f32 1.442695, %v1232_v26 }
 0x6ca   : > { %2970 = vpow2.f32 %v1233_v27  ;;  %v2509_v27 = vld [vmem:[%s3825_s7 + $0x2] ss:$0 sm:$0xff] }
 0x6d4   : > { %v2971_v28 = vpop.eup %2970 }
 0x6d5   : > { %v1235_v29 = vsel %vm862_vm2, %v2971_v28, 0.0 }
 0x6d6   : > { %1236 = vadd.xlane.f32.xlu1 %v1235_v29 }
 0x763   : > { %v1237_v39 = vpop.xlane.xlu1 %1236 }
 0x764   : > { %2972 = vrcp.f32 %v1237_v39  ;;  %v2951_v39 = vld [vmem:[%s3874_s23 + $0x38] sm:$0xff]  }
 0x76e   : > { %v2973_v40 = vpop.eup %2972 }
 0x76f   : > { %v1239_v41 = vmul.f32 %v2973_v40, %v2971_v28 }
 0x771   : > { %v1240_v42 = vpack.c.bf16 %v1239_v41, %v1239_v41  ;;  %v2948_v41 = vld [vmem:[#allocation6 + $0x30] sm:$0xff]  }
 0x773   : > { %2716 = vmatmul.mubr.msk.bf16.vlgmr.msra.gmra.mrb[24].mxu0 %vm862_vm2, %v1240_v42 }
 0x774   : > { %2731 = vmatprep.mubr.msk.bf16.mxu0 %vm3183_vm0, %v3182_v0  ;;  %2728 = vmatpush3.bf16.msra.mxu0 %v2942_v44 }
 0x775   : > { %2729 = vmatprep.subr.bf16.mxu0 %v3182_v0 }
 0x778   : > { %2730 = vmatpush3.bf16.msra.mxu0 %v2943_v45 }
 0x779   : > { %2743 = vmatprep.subr.bf16.mxu0 %v3182_v0 }
 0x77b   : > { %2732 = vmatmul.mubr.msk.bf16.vlgmr.msra.gmra.mrb[28].mxu0 %vm619_vm1, %v3503_v3 }
 0x77c   : > { %2747 = vmatprep.mubr.msk.bf16.mxu0 %vm3183_vm0, %v3182_v0  ;;  %2744 = vmatpush3.bf16.msra.mxu0 %v2944_v12 }
 0x77d   : > { %2745 = vmatprep.subr.bf16.mxu0 %v3182_v0 }
 0x780   : > { %2746 = vmatpush3.bf16.msra.mxu0 %v2945_v13 }
 0x781   : > { %2757 = vmatprep.subr.bf16.mxu0 %v3182_v0 }
 0x783   : > { %2748 = vmatmul.mubr.msk.bf16.vlgmr.msra.gmra.mrb[32].mxu0 %vm619_vm1, %v3503_v3 }
 0x784   : > { %2759 = vmatprep.mubr.msk.bf16.mxu0 %vm3183_vm0, %v3182_v0 }
 0x846   : > { %v1281_v46 = vpop.f32.mrb[24].mxu0 }
 0x847   : > { %v1288_v48 = vpack.c.bf16 %v1281_v46, %v1281_v46  ;;  %v2717_v49 = vpop.f32.mrb[25].mxu0  ;;  %v2949_v46 = vld [vmem:[#allocation6 + $0x38] sm:$0xff]  }
 0x848   : > { %v1284_v50 = vpop.f32.mrb[26].mxu0 }
 0x849   : > { %v2718_v51 = vpop.f32.mrb[27].mxu0  ;;  %2724 = vmatmul.mubr.msk.bf16.vlgmr.msra.gmra.mrb[16].mxu1 %vm619_vm1, %v1288_v48 }
 0x84a   : > { %2736 = vmatpush3.bf16.msra.mxu1 %v2940_v47  ;;  %2739 = vmatprep.mubr.msk.bf16.mxu1 %vm3183_vm0, %v3182_v0 }
 0x84b   : > { %2737 = vmatprep.subr.bf16.mxu1 %v3182_v0 }
 0x84e   : > { %2738 = vmatpush3.bf16.msra.mxu1 %v2941_v52  ;;  %v1410_v53 = vpop.f32.mrb[28].mxu0 }
 0x84f   : > { %2751 = vmatprep.subr.bf16.mxu1 %v3182_v0  ;;  %v2733_v54 = vpop.f32.mrb[29].mxu0  ;;  %v1411_v10 = vadd.f32 %v2499_v6, %v1410_v53  ;;  %v2952_v6 = vld [vmem:[#allocation8 + $0x30] sm:$0xff]  }
 0x850   : > { %v1413_v55 = vpop.f32.mrb[30].mxu0 }
 0x851   : > { %2740 = vmatmul.mubr.msk.bf16.vlgmr.msra.gmra.mrb[20].mxu1 %vm619_vm1, %v3503_v3  ;;  %v2734_v56 = vpop.f32.mrb[31].mxu0  ;;  %v1546_v11 = vpack.c.bf16 %v1411_v10, %v1411_v10 }
 0x852   : > { %2753 = vmatprep.mubr.msk.bf16.mxu1 %vm3183_vm0, %v3182_v0 }
 0x856   : > { %v1540_v24 = vpop.f32.mrb[32].mxu0 }
 0x857   : > { %v2749_v25 = vpop.f32.mrb[33].mxu0  ;;  %v1541_v29 = vadd.f32 %v2509_v27, %v1540_v24 }
 0x858   : > { %v1543_v26 = vpop.f32.mrb[34].mxu0  ;;  %v2954_v25 = vld [vmem:[#allocation9 + $0x30] sm:$0xff]  }
 0x859   : > { %v2750_v28 = vpop.f32.mrb[35].mxu0  ;;  %v1548_v30 = vpack.c.bf16 %v1541_v29, %v1541_v29 }
 0x85b   : > { %v1611_v31 = vsel %vm878_vm3, %v1548_v30, 0  ;;  %v2955_v30 = vld [vmem:[#allocation9 + $0x38] sm:$0xff]  }
 0x85c   : > { %2758 = vmatpush3.bf16.msra.mxu0 %v1611_v31 }
 0x85d   : > { %2771 = vmatprep.subr.bf16.mxu0 %v3182_v0 }
 0x91c   : > { %v1343_v58 = vpop.f32.mrb[16].mxu1 }
 0x91d   : > { %v1349_v59 = vadd.f32 %v1343_v58, %v1287_v57  ;;  %v2725_v60 = vpop.f32.mrb[17].mxu1  ;;  %v2528_v57 = vld [vmem:[%s3824_s6 + $0x3] ss:$0 sm:$0xff] }
 0x91e   : > { %v1346_v61 = vpop.f32.mrb[18].mxu1 }
 0x91f   : > { %1350 = vst.msk [vmem:[#allocation2] sm:$0xff] %vm619_vm1, %v1349_v59  ;;  %v2726_v62 = vpop.f32.mrb[19].mxu1 }
 0x920   : > { %v2523_v62 = vld [vmem:[%s3823_s5 + $0x3] ss:$0 sm:$0xff] }
 0x924   : > { %v1475_v1 = vpop.f32.mrb[20].mxu1 }
 0x925   : > { %v1476_v2 = vadd.f32 %v2504_v63, %v1475_v1  ;;  %v2741_v4 = vpop.f32.mrb[21].mxu1 }
 0x926   : > { %v1478_v5 = vpop.f32.mrb[22].mxu1  ;;  %v1653_v51 = vld [vmem:[#allocation2] sm:$0xff] }
 0x927   : > { %v1547_v7 = vpack.c.bf16 %v1476_v2, %v1476_v2  ;;  %v2742_v8 = vpop.f32.mrb[23].mxu1 }
 0x929   : > { %v1553_v9 = vsel %vm619_vm1, %v1547_v7, 0  ;;  %v2953_v7 = vld [vmem:[#allocation8 + $0x38] sm:$0xff]  }
 0x92a   : > { %2752 = vmatpush3.bf16.xpose.msra.mxu1 %v1553_v9 }
 0x92b   : > { %2763 = vmatprep.subr.bf16.mxu1 %v3182_v0 }
 0x931   : > { %2754 = vmatmul.mubr.msk.bf16.vlgmr.msra.gmra.mrb[24].mxu1 %vm619_vm1, %v1546_v11 }
 0x932   : > { %2767 = vmatprep.mubr.msk.bf16.mxu1 %vm3183_vm0, %v3182_v0  ;;  %2764 = vmatpush3.bf16.msra.mxu1 %v2946_v32 }
 0x933   : > { %2765 = vmatprep.subr.bf16.mxu1 %v3182_v0 }
 0x936   : > { %2766 = vmatpush3.bf16.msra.mxu1 %v2947_v37 }
 0x937   : > { %2779 = vmatprep.subr.bf16.mxu1 %v3182_v0 }
 0xa04   : > { %v1589_v14 = vpop.f32.mrb[24].mxu1 }
 0xa05   : > { %v2755_v15 = vpop.f32.mrb[25].mxu1  ;;  %v1595_v16 = vsel %vm862_vm2, %v1589_v14, -inf }
 0xa06   : > { %1596 = vmax.xlane.f32.xlu0 %v1595_v16  ;;  %v1592_v17 = vpop.f32.mrb[26].mxu1 }
 0xa07   : > { %v2756_v18 = vpop.f32.mrb[27].mxu1 }
 0xa93   : > { %v1597_v19 = vpop.xlane.xlu0 %1596 }
 0xa94   : > { %v1598_v20 = vsub.f32 %v1589_v14, %v1597_v19 }
 0xa96   : > { %v1599_v21 = vmul.f32 1.442695, %v1598_v20  ;;  %v2533_v20 = vld [vmem:[%s3825_s7 + $0x3] ss:$0 sm:$0xff] }
 0xa98   : > { %2974 = vpow2.f32 %v1599_v21 }
 0xaa2   : > { %v2975_v22 = vpop.eup %2974 }
 0xaa3   : > { %v1601_v23 = vsel %vm862_vm2, %v2975_v22, 0.0 }
 0xaa4   : > { %1602 = vadd.xlane.f32.xlu1 %v1601_v23 }
 0xb31   : > { %v1603_v33 = vpop.xlane.xlu1 %1602 }
 0xb32   : > { %2976 = vrcp.f32 %v1603_v33 }
 0xb3c   : > { %v2977_v34 = vpop.eup %2976 }
 0xb3d   : > { %v1605_v35 = vmul.f32 %v2977_v34, %v2975_v22 }
 0xb3f   : > { %v1606_v36 = vpack.c.bf16 %v1605_v35, %v1605_v35 }
 0xb41   : > { %2760 = vmatmul.mubr.msk.bf16.vlgmr.msra.gmra.mrb[36].mxu0 %vm862_vm2, %v1606_v36 }
 0xb42   : > { %2775 = vmatprep.mubr.msk.bf16.mxu0 %vm3183_vm0, %v3182_v0  ;;  %2772 = vmatpush3.bf16.msra.mxu0 %v2950_v38 }
 0xb43   : > { %2773 = vmatprep.subr.bf16.mxu0 %v3182_v0 }
 0xb46   : > { %2774 = vmatpush3.bf16.msra.mxu0 %v2951_v39 }
 0xb47   : > { %2787 = vmatprep.subr.bf16.mxu0 %v3182_v0 }
 0xb49   : > { %2776 = vmatmul.mubr.msk.bf16.vlgmr.msra.gmra.mrb[40].mxu0 %vm619_vm1, %v3503_v3 }
 0xb4a   : > { %2791 = vmatprep.mubr.msk.bf16.mxu0 %vm3183_vm0, %v3182_v0  ;;  %2788 = vmatpush3.bf16.msra.mxu0 %v2952_v6  ;;  %v2965_v6 = vld [vmem:[%s3831_s13 + $0x38] sm:$0xff]  }
 0xb4b   : > { %2789 = vmatprep.subr.bf16.mxu0 %v3182_v0 }
 0xb4e   : > { %2790 = vmatpush3.bf16.msra.mxu0 %v2953_v7  ;;  %v2544_v7 = vld [vmem:[%s3877_s17] ss:$0 sm:$0xff]  ;;  %s607_s17 = scalar_lea.vmem [#allocation11], %s2451_s1  ;;  %s3104_s1 = sshll.u32 %s3184_s28, 4  ;;  %s3105_s1 = int_to_ptr.vmem [resolvable:$false] %s3104_s1 }
 0xb4f   : > { %2801 = vmatprep.subr.bf16.mxu0 %v3182_v0  ;;  %s2339_s24 = sshll.u32 %s607_s17, 4  ;;  %s3775_s24 = int_to_ptr.vmem [resolvable:$true] %s2339_s24 }
 0xb50   : > { %s3100_s9 = scalar_lea.vmem %s3775_s24, 128  ;;  %p3107_p12 = scmp.lt.s32.totalorder %s3775_s24, %s3105_s1 }
 0xb51   : > { %2792 = vmatmul.mubr.msk.bf16.vlgmr.msra.gmra.mrb[44].mxu0 %vm619_vm1, %v3503_v3  ;;  %p3101_p10 = scmp.ne.s32.totalorder %s3775_s24, %s3100_s9 }
 0xb52   : > { %2803 = vmatprep.mubr.msk.bf16.mxu0 %vm3183_vm0, %v3182_v0 }
 0xb53   : > { %p3102_p3 = pnand %p3101_p10, %p3429_p5 }
 0xb55   : > { %p3103_p7 = pneg %p3102_p3 }
 0xc14   : > { %v1647_v40 = vpop.f32.mrb[36].mxu0 }
 0xc15   : > { %v1654_v42 = vpack.c.bf16 %v1647_v40, %v1647_v40  ;;  %v2761_v43 = vpop.f32.mrb[37].mxu0 }
 0xc16   : > { %v1650_v44 = vpop.f32.mrb[38].mxu0 }
 0xc17   : > { %v2762_v45 = vpop.f32.mrb[39].mxu0  ;;  %2768 = vmatmul.mubr.msk.bf16.vlgmr.msra.gmra.mrb[28].mxu1 %vm619_vm1, %v1654_v42 }
 0xc18   : > { %2780 = vmatpush3.bf16.msra.mxu1 %v2948_v41  ;;  %2783 = vmatprep.mubr.msk.bf16.mxu1 %vm3183_vm0, %v3182_v0 }
 0xc19   : > { %2781 = vmatprep.subr.bf16.mxu1 %v3182_v0 }
 0xc1c   : > { %2782 = vmatpush3.bf16.msra.mxu1 %v2949_v46  ;;  %v1776_v47 = vpop.f32.mrb[40].mxu0 }
 0xc1d   : > { %2795 = vmatprep.subr.bf16.mxu1 %v3182_v0  ;;  %v2777_v48 = vpop.f32.mrb[41].mxu0  ;;  %v1777_v4 = vadd.f32 %v2523_v62, %v1776_v47 }
 0xc1e   : > { %v1779_v49 = vpop.f32.mrb[42].mxu0 }
 0xc1f   : > { %2784 = vmatmul.mubr.msk.bf16.vlgmr.msra.gmra.mrb[32].mxu1 %vm619_vm1, %v3503_v3  ;;  %v2778_v50 = vpop.f32.mrb[43].mxu0  ;;  %v1912_v5 = vpack.c.bf16 %v1777_v4, %v1777_v4  ;;  %v2956_v49 = vld [vmem:[%s3829_s11] sm:$0xff]  }
 0xc20   : > { %2797 = vmatprep.mubr.msk.bf16.mxu1 %vm3183_vm0, %v3182_v0  ;;  %v2957_v50 = vld [vmem:[%s3829_s11 + $0x8] sm:$0xff]  }
 0xc24   : > { %v1906_v18 = vpop.f32.mrb[44].mxu0 }
 0xc25   : > { %v2793_v3 = vpop.f32.mrb[45].mxu0  ;;  %v1907_v22 = vadd.f32 %v2533_v20, %v1906_v18 }
 0xc26   : > { %v1909_v19 = vpop.f32.mrb[46].mxu0 }
 0xc27   : > { %v2794_v21 = vpop.f32.mrb[47].mxu0  ;;  %v1914_v23 = vpack.c.bf16 %v1907_v22, %v1907_v22 }
 0xc29   : > { %v1977_v24 = vsel %vm878_vm3, %v1914_v23, 0 }
 0xc2a   : > { %2802 = vmatpush3.bf16.msra.mxu0 %v1977_v24 }
 0xc2b   : > { %2815 = vmatprep.subr.bf16.mxu0 %v3182_v0 }
 0xcea   : > { %v1709_v52 = vpop.f32.mrb[28].mxu1 }
 0xceb   : > { %v1715_v53 = vadd.f32 %v1709_v52, %v1653_v51  ;;  %v2769_v54 = vpop.f32.mrb[29].mxu1  ;;  %v2958_v51 = vld [vmem:[%s3831_s13] sm:$0xff]   ;;  %v2959_v52 = vld [vmem:[%s3831_s13 + $0x8] sm:$0xff]  }
 0xcec   : > { %v1712_v55 = vpop.f32.mrb[30].mxu1  ;;  %v2961_v54 = vld [vmem:[%s3831_s13 + $0x18] sm:$0xff]  }
 0xced   : > { %1716 = vst.msk [vmem:[#allocation2] sm:$0xff] %vm619_vm1, %v1715_v53  ;;  %v2770_v56 = vpop.f32.mrb[31].mxu1  ;;  %v2960_v53 = vld [vmem:[%s3831_s13 + $0x10] sm:$0xff]   ;;  %v2962_v55 = vld [vmem:[%s3831_s13 + $0x20] sm:$0xff]  }
 0xcee   : > { %v2963_v56 = vld [vmem:[%s3831_s13 + $0x28] sm:$0xff]  }
 0xcf2   : > { %v1841_v58 = vpop.f32.mrb[32].mxu1 }
 0xcf3   : > { %v1842_v59 = vadd.f32 %v2528_v57, %v1841_v58  ;;  %v2785_v60 = vpop.f32.mrb[33].mxu1 }
 0xcf4   : > { %v1844_v61 = vpop.f32.mrb[34].mxu1  ;;  %v2019_v36 = vld [vmem:[#allocation2] sm:$0xff] }
 0xcf5   : > { %v1913_v63 = vpack.c.bf16 %v1842_v59, %v1842_v59  ;;  %v2786_v1 = vpop.f32.mrb[35].mxu1  ;;  %v2542_v61 = vld [vmem:[%s3875_s0] ss:$0 sm:$0xff] }
 0xcf7   : > { %v1919_v2 = vsel %vm619_vm1, %v1913_v63, 0  ;;  %v2543_v63 = vld [vmem:[%s3876_s22] ss:$0 sm:$0xff]  ;;  %s2326_s22 = scalar_lea.sflag [#allocation5], %s3474_s20 }
 0xcf8   : > { %2796 = vmatpush3.bf16.xpose.msra.mxu1 %v1919_v2 }
 0xcf9   : > { %2807 = vmatprep.subr.bf16.mxu1 %v3182_v0 }
 0xcff   : > { %2798 = vmatmul.mubr.msk.bf16.vlgmr.msra.gmra.mrb[36].mxu1 %vm619_vm1, %v1912_v5  ;;  %v2964_v5 = vld [vmem:[%s3831_s13 + $0x30] sm:$0xff]  }
 0xd00   : > { %2811 = vmatprep.mubr.msk.bf16.mxu1 %vm3183_vm0, %v3182_v0  ;;  %2808 = vmatpush3.bf16.msra.mxu1 %v2954_v25 }
 0xd01   : > { %2809 = vmatprep.subr.bf16.mxu1 %v3182_v0 }
 0xd04   : > { %2810 = vmatpush3.bf16.msra.mxu1 %v2955_v30  ;;  %v2557_v30 = vld [vmem:[%s3879_s30] ss:$0 sm:$0xff]  ;;  %s3106_s30 = scalar_lea.vmem %s3105_s1, 256 }
 0xd05   : > { %2823 = vmatprep.subr.bf16.mxu1 %v3182_v0  ;;  %p3108_p1 = scmp.lt.s32.totalorder %s3106_s30, %s3100_s9 }
 0xd07   : > { %p3109_p2 = por %p3108_p1, %p3107_p12 }
 0xd09   : > { %p3110_p4 = pnand %p3109_p2, %p3103_p7 }
 0xdd2   : > { %v1955_v8 = vpop.f32.mrb[36].mxu1 }
 0xdd3   : > { %v2799_v9 = vpop.f32.mrb[37].mxu1  ;;  %v1961_v10 = vsel %vm862_vm2, %v1955_v8, -inf }
 0xdd4   : > { %1962 = vmax.xlane.f32.xlu0 %v1961_v10  ;;  %v1958_v11 = vpop.f32.mrb[38].mxu1 }
 0xdd5   : > { %v2800_v12 = vpop.f32.mrb[39].mxu1 }
 0xe61   : > { %v1963_v13 = vpop.xlane.xlu0 %1962 }
 0xe62   : > { %v1964_v14 = vsub.f32 %v1955_v8, %v1963_v13 }
 0xe64   : > { %v1965_v15 = vmul.f32 1.442695, %v1964_v14 }
 0xe66   : > { %2978 = vpow2.f32 %v1965_v15 }
 0xe70   : > { %v2979_v16 = vpop.eup %2978 }
 0xe71   : > { %v1967_v17 = vsel %vm862_vm2, %v2979_v16, 0.0 }
 0xe72   : > { %1968 = vadd.xlane.f32.xlu1 %v1967_v17 }
 0xeff   : > { %v1969_v26 = vpop.xlane.xlu1 %1968 }
 0xf00   : > { %2980 = vrcp.f32 %v1969_v26 }
 0xf0a   : > { %v2981_v27 = vpop.eup %2980 }
 0xf0b   : > { %v1971_v28 = vmul.f32 %v2981_v27, %v2979_v16 }
 0xf0d   : > { %v1972_v29 = vpack.c.bf16 %v1971_v28, %v1971_v28 }
 0xf0f   : > { %2804 = vmatmul.mubr.msk.bf16.vlgmr.msra.gmra.mrb[48].mxu0 %vm862_vm2, %v1972_v29 }
 0xf10   : > { %2819 = vmatprep.mubr.msk.bf16.mxu0 %vm3183_vm0, %v3182_v0  ;;  %2816 = vmatpush3.bf16.msra.mxu0 %v2956_v49 }
 0xf11   : > { %2817 = vmatprep.subr.bf16.mxu0 %v3182_v0 }
 0xf14   : > { %2818 = vmatpush3.bf16.msra.mxu0 %v2957_v50 }
 0xfe2   : > { %v2013_v31 = vpop.f32.mrb[48].mxu0 }
 0xfe3   : > { %v2020_v32 = vpack.c.bf16 %v2013_v31, %v2013_v31  ;;  %v2805_v33 = vpop.f32.mrb[49].mxu0 }
 0xfe4   : > { %v2016_v34 = vpop.f32.mrb[50].mxu0 }
 0xfe5   : > { %v2806_v35 = vpop.f32.mrb[51].mxu0  ;;  %2812 = vmatmul.mubr.msk.bf16.vlgmr.msra.gmra.mrb[40].mxu1 %vm619_vm1, %v2020_v32  ;;  %v2558_v32 = vld [vmem:[%s3880_s19] ss:$0 sm:$0xff] }
 0xfe6   : > { %2839 = vmatprep.mubr.msk.bf16.mxu1 %vm3183_vm0, %v3182_v0  ;;  %2824 = vmatpush3.bf16.msra.mxu1 %v2958_v51 }
 0xfe7   : > { %2825 = vmatprep.subr.bf16.mxu1 %v3182_v0 }
 0xfea   : > { %2826 = vmatpush3.bf16.msra.mxu1 %v2959_v52 }
 0xfeb   : > { %2827 = vmatprep.subr.bf16.mxu1 %v3182_v0 }
 0xfee   : > { %2828 = vmatpush3.bf16.msra.mxu1 %v2960_v53 }
 0xfef   : > { %2829 = vmatprep.subr.bf16.mxu1 %v3182_v0 }
 0xff2   : > { %2830 = vmatpush3.bf16.msra.mxu1 %v2961_v54 }
 0xff3   : > { %2831 = vmatprep.subr.bf16.mxu1 %v3182_v0 }
 0xff6   : > { %2832 = vmatpush3.bf16.msra.mxu1 %v2962_v55 }
 0xff7   : > { %2833 = vmatprep.subr.bf16.mxu1 %v3182_v0 }
 0xffa   : > { %2834 = vmatpush3.bf16.msra.mxu1 %v2963_v56 }
 0xffb   : > { %2835 = vmatprep.subr.bf16.mxu1 %v3182_v0 }
 0xffe   : > { %2836 = vmatpush3.bf16.msra.mxu1 %v2964_v5 }
 0xfff   : > { %2837 = vmatprep.subr.bf16.mxu1 %v3182_v0  ;;  %v2548_v0 = vld [vmem:[%s3878_s18] ss:$0 sm:$0xff] }
0x1002   : > { %2838 = vmatpush3.bf16.msra.mxu1 %v2965_v6 }
0x10b8   : > { %v2075_v37 = vpop.f32.mrb[40].mxu1 }
0x10b9   : > { %v2081_v38 = vadd.f32 %v2075_v37, %v2019_v36  ;;  %v2813_v39 = vpop.f32.mrb[41].mxu1 }
0x10ba   : > { %v2078_v40 = vpop.f32.mrb[42].mxu1 }
0x10bb   : > { %2082 = vst.msk [vmem:[#allocation2] sm:$0xff] %vm619_vm1, %v2081_v38  ;;  %v2814_v41 = vpop.f32.mrb[43].mxu1 }
0x10c2   : > { %v2083_v42 = vld [vmem:[#allocation2] sm:$0xff] }
0x10c3   : > { %v2086_v43 = vsel %vm619_vm1, %v2083_v42, 0.0 }
0x10c4   : > { %2087 = vadd.xlane.f32.xlu0 %v2086_v43 }
0x1151   : > { %v2088_v44 = vpop.xlane.xlu0 %2087 }
0x1152   : > { %v2090_v45 = vmul.f32 0.03125, %v2088_v44 }
0x1154   : > { %v2091_v46 = vsub.f32 %v2083_v42, %v2090_v45 }
0x1156   : > { %v2092_v47 = vmul.f32 %v2091_v46, %v2091_v46 }
0x1158   : > { %v2093_v48 = vsel %vm619_vm1, %v2092_v47, 0.0 }
0x1159   : > { %2094 = vadd.xlane.f32.xlu1 %v2093_v48 }
0x11e6   : > { %v2095_v57 = vpop.xlane.xlu1 %2094 }
0x11e7   : > { %v2096_v58 = vmul.f32 0.03125, %v2095_v57 }
0x11e9   : > { %v2097_v59 = vadd.f32 1e-05, %v2096_v58 }
0x11eb   : > { %2982 = vrsqrt.f32 %v2097_v59 }
0x11f5   : > { %v2983_v60 = vpop.eup %2982 }
0x11f6   : > { %v2099_v62 = vmul.f32 %v2983_v60, %v2091_v46 }
0x11f8   : > { %v2106_v1 = vmul.f32 %v2542_v61, %v2099_v62 }
0x11fa   : > { %v2113_v2 = vadd.f32 %v2543_v63, %v2106_v1 }
0x11fc   : > { %v2114_v4 = vpack.c.bf16 %v2113_v2, %v2113_v2 }
0x11fe   : > { %2820 = vmatmul.mubr.msk.bf16.vlgmr.msra.gmra.mrb[52].mxu0 %vm619_vm1, %v2114_v4 }
0x12d1   : > { %v2175_v8 = vpop.f32.mrb[52].mxu0 }
0x12d2   : > { %v2176_v9 = vadd.f32 %v2544_v7, %v2175_v8  ;;  %v2821_v10 = vpop.f32.mrb[53].mxu0 }
0x12d3   : > { %v2178_v11 = vpop.f32.mrb[54].mxu0 }
0x12d4   : > { %v2181_v12 = vmax.f32 %v2176_v9, 0.0  ;;  %v2822_v13 = vpop.f32.mrb[55].mxu0 }
0x12d6   : > { %v2182_v14 = vpack.c.bf16 %v2181_v12, %v2181_v12 }
0x12d8   : > { %2840 = vmatmul.mubr.bf16.vlgmr.msra.gmra.mrb[44].mxu1 %v2182_v14 }
0x13ab   : > { %v2288_v15 = vpop.f32.mrb[44].mxu1 }
0x13ac   : > { %v2289_v16 = vadd.f32 %v2548_v0, %v2288_v15  ;;  %v2841_v17 = vpop.f32.mrb[45].mxu1 }
0x13ad   : > { %v2291_v18 = vpop.f32.mrb[46].mxu1 }
0x13ae   : > { %v2842_v3 = vpop.f32.mrb[47].mxu1  ;;  %v2294_v19 = vadd.f32 %v2289_v16, %v2113_v2 }
0x13b0   : > { %v2297_v20 = vsel %vm619_vm1, %v2294_v19, 0.0 }
0x13b1   : > { %2298 = vadd.xlane.f32.xlu0 %v2297_v20 }
0x143e   : > { %v2299_v21 = vpop.xlane.xlu0 %2298 }
0x143f   : > { %v2300_v22 = vmul.f32 0.03125, %v2299_v21 }
0x1441   : > { %v2301_v23 = vsub.f32 %v2294_v19, %v2300_v22 }
0x1443   : > { %v2302_v24 = vmul.f32 %v2301_v23, %v2301_v23 }
0x1445   : > { %v2303_v25 = vsel %vm619_vm1, %v2302_v24, 0.0 }
0x1446   : > { %2304 = vadd.xlane.f32.xlu1 %v2303_v25 }
0x14d3   : > { %v2305_v26 = vpop.xlane.xlu1 %2304 }
0x14d4   : > { %v2306_v27 = vmul.f32 0.03125, %v2305_v26 }
0x14d6   : > { %v2307_v28 = vadd.f32 1e-05, %v2306_v27 }
0x14d8   : > { %2984 = vrsqrt.f32 %v2307_v28 }
0x14e2   : > { %v2985_v29 = vpop.eup %2984 }
0x14e3   : > { %v2309_v31 = vmul.f32 %v2985_v29, %v2301_v23 }
0x14e5   : > { %v2316_v33 = vmul.f32 %v2557_v30, %v2309_v31 }
0x14e7   : > { %v2323_v34 = vadd.f32 %v2558_v32, %v2316_v33 }
0x14e9   : > { %2324 = vst.msk [vmem:[%s607_s17] sm:$0xff] %vm619_vm1, %v2323_v34 }
0x14ea   : > { %3113 = shalt.err (!%p3110_p4)
}
0x14eb   : > { %s3114_s20 = scalar_lea.hbm %s3773_s3, 128  ;;  %s3118_s19 = scalar_lea.hbm %s3881_s2, 256 }
0x14ec   : > { %p3115_p0 = scmp.ne.s32.totalorder %s3773_s3, %s3114_s20  ;;  %p3119_p11 = scmp.lt.u32.totalorder %s3773_s3, %s3881_s2 }
0x14ed   : > { %p3120_p13 = scmp.lt.u32.totalorder %s3118_s19, %s3114_s20  ;;  %p3122_p10 = scmp.lt.u32.totalorder %s3114_s20, %s3773_s3 }
0x14ee   : > { %p3116_p9 = pnand %p3115_p0, %p3429_p5 }
0x14ef   : > { %p3121_p6 = por %p3120_p13, %p3119_p11 }
0x14f0   : > { %p3117_p8 = pneg %p3116_p9 }
0x14f1   : > { %p3123_p3 = por %p3122_p10, %p3121_p6 }
0x14f3   : > { %p3124_p7 = pnand %p3123_p3, %p3117_p8 }
0x14f5   : > { %3127 = shalt.err (!%p3124_p7)
}
0x14f6   : > { %2857 = dma.vmem_to_hbm [thread:$0]  (%p3429_p5), %s3775_s24, 128, %s3773_s3, %s2326_s22  }
0x14f7 PF: > { %s3882_s0 = sld [smem:[#allocation16_spill]]  ;;  %s3883_s18 = sld [smem:[#allocation17_spill]] }
0x14f8   : > { %p3885_p1 = scmp.ge.s32.totalorder %s3174_s27, 2 }
0x14fd   : > { %s2351_s9 = sand.u32 1, %s3882_s0   ;;  %p3884_p12 = scmp.ne.s32.totalorder %s3883_s18, 0 }
0x14fe   : > { %s2352_s28 = scalar_lea.sflag [#allocation5], %s2351_s9 }
0x14ff   : > { %p2874_p2 = pnand %p3885_p1, %p3884_p12 }
0x1501   : > { %3157 = dma.done.wait (!%p2874_p2), %s2352_s28, 128  }
0x1502   : > { %3159 = vsyncadd (!%p2874_p2), %s2352_s28, 4294967168  ;;  %p32_p4 = scmp.ge.s32.totalorder %s3415_s15, 4   ;;  %s3886_s24 = smov %s3166_s25 }
0x1503   : > { %s3887_s25 = smov %s3170_s26  ;;  %s3888_s26 = smov %s3425_s12 }
0x1504   : > { %s3889_s27 = smov %s3415_s15  ;;  %34 = sbr.rel (!%p32_p4) target bundleno = 19 (0x13), region = 166 }
0x150b   :  { %2357 = vsyncpa [#allocation4], 1 }
0x150c   :  { %2359 = vsyncpa [#allocation4 + $0x1], 1 }
0x150d   :  { %2360 = vsyncpa [#allocation7], 1 }
0x150e   :  { %2361 = vsyncpa [#allocation10], 1 }
0x150f   :  { %2362 = vsyncpa [#allocation5], 1 }
0x1510   :  { %2364 = vsyncpa [#allocation5 + $0x1], 1 }

// kernel: tpu_custom_call.1
= control target key start
LH: loop header
LB: loop body
LE: loop exit
PB: predicated region body
PF: predicated region fallthrough
CT: control target
= control target key end

     0   :  { %s3818_s0 = inlined_call_operand.hbm [shape: bf16[2,8,32], index: 0, kind: input, shape index: {}]   ;;  %s3819_s1 = inlined_call_operand.vmem [shape: bf16[4,32,32], index: 1, kind: input, shape index: {}]   ;;  %s3820_s2 = inlined_call_operand.hbm [shape: bf16[4,32,32], index: 2, kind: input, shape index: {}]   ;;  %s3821_s3 = inlined_call_operand.hbm [shape: bf16[4,32,32], index: 3, kind: input, shape index: {}]   ;;  %s3822_s4 = inlined_call_operand.hbm [shape: bf16[4,32,32], index: 4, kind: input, shape index: {}]   ;;  %s3823_s5 = inlined_call_operand.vmem [shape: f32[4,1,32], index: 5, kind: input, shape index: {}]   ;;  %s3824_s6 = inlined_call_operand.vmem [shape: f32[4,1,32], index: 6, kind: input, shape index: {}]   ;;  %s3825_s7 = inlined_call_operand.vmem [shape: f32[4,1,32], index: 7, kind: input, shape index: {}]   ;;  %s3826_s8 = inlined_call_operand.vmem [shape: f32[1,32], index: 8, kind: input, shape index: {}]   ;;  %s3827_s9 = inlined_call_operand.vmem [shape: f32[1,32], index: 9, kind: input, shape index: {}]   ;;  %s3828_s10 = inlined_call_operand.vmem [shape: f32[1,32], index: 10, kind: input, shape index: {}]   ;;  %s3829_s11 = inlined_call_operand.vmem [shape: bf16[32,128], index: 11, kind: input, shape index: {}]   ;;  %s3830_s12 = inlined_call_operand.vmem [shape: f32[1,128], index: 12, kind: input, shape index: {}]   ;;  %s3831_s13 = inlined_call_operand.vmem [shape: bf16[128,32], index: 13, kind: input, shape index: {}]   ;;  %s3832_s14 = inlined_call_operand.vmem [shape: f32[1,32], index: 14, kind: input, shape index: {}]   ;;  %s3833_s15 = inlined_call_operand.vmem [shape: f32[1,32], index: 15, kind: input, shape index: {}]   ;;  %s3834_s16 = inlined_call_operand.vmem [shape: f32[1,32], index: 16, kind: input, shape index: {}]   ;;  %s3835_s17 = inlined_call_operand.hbm [shape: f32[2,8,32], index: 17, kind: output, shape index: {}]  }
   0x1   :  { %3844 = sst [smem:[#allocation18_spill]] %s3818_s0 }
   0x2   :  { %3845 = sst [smem:[#allocation19_spill]] %s3819_s1 }
   0x3   :  { %3846 = sst [smem:[#allocation20_spill]] %s3820_s2 }
   0x4   :  { %3847 = sst [smem:[#allocation21_spill]] %s3821_s3 }
   0x5   :  { %3848 = sst [smem:[#allocation22_spill]] %s3827_s9 }
   0x6   :  { %3849 = sst [smem:[#allocation23_spill]] %s3828_s10 }
   0x7   :  { %3850 = sst [smem:[#allocation24_spill]] %s3830_s12 }
   0x8   :  { %3851 = sst [smem:[#allocation25_spill]] %s3832_s14 }
   0x9   :  { %3852 = sst [smem:[#allocation26_spill]] %s3833_s15 }
   0xa   :  { %3853 = sst [smem:[#allocation27_spill]] %s3834_s16 }
   0xb   :  { %3854 = sst [smem:[#allocation28_spill]] %s3835_s17 }
   0xc   :  { %22 = vsyncpa [#allocation4], 0 }
   0xd   :  { %24 = vsyncpa [#allocation4 + $0x1], 0 }
   0xe   :  { %25 = vsyncpa [#allocation7], 0 }
   0xf   :  { %26 = vsyncpa [#allocation10], 0 }
  0x10   :  { %27 = vsyncpa [#allocation5], 0 }
  0x11   :  { %29 = vsyncpa [#allocation5 + $0x1], 0  ;;  %s3275_s24 = smov 0   ;;  %s3277_s25 = smov 0  }
  0x12   :  { %s3279_s26 = smov 0   ;;  %s3281_s27 = smov 0  }
  0x13 LB: > { %3855 = sst [smem:[#allocation16_spill]] %s3162_s24  ;;  %s3296_s28 = sadd.s32 4294967295, %s3174_s27   ;;  %s3174_s27 = sphi %s3281_s27, %s3889_s27   ;;  %s3170_s26 = sphi %s3279_s26, %s3888_s26   ;;  %s3166_s25 = sphi %s3277_s25, %s3887_s25   ;;  %s3162_s24 = sphi %s3275_s24, %s3886_s24  }
  0x14   : > { %s2438_s29 = sadd.s32 4294967294, %s3174_s27   ;;  %p55_p0 = scmp.ne.s32.totalorder %s3166_s25, %s3162_s24 }
  0x15   : > { %p3841_p1 = scmp.eq.s32.totalorder %s3296_s28, 0  ;;  %p421_p3 = scmp.eq.s32.totalorder %s2438_s29, 1 }
  0x16   : > { %p2439_p5 = scmp.ge.s32.totalorder %s3174_s27, 1  ;;  %p428_p7 = scmp.lt.s32.totalorder %s3174_s27, 3 }
  0x17   : > { %p3305_p4 = por %p3841_p1, %p55_p0  ;;  %p3310_p6 = por %p421_p3, %p55_p0 }
  0x18   : > { %p3315_p8 = pnand %p2439_p5, %p428_p7  ;;  %s3176_s19 = smov [#allocation6]  }
  0x19   : > { %s3856_s0 = scalar_select %p3305_p4, 1, 0 }
  0x1a   : > { %s3857_s30 = scalar_select %p3310_p6, 1, 0 }
  0x1b   : > { %s3859_s18 = scalar_select %p3315_p8, 1, 0 }
  0x1c   : > { %3858 = sst [smem:[#allocation17_spill]] %s3857_s30  ;;  %s443_s1 = sshll.u32 %s3176_s19, 4  ;;  %s3319_s1 = int_to_ptr.vmem [resolvable:$true] %s443_s1 }
  0x1d   : > { %p2859_p9 = pneg %p3315_p8  ;;  %s3177_s21 = smov [#allocation8]  }
  0x1e   : > { %s456_s22 = sshll.u32 %s3177_s21, 4  ;;  %s3178_s23 = smov [#allocation9]   ;;  %s3330_s22 = int_to_ptr.vmem [resolvable:$true] %s456_s22 }
  0x1f   : > { %p3326_p11 = pnand %p2859_p9, %p3841_p1  ;;  %s3332_s29 = sshll.u32 %s3178_s23, 4  ;;  %s470_s29 = int_to_ptr.vmem [resolvable:$true] %s3332_s29 }
  0x20   : > { %s3861_s2 = sld [smem:[#allocation20_spill]] }
  0x21   : > { %p3342_p13 = pneg %p3326_p11 }
  0x26   : > { %s2986_s24 = scalar_lea.hbm %s3861_s2, 1024 }
  0x27   : > { %p2987_p12 = scmp.ne.s32.totalorder %s3861_s2, %s2986_s24  ;;  %p2993_p5 = scmp.lt.u32.totalorder %s2986_s24, %s3861_s2 }
  0x29   : > { %p2989_p0 = pnand %p3342_p13, %p2987_p12 }
  0x2b   : > { %p2990_p3 = pneg %p2989_p0 }
  0x2d   : > { %p2995_p7 = pnand %p2993_p5, %p2990_p3 }
  0x2f   : > { %2998 = shalt.err (!%p2995_p7)
}
  0x30   : > { %s2999_s16 = scalar_lea.vmem %s3319_s1, 1024  ;;  %p3007_p2 = scmp.lt.s32.totalorder %s3319_s1, %s3319_s1 }
  0x31   : > { %p3000_p9 = scmp.ne.s32.totalorder %s3319_s1, %s2999_s16  ;;  %p3008_p6 = scmp.lt.s32.totalorder %s2999_s16, %s2999_s16 }
  0x33   : > { %p3002_p10 = pnand %p3000_p9, %p3342_p13  ;;  %p3009_p12 = por %p3008_p6, %p3007_p2 }
  0x35   : > { %p3003_p1 = pneg %p3002_p10 }
  0x37   : > { %p3010_p0 = pnand %p3009_p12, %p3003_p1 }
  0x39   : > { %3013 = shalt.err (!%p3010_p0)
}
  0x3a   : > { %s3179_s17 = smov 64   ;;  %s3180_s24 = smov 4  }
  0x3b   : > { %2862 = dma.hbm_to_vmem [thread:$0]  (!%p3326_p11), %s3861_s2, 1024, %s3319_s1, [#allocation7], %s3179_s17, %s3179_s17, %s3180_s24  }
  0x3c   : > { %s3863_s3 = sld [smem:[#allocation21_spill]] }
  0x42   : > { %s3014_s16 = scalar_lea.hbm %s3863_s3, 1024 }
  0x43   : > { %p3015_p1 = scmp.ne.s32.totalorder %s3863_s3, %s3014_s16  ;;  %p3021_p10 = scmp.lt.u32.totalorder %s3014_s16, %s3863_s3 }
  0x45   : > { %p3017_p2 = pnand %p3015_p1, %p3342_p13 }
  0x47   : > { %p3018_p6 = pneg %p3017_p2 }
  0x49   : > { %p3023_p3 = pnand %p3021_p10, %p3018_p6 }
  0x4b   : > { %3026 = shalt.err (!%p3023_p3)
}
  0x4c   : > { %s3027_s1 = scalar_lea.vmem %s3330_s22, 1024  ;;  %p3035_p12 = scmp.lt.s32.totalorder %s3330_s22, %s3330_s22 }
  0x4d   : > { %p3028_p5 = scmp.ne.s32.totalorder %s3330_s22, %s3027_s1  ;;  %p3036_p0 = scmp.lt.s32.totalorder %s3027_s1, %s3027_s1 }
  0x4f   : > { %p3030_p7 = pnand %p3028_p5, %p3342_p13  ;;  %p3037_p1 = por %p3036_p0, %p3035_p12 }
  0x51   : > { %p3031_p9 = pneg %p3030_p7 }
  0x53   : > { %p3038_p2 = pnand %p3037_p1, %p3031_p9 }
  0x55   : > { %3041 = shalt.err (!%p3038_p2)
}
  0x56   : > { %2865 = dma.hbm_to_vmem [thread:$0]  (!%p3326_p11), %s3863_s3, 1024, %s3330_s22, [#allocation7], %s3179_s17, %s3179_s17, %s3180_s24  }
  0x57   : > { %s3042_s30 = scalar_lea.hbm %s3822_s4, 1024 }
  0x58   : > { %p3043_p6 = scmp.ne.s32.totalorder %s3822_s4, %s3042_s30  ;;  %p3049_p5 = scmp.lt.u32.totalorder %s3042_s30, %s3822_s4 }
  0x5a   : > { %p3045_p10 = pnand %p3043_p6, %p3342_p13 }
  0x5c   : > { %p3046_p3 = pneg %p3045_p10 }
  0x5e   : > { %p3051_p7 = pnand %p3049_p5, %p3046_p3 }
  0x60   : > { %3054 = shalt.err (!%p3051_p7)
}
  0x61   : > { %s3055_s1 = scalar_lea.vmem %s470_s29, 1024  ;;  %p3063_p1 = scmp.lt.s32.totalorder %s470_s29, %s470_s29 }
  0x62   : > { %p3056_p9 = scmp.ne.s32.totalorder %s470_s29, %s3055_s1  ;;  %p3064_p2 = scmp.lt.s32.totalorder %s3055_s1, %s3055_s1 }
  0x64   : > { %p3058_p12 = pnand %p3056_p9, %p3342_p13  ;;  %p3065_p4 = por %p3064_p2, %p3063_p1 }
  0x66   : > { %p3059_p0 = pneg %p3058_p12 }
  0x68   : > { %p3066_p8 = pnand %p3065_p4, %p3059_p0 }
  0x6a   : > { %3069 = shalt.err (!%p3066_p8)
}
  0x6b   : > { %2868 = dma.hbm_to_vmem [thread:$0]  (!%p3326_p11), %s3822_s4, 1024, %s470_s29, [#allocation10], %s3179_s17, %s3179_s17, %s3180_s24  }
  0x6c   : > { %s3415_s15 = sadd.s32 1, %s3174_s27   ;;  %s42_s10 = sadd.s32 1, %s3170_s26 }
  0x6d   : > { %s39_s20 = ssub.s32 %s3174_s27, %s3415_s15  ;;  %p49_p8 = scmp.ne.s32.totalorder %s3170_s26, %s3166_s25 }
  0x6e   : > { %p40_p4 = scmp.eq.s32.totalorder %s39_s20, 0  ;;  %p50_p13 = scmp.eq.s32.totalorder %s3174_s27, 0 }
  0x6f   : > { %p2880_p6 = scmp.lt.s32.totalorder %s3174_s27, 2  ;;  %p3864_p3 = scmp.eq.s32.totalorder %s3296_s28, 1 }
  0x70   : > { %s3425_s12 = scalar_select %p40_p4, %s3170_s26, %s42_s10  }
  0x71   : > { %p51_p10 = por %p50_p13, %p49_p8  ;;  %p3429_p5 = por %p3864_p3, %p49_p8 }
  0x72   : > { %s519_s30 = sand.u32 1, %s3170_s26   ;;  %s2445_s19 = sshll.u32 %s3174_s27, 6 }
  0x73   : > { %s2444_s29 = sshll.u32 %s519_s30, 2  ;;  %s3866_s21 = sld [smem:[#allocation18_spill]] }
  0x74   : > { %s523_s16 = scalar_lea.vmem [#allocation3], %s2444_s29  ;;  %p3440_p11 = pnand %p2880_p6, %p51_p10 }
  0x75   : > { %s530_s1 = sshll.u32 %s523_s16, 4  ;;  %s520_s9 = scalar_lea.sflag [#allocation4], %s519_s30  ;;  %s3444_s1 = int_to_ptr.vmem [resolvable:$true] %s530_s1 }
  0x76   : > { %p3072_p9 = pneg %p3440_p11 }
  0x79   : > { %s3438_s23 = scalar_lea.hbm %s3866_s21, %s2445_s19  ;;  %s3075_s29 = scalar_lea.hbm %s3866_s21, 128 }
  0x7a   : > { %s3070_s20 = scalar_lea.hbm %s3438_s23, 64  ;;  %p3076_p1 = scmp.lt.u32.totalorder %s3438_s23, %s3866_s21 }
  0x7b   : > { %p3071_p7 = scmp.ne.s32.totalorder %s3438_s23, %s3070_s20  ;;  %p3077_p2 = scmp.lt.u32.totalorder %s3075_s29, %s3070_s20 }
  0x7c   : > { %p3079_p8 = scmp.lt.u32.totalorder %s3070_s20, %s3438_s23 }
  0x7d   : > { %p3073_p12 = pnand %p3072_p9, %p3071_p7  ;;  %p3078_p4 = por %p3077_p2, %p3076_p1 }
  0x7f   : > { %p3074_p0 = pneg %p3073_p12  ;;  %p3080_p13 = por %p3079_p8, %p3078_p4 }
  0x81   : > { %p3081_p6 = pnand %p3080_p13, %p3074_p0 }
  0x83   : > { %3084 = shalt.err (!%p3081_p6)
}
  0x84   : > { %s3085_s30 = scalar_lea.vmem %s3444_s1, 64  ;;  %s3181_s16 = smov [#allocation3]  }
  0x85   : > { %p3086_p10 = scmp.ne.s32.totalorder %s3444_s1, %s3085_s30  ;;  %s3090_s10 = sshll.u32 %s3181_s16, 4  ;;  %s3091_s10 = int_to_ptr.vmem [resolvable:$false] %s3090_s10 }
  0x86   : > { %s3092_s19 = scalar_lea.vmem %s3091_s10, 128  ;;  %p3093_p12 = scmp.lt.s32.totalorder %s3444_s1, %s3091_s10 }
  0x87   : > { %p3088_p3 = pnand %p3086_p10, %p3072_p9  ;;  %p3094_p1 = scmp.lt.s32.totalorder %s3092_s19, %s3085_s30 }
  0x89   : > { %p3089_p7 = pneg %p3088_p3  ;;  %p3095_p2 = por %p3094_p1, %p3093_p12 }
  0x8b   : > { %p3096_p4 = pnand %p3095_p2, %p3089_p7 }
  0x8d   : > { %3099 = shalt.err (!%p3096_p4)
}
  0x8e   : > { %2872 = dma.hbm_to_vmem [thread:$0]  (!%p3440_p11), %s3438_s23, 64, %s3444_s1, %s520_s9  }
  0x8f   : > { %p3868_p0 = scmp.ne.s32.totalorder %s3859_s18, 0 }
  0x90   : > { %s3474_s20 = sand.u32 (!%p3868_p0), 1, %s3166_s25   ;;  %p3869_p9 = scmp.ne.s32.totalorder (!%p3868_p0), %s3856_s0, 0 }
  0x91   : > { %539 = sbr.rel (%p3868_p0) target bundleno = 5367 (0x14f7), region = 88  ;;  %s2447_s29 = sshll.u32 (!%p3868_p0), %s3474_s20, 2 }
  0x92   : > { %s542_s17 = scalar_lea.sflag (!%p3868_p0), [#allocation4], %s3474_s20  ;;  %s545_s24 = scalar_lea.vmem (!%p3868_p0), [#allocation3], %s2447_s29 }
  0x98   : > { %3145 = dma.done.wait (%p3869_p9), %s542_s17, 64  }
  0x99   : > { %3147 = vsyncadd (%p3869_p9), %s542_s17, 4294967232  ;;  %p3870_p8 = scmp.eq.s32.totalorder %s3296_s28, 0 }
  0x9b   : > { %3149 = dma.done.wait (%p3870_p8), [#allocation7], 2048   ;;  %p3871_p11 = pmov %p3870_p8 }
  0x9c   : > { %p3872_p13 = pmov %p3870_p8 }
  0x9d   : > { %3151 = vsyncadd (%p3871_p11), [#allocation7], 4294965248 }
  0x9e   : > { %3153 = dma.done.wait (%p3872_p13), [#allocation10], 1024   ;;  %p3873_p6 = pmov %p3870_p8 }
  0x9f   : > { %v3182_v0 = vmov 0.0   ;;  %vm3183_vm0 = vmmov 0   ;;  %s3874_s23 = sld [smem:[#allocation19_spill]]  ;;  %v3503_v3 = vld [vmem:[%s545_s24] sm:$0xf]  ;;  %vm619_vm1 = vcmask 261120  }
  0xa0   : > { %3155 = vsyncadd (%p3873_p6), [#allocation10], 4294966272  ;;  %2639 = vmatprep.subr.bf16.mxu0 %v3182_v0  ;;  %2643 = vmatprep.mubr.msk.bf16.mxu0 %vm3183_vm0, %v3182_v0  ;;  %v2926_v4 = vld [vmem:[#allocation6] sm:$0xff]   ;;  %v2927_v5 = vld [vmem:[#allocation6 + $0x8] sm:$0xff]   ;;  %vm862_vm2 = vcmask 64512   ;;  %vm878_vm3 = vcmask 1043456   ;;  %v610_v49 = vunpack.c.l.bf16 %v3503_v3 }
  0xa1   : > { %2663 = vmatprep.subr.bf16.mxu1 %v3182_v0  ;;  %2665 = vmatprep.mubr.msk.bf16.mxu1 %vm3183_vm0, %v3182_v0  ;;  %v2457_v10 = vld [vmem:[%s3824_s6] ss:$0 sm:$0xff]  ;;  %v2928_v21 = vld [vmem:[#allocation8] sm:$0xff]   ;;  %v2929_v22 = vld [vmem:[#allocation8 + $0x8] sm:$0xff]   ;;  %s3875_s0 = sld [smem:[#allocation22_spill]]  ;;  %s3876_s22 = sld [smem:[#allocation23_spill]] }
  0xa2   : > { %v2453_v17 = vld [vmem:[%s3823_s5] ss:$0 sm:$0xff]  ;;  %v2930_v41 = vld [vmem:[#allocation9] sm:$0xff]   ;;  %v2931_v46 = vld [vmem:[#allocation9 + $0x8] sm:$0xff]   ;;  %s3877_s17 = sld [smem:[#allocation24_spill]]  ;;  %s3878_s18 = sld [smem:[#allocation25_spill]] }
  0xa3   : > { %v2461_v36 = vld [vmem:[%s3825_s7] ss:$0 sm:$0xff]  ;;  %v2933_v58 = vld [vmem:[#allocation6 + $0x18] sm:$0xff]   ;;  %s2451_s1 = sshll.u32 %s3474_s20, 3  ;;  %s3879_s30 = sld [smem:[#allocation26_spill]] }
  0xa4   : > { %v2452_v50 = vld [vmem:[%s3826_s8] ss:$0 sm:$0xff]  ;;  %s3880_s19 = sld [smem:[#allocation27_spill]]  ;;  %s2560_s29 = sshll.u32 %s3296_s28, 7 }
  0xa5   : > { %v2924_v1 = vld [vmem:[%s3874_s23] sm:$0xff]   ;;  %v2925_v2 = vld [vmem:[%s3874_s23 + $0x8] sm:$0xff]   ;;  %v2934_v47 = vld [vmem:[%s3874_s23 + $0x10] sm:$0xff]   ;;  %v618_v51 = vadd.f32 %v2452_v50, %v610_v49  ;;  %s3881_s2 = sld [smem:[#allocation28_spill]]  ;;  %s3184_s28 = smov [#allocation11]  }
  0xa6   : > { %2640 = vmatpush3.bf16.msra.mxu0 %v2924_v1  ;;  %v2935_v48 = vld [vmem:[%s3874_s23 + $0x18] sm:$0xff]   ;;  %v2932_v53 = vld [vmem:[#allocation6 + $0x10] sm:$0xff]  }
  0xa7   : > { %2641 = vmatprep.subr.bf16.mxu0 %v3182_v0  ;;  %620 = vst.msk [vmem:[#allocation2] sm:$0xff] %vm619_vm1, %v618_v51 }
  0xaa   : > { %2642 = vmatpush3.bf16.msra.mxu0 %v2925_v2 }
  0xab   : > { %2647 = vmatprep.subr.bf16.mxu0 %v3182_v0  ;;  %s3773_s3 = scalar_lea.hbm %s3881_s2, %s2560_s29 }
  0xad   : > { %2644 = vmatmul.mubr.msk.bf16.vlgmr.msra.gmra.mrb[0].mxu0 %vm619_vm1, %v3503_v3 }
  0xae   : > { %2648 = vmatpush3.bf16.msra.mxu0 %v2926_v4  ;;  %2651 = vmatprep.mubr.msk.bf16.mxu0 %vm3183_vm0, %v3182_v0  ;;  %v922_v63 = vld [vmem:[#allocation2] sm:$0xff] }
  0xaf   : > { %2649 = vmatprep.subr.bf16.mxu0 %v3182_v0 }
  0xb2   : > { %2650 = vmatpush3.bf16.msra.mxu0 %v2927_v5 }
  0xb3   : > { %2655 = vmatprep.subr.bf16.mxu0 %v3182_v0 }
  0xb5   : > { %2652 = vmatmul.mubr.msk.bf16.vlgmr.msra.gmra.mrb[4].mxu0 %vm619_vm1, %v3503_v3 }
  0xb6   : > { %2659 = vmatprep.mubr.msk.bf16.mxu0 %vm3183_vm0, %v3182_v0  ;;  %2656 = vmatpush3.bf16.msra.mxu0 %v2928_v21 }
  0xb7   : > { %2657 = vmatprep.subr.bf16.mxu0 %v3182_v0 }
  0xba   : > { %2658 = vmatpush3.bf16.msra.mxu0 %v2929_v22 }
  0xbb   : > { %2669 = vmatprep.subr.bf16.mxu0 %v3182_v0 }
  0xbd   : > { %2660 = vmatmul.mubr.msk.bf16.vlgmr.msra.gmra.mrb[8].mxu0 %vm619_vm1, %v3503_v3 }
  0xbe   : > { %2671 = vmatprep.mubr.msk.bf16.mxu0 %vm3183_vm0, %v3182_v0 }
 0x180   : > { %v681_v6 = vpop.f32.mrb[0].mxu0 }
 0x181   : > { %v2645_v7 = vpop.f32.mrb[1].mxu0  ;;  %v682_v19 = vadd.f32 %v2453_v17, %v681_v6 }
 0x182   : > { %v684_v8 = vpop.f32.mrb[2].mxu0  ;;  %v2480_v7 = vld [vmem:[%s3824_s6 + $0x1] ss:$0 sm:$0xff] }
 0x183   : > { %v2646_v9 = vpop.f32.mrb[3].mxu0  ;;  %v813_v20 = vpack.c.bf16 %v682_v19, %v682_v19  ;;  %v2937_v19 = vld [vmem:[#allocation8 + $0x18] sm:$0xff]  }
 0x188   : > { %v744_v11 = vpop.f32.mrb[4].mxu0 }
 0x189   : > { %v745_v12 = vadd.f32 %v2457_v10, %v744_v11  ;;  %v2653_v13 = vpop.f32.mrb[5].mxu0 }
 0x18a   : > { %v747_v14 = vpop.f32.mrb[6].mxu0 }
 0x18b   : > { %v814_v15 = vpack.c.bf16 %v745_v12, %v745_v12  ;;  %v2654_v16 = vpop.f32.mrb[7].mxu0  ;;  %v2475_v12 = vld [vmem:[%s3823_s5 + $0x1] ss:$0 sm:$0xff] }
 0x18d   : > { %v820_v18 = vsel %vm619_vm1, %v814_v15, 0 }
 0x18e   : > { %2664 = vmatpush3.bf16.xpose.msra.mxu1 %v820_v18  ;;  %v2936_v18 = vld [vmem:[#allocation8 + $0x10] sm:$0xff]  }
 0x18f   : > { %2675 = vmatprep.subr.bf16.mxu1 %v3182_v0 }
 0x190   : > { %v807_v33 = vpop.f32.mrb[8].mxu0 }
 0x191   : > { %v2661_v34 = vpop.f32.mrb[9].mxu0  ;;  %v808_v38 = vadd.f32 %v2461_v36, %v807_v33  ;;  %v2485_v33 = vld [vmem:[%s3825_s7 + $0x1] ss:$0 sm:$0xff] }
 0x192   : > { %v810_v35 = vpop.f32.mrb[10].mxu0 }
 0x193   : > { %v2662_v37 = vpop.f32.mrb[11].mxu0  ;;  %v815_v39 = vpack.c.bf16 %v808_v38, %v808_v38  ;;  %v2938_v38 = vld [vmem:[#allocation9 + $0x10] sm:$0xff]  }
 0x195   : > { %2666 = vmatmul.mubr.msk.bf16.vlgmr.msra.gmra.mrb[0].mxu1 %vm619_vm1, %v813_v20  ;;  %v880_v40 = vsel %vm878_vm3, %v815_v39, 0 }
 0x196   : > { %2679 = vmatprep.mubr.msk.bf16.mxu1 %vm3183_vm0, %v3182_v0  ;;  %2670 = vmatpush3.bf16.msra.mxu0 %v880_v40 }
 0x197   : > { %2683 = vmatprep.subr.bf16.mxu0 %v3182_v0  ;;  %2676 = vmatpush3.bf16.msra.mxu1 %v2930_v41 }
 0x198   : > { %2677 = vmatprep.subr.bf16.mxu1 %v3182_v0 }
 0x19b   : > { %2678 = vmatpush3.bf16.msra.mxu1 %v2931_v46 }
 0x19c   : > { %2691 = vmatprep.subr.bf16.mxu1 %v3182_v0 }
 0x268   : > { %v856_v23 = vpop.f32.mrb[0].mxu1 }
 0x269   : > { %v2667_v24 = vpop.f32.mrb[1].mxu1  ;;  %v863_v25 = vsel %vm862_vm2, %v856_v23, -inf }
 0x26a   : > { %864 = vmax.xlane.f32.xlu0 %v863_v25  ;;  %v859_v26 = vpop.f32.mrb[2].mxu1 }
 0x26b   : > { %v2668_v27 = vpop.f32.mrb[3].mxu1 }
 0x2f7   : > { %v865_v28 = vpop.xlane.xlu0 %864 }
 0x2f8   : > { %v866_v29 = vsub.f32 %v856_v23, %v865_v28 }
 0x2fa   : > { %v867_v30 = vmul.f32 1.442695, %v866_v29 }
 0x2fc   : > { %2966 = vpow2.f32 %v867_v30 }
 0x306   : > { %v2967_v31 = vpop.eup %2966 }
 0x307   : > { %v869_v32 = vsel %vm862_vm2, %v2967_v31, 0.0 }
 0x308   : > { %870 = vadd.xlane.f32.xlu0 %v869_v32 }
 0x395   : > { %v871_v42 = vpop.xlane.xlu0 %870 }
 0x396   : > { %2968 = vrcp.f32 %v871_v42 }
 0x3a0   : > { %v2969_v43 = vpop.eup %2968 }
 0x3a1   : > { %v873_v44 = vmul.f32 %v2969_v43, %v2967_v31  ;;  %v2939_v43 = vld [vmem:[#allocation9 + $0x18] sm:$0xff]  }
 0x3a3   : > { %v874_v45 = vpack.c.bf16 %v873_v44, %v873_v44  ;;  %v2942_v44 = vld [vmem:[%s3874_s23 + $0x20] sm:$0xff]  }
 0x3a5   : > { %2672 = vmatmul.mubr.msk.bf16.vlgmr.msra.gmra.mrb[12].mxu0 %vm862_vm2, %v874_v45  ;;  %v2943_v45 = vld [vmem:[%s3874_s23 + $0x28] sm:$0xff]  }
 0x3a6   : > { %2687 = vmatprep.mubr.msk.bf16.mxu0 %vm3183_vm0, %v3182_v0  ;;  %2684 = vmatpush3.bf16.msra.mxu0 %v2934_v47  ;;  %v2940_v47 = vld [vmem:[#allocation6 + $0x20] sm:$0xff]  }
 0x3a7   : > { %2685 = vmatprep.subr.bf16.mxu0 %v3182_v0 }
 0x3aa   : > { %2686 = vmatpush3.bf16.msra.mxu0 %v2935_v48 }
 0x3ab   : > { %2699 = vmatprep.subr.bf16.mxu0 %v3182_v0 }
 0x3ad   : > { %2688 = vmatmul.mubr.msk.bf16.vlgmr.msra.gmra.mrb[16].mxu0 %vm619_vm1, %v3503_v3 }
 0x3ae   : > { %2703 = vmatprep.mubr.msk.bf16.mxu0 %vm3183_vm0, %v3182_v0  ;;  %2700 = vmatpush3.bf16.msra.mxu0 %v2936_v18 }
 0x3af   : > { %2701 = vmatprep.subr.bf16.mxu0 %v3182_v0 }
 0x3b2   : > { %2702 = vmatpush3.bf16.msra.mxu0 %v2937_v19 }
 0x3b3   : > { %2713 = vmatprep.subr.bf16.mxu0 %v3182_v0 }
 0x3b5   : > { %2704 = vmatmul.mubr.msk.bf16.vlgmr.msra.gmra.mrb[20].mxu0 %vm619_vm1, %v3503_v3 }
 0x3b6   : > { %2715 = vmatprep.mubr.msk.bf16.mxu0 %vm3183_vm0, %v3182_v0 }
 0x478   : > { %v916_v52 = vpop.f32.mrb[12].mxu0 }
 0x479   : > { %v923_v54 = vpack.c.bf16 %v916_v52, %v916_v52  ;;  %v2673_v55 = vpop.f32.mrb[13].mxu0  ;;  %v2941_v52 = vld [vmem:[#allocation6 + $0x28] sm:$0xff]  }
 0x47a   : > { %v919_v56 = vpop.f32.mrb[14].mxu0 }
 0x47b   : > { %v2674_v57 = vpop.f32.mrb[15].mxu0  ;;  %2680 = vmatmul.mubr.msk.bf16.vlgmr.msra.gmra.mrb[4].mxu1 %vm619_vm1, %v923_v54 }
 0x47c   : > { %2692 = vmatpush3.bf16.msra.mxu1 %v2932_v53  ;;  %2695 = vmatprep.mubr.msk.bf16.mxu1 %vm3183_vm0, %v3182_v0 }
 0x47d   : > { %2693 = vmatprep.subr.bf16.mxu1 %v3182_v0 }
 0x480   : > { %2694 = vmatpush3.bf16.msra.mxu1 %v2933_v58  ;;  %v1044_v59 = vpop.f32.mrb[16].mxu0 }
 0x481   : > { %2707 = vmatprep.subr.bf16.mxu1 %v3182_v0  ;;  %v2689_v60 = vpop.f32.mrb[17].mxu0  ;;  %v1045_v16 = vadd.f32 %v2475_v12, %v1044_v59  ;;  %v2944_v12 = vld [vmem:[#allocation8 + $0x20] sm:$0xff]  }
 0x482   : > { %v1047_v61 = vpop.f32.mrb[18].mxu0 }
 0x483   : > { %2696 = vmatmul.mubr.msk.bf16.vlgmr.msra.gmra.mrb[8].mxu1 %vm619_vm1, %v3503_v3  ;;  %v2690_v62 = vpop.f32.mrb[19].mxu0  ;;  %v1180_v17 = vpack.c.bf16 %v1045_v16, %v1045_v16 }
 0x484   : > { %2709 = vmatprep.mubr.msk.bf16.mxu1 %vm3183_vm0, %v3182_v0 }
 0x488   : > { %v1174_v30 = vpop.f32.mrb[20].mxu0 }
 0x489   : > { %v2705_v31 = vpop.f32.mrb[21].mxu0  ;;  %v1175_v35 = vadd.f32 %v2485_v33, %v1174_v30 }
 0x48a   : > { %v1177_v32 = vpop.f32.mrb[22].mxu0 }
 0x48b   : > { %v2706_v34 = vpop.f32.mrb[23].mxu0  ;;  %v1182_v36 = vpack.c.bf16 %v1175_v35, %v1175_v35  ;;  %v2946_v32 = vld [vmem:[#allocation9 + $0x20] sm:$0xff]  }
 0x48d   : > { %v1245_v37 = vsel %vm878_vm3, %v1182_v36, 0 }
 0x48e   : > { %2714 = vmatpush3.bf16.msra.mxu0 %v1245_v37  ;;  %v2947_v37 = vld [vmem:[#allocation9 + $0x28] sm:$0xff]  }
 0x48f   : > { %2727 = vmatprep.subr.bf16.mxu0 %v3182_v0 }
 0x54e   : > { %v977_v1 = vpop.f32.mrb[4].mxu1 }
 0x54f   : > { %v983_v2 = vadd.f32 %v977_v1, %v922_v63  ;;  %v2681_v4 = vpop.f32.mrb[5].mxu1  ;;  %v2504_v63 = vld [vmem:[%s3824_s6 + $0x2] ss:$0 sm:$0xff] }
 0x550   : > { %v980_v5 = vpop.f32.mrb[6].mxu1 }
 0x551   : > { %984 = vst.msk [vmem:[#allocation2] sm:$0xff] %vm619_vm1, %v983_v2  ;;  %v2682_v6 = vpop.f32.mrb[7].mxu1 }
 0x552   : > { %v2499_v6 = vld [vmem:[%s3823_s5 + $0x2] ss:$0 sm:$0xff] }
 0x556   : > { %v1109_v8 = vpop.f32.mrb[8].mxu1 }
 0x557   : > { %v1110_v9 = vadd.f32 %v2480_v7, %v1109_v8  ;;  %v2697_v10 = vpop.f32.mrb[9].mxu1 }
 0x558   : > { %v1112_v11 = vpop.f32.mrb[10].mxu1  ;;  %v1287_v57 = vld [vmem:[#allocation2] sm:$0xff] }
 0x559   : > { %v1181_v13 = vpack.c.bf16 %v1110_v9, %v1110_v9  ;;  %v2698_v14 = vpop.f32.mrb[11].mxu1 }
 0x55b   : > { %v1187_v15 = vsel %vm619_vm1, %v1181_v13, 0  ;;  %v2945_v13 = vld [vmem:[#allocation8 + $0x28] sm:$0xff]  }
 0x55c   : > { %2708 = vmatpush3.bf16.xpose.msra.mxu1 %v1187_v15 }
 0x55d   : > { %2719 = vmatprep.subr.bf16.mxu1 %v3182_v0 }
 0x563   : > { %2710 = vmatmul.mubr.msk.bf16.vlgmr.msra.gmra.mrb[12].mxu1 %vm619_vm1, %v1180_v17 }
 0x564   : > { %2723 = vmatprep.mubr.msk.bf16.mxu1 %vm3183_vm0, %v3182_v0  ;;  %2720 = vmatpush3.bf16.msra.mxu1 %v2938_v38  ;;  %v2950_v38 = vld [vmem:[%s3874_s23 + $0x30] sm:$0xff]  }
 0x565   : > { %2721 = vmatprep.subr.bf16.mxu1 %v3182_v0 }
 0x568   : > { %2722 = vmatpush3.bf16.msra.mxu1 %v2939_v43 }
 0x569   : > { %2735 = vmatprep.subr.bf16.mxu1 %v3182_v0 }
 0x636   : > { %v1223_v20 = vpop.f32.mrb[12].mxu1 }
 0x637   : > { %v2711_v21 = vpop.f32.mrb[13].mxu1  ;;  %v1229_v22 = vsel %vm862_vm2, %v1223_v20, -inf }
 0x638   : > { %1230 = vmax.xlane.f32.xlu1 %v1229_v22  ;;  %v1226_v23 = vpop.f32.mrb[14].mxu1 }
 0x639   : > { %v2712_v24 = vpop.f32.mrb[15].mxu1 }
 0x6c5   : > { %v1231_v25 = vpop.xlane.xlu1 %1230 }
 0x6c6   : > { %v1232_v26 = vsub.f32 %v1223_v20, %v1231_v25 }
 0x6c8   : > { %v1233_v27 = vmul.f32 1.442695, %v1232_v26 }
 0x6ca   : > { %2970 = vpow2.f32 %v1233_v27  ;;  %v2509_v27 = vld [vmem:[%s3825_s7 + $0x2] ss:$0 sm:$0xff] }
 0x6d4   : > { %v2971_v28 = vpop.eup %2970 }
 0x6d5   : > { %v1235_v29 = vsel %vm862_vm2, %v2971_v28, 0.0 }
 0x6d6   : > { %1236 = vadd.xlane.f32.xlu1 %v1235_v29 }
 0x763   : > { %v1237_v39 = vpop.xlane.xlu1 %1236 }
 0x764   : > { %2972 = vrcp.f32 %v1237_v39  ;;  %v2951_v39 = vld [vmem:[%s3874_s23 + $0x38] sm:$0xff]  }
 0x76e   : > { %v2973_v40 = vpop.eup %2972 }
 0x76f   : > { %v1239_v41 = vmul.f32 %v2973_v40, %v2971_v28 }
 0x771   : > { %v1240_v42 = vpack.c.bf16 %v1239_v41, %v1239_v41  ;;  %v2948_v41 = vld [vmem:[#allocation6 + $0x30] sm:$0xff]  }
 0x773   : > { %2716 = vmatmul.mubr.msk.bf16.vlgmr.msra.gmra.mrb[24].mxu0 %vm862_vm2, %v1240_v42 }
 0x774   : > { %2731 = vmatprep.mubr.msk.bf16.mxu0 %vm3183_vm0, %v3182_v0  ;;  %2728 = vmatpush3.bf16.msra.mxu0 %v2942_v44 }
 0x775   : > { %2729 = vmatprep.subr.bf16.mxu0 %v3182_v0 }
 0x778   : > { %2730 = vmatpush3.bf16.msra.mxu0 %v2943_v45 }
 0x779   : > { %2743 = vmatprep.subr.bf16.mxu0 %v3182_v0 }
 0x77b   : > { %2732 = vmatmul.mubr.msk.bf16.vlgmr.msra.gmra.mrb[28].mxu0 %vm619_vm1, %v3503_v3 }
 0x77c   : > { %2747 = vmatprep.mubr.msk.bf16.mxu0 %vm3183_vm0, %v3182_v0  ;;  %2744 = vmatpush3.bf16.msra.mxu0 %v2944_v12 }
 0x77d   : > { %2745 = vmatprep.subr.bf16.mxu0 %v3182_v0 }
 0x780   : > { %2746 = vmatpush3.bf16.msra.mxu0 %v2945_v13 }
 0x781   : > { %2757 = vmatprep.subr.bf16.mxu0 %v3182_v0 }
 0x783   : > { %2748 = vmatmul.mubr.msk.bf16.vlgmr.msra.gmra.mrb[32].mxu0 %vm619_vm1, %v3503_v3 }
 0x784   : > { %2759 = vmatprep.mubr.msk.bf16.mxu0 %vm3183_vm0, %v3182_v0 }
 0x846   : > { %v1281_v46 = vpop.f32.mrb[24].mxu0 }
 0x847   : > { %v1288_v48 = vpack.c.bf16 %v1281_v46, %v1281_v46  ;;  %v2717_v49 = vpop.f32.mrb[25].mxu0  ;;  %v2949_v46 = vld [vmem:[#allocation6 + $0x38] sm:$0xff]  }
 0x848   : > { %v1284_v50 = vpop.f32.mrb[26].mxu0 }
 0x849   : > { %v2718_v51 = vpop.f32.mrb[27].mxu0  ;;  %2724 = vmatmul.mubr.msk.bf16.vlgmr.msra.gmra.mrb[16].mxu1 %vm619_vm1, %v1288_v48 }
 0x84a   : > { %2736 = vmatpush3.bf16.msra.mxu1 %v2940_v47  ;;  %2739 = vmatprep.mubr.msk.bf16.mxu1 %vm3183_vm0, %v3182_v0 }
 0x84b   : > { %2737 = vmatprep.subr.bf16.mxu1 %v3182_v0 }
 0x84e   : > { %2738 = vmatpush3.bf16.msra.mxu1 %v2941_v52  ;;  %v1410_v53 = vpop.f32.mrb[28].mxu0 }
 0x84f   : > { %2751 = vmatprep.subr.bf16.mxu1 %v3182_v0  ;;  %v2733_v54 = vpop.f32.mrb[29].mxu0  ;;  %v1411_v10 = vadd.f32 %v2499_v6, %v1410_v53  ;;  %v2952_v6 = vld [vmem:[#allocation8 + $0x30] sm:$0xff]  }
 0x850   : > { %v1413_v55 = vpop.f32.mrb[30].mxu0 }
 0x851   : > { %2740 = vmatmul.mubr.msk.bf16.vlgmr.msra.gmra.mrb[20].mxu1 %vm619_vm1, %v3503_v3  ;;  %v2734_v56 = vpop.f32.mrb[31].mxu0  ;;  %v1546_v11 = vpack.c.bf16 %v1411_v10, %v1411_v10 }
 0x852   : > { %2753 = vmatprep.mubr.msk.bf16.mxu1 %vm3183_vm0, %v3182_v0 }
 0x856   : > { %v1540_v24 = vpop.f32.mrb[32].mxu0 }
 0x857   : > { %v2749_v25 = vpop.f32.mrb[33].mxu0  ;;  %v1541_v29 = vadd.f32 %v2509_v27, %v1540_v24 }
 0x858   : > { %v1543_v26 = vpop.f32.mrb[34].mxu0  ;;  %v2954_v25 = vld [vmem:[#allocation9 + $0x30] sm:$0xff]  }
 0x859   : > { %v2750_v28 = vpop.f32.mrb[35].mxu0  ;;  %v1548_v30 = vpack.c.bf16 %v1541_v29, %v1541_v29 }
 0x85b   : > { %v1611_v31 = vsel %vm878_vm3, %v1548_v30, 0  ;;  %v2955_v30 = vld [vmem:[#allocation9 + $0x38] sm:$0xff]  }
 0x85c   : > { %2758 = vmatpush3.bf16.msra.mxu0 %v1611_v31 }
 0x85d   : > { %2771 = vmatprep.subr.bf16.mxu0 %v3182_v0 }
 0x91c   : > { %v1343_v58 = vpop.f32.mrb[16].mxu1 }
 0x91d   : > { %v1349_v59 = vadd.f32 %v1343_v58, %v1287_v57  ;;  %v2725_v60 = vpop.f32.mrb[17].mxu1  ;;  %v2528_v57 = vld [vmem:[%s3824_s6 + $0x3] ss:$0 sm:$0xff] }
 0x91e   : > { %v1346_v61 = vpop.f32.mrb[18].mxu1 }
 0x91f   : > { %1350 = vst.msk [vmem:[#allocation2] sm:$0xff] %vm619_vm1, %v1349_v59  ;;  %v2726_v62 = vpop.f32.mrb[19].mxu1 }
 0x920   : > { %v2523_v62 = vld [vmem:[%s3823_s5 + $0x3] ss:$0 sm:$0xff] }
 0x924   : > { %v1475_v1 = vpop.f32.mrb[20].mxu1 }
 0x925   : > { %v1476_v2 = vadd.f32 %v2504_v63, %v1475_v1  ;;  %v2741_v4 = vpop.f32.mrb[21].mxu1 }
 0x926   : > { %v1478_v5 = vpop.f32.mrb[22].mxu1  ;;  %v1653_v51 = vld [vmem:[#allocation2] sm:$0xff] }
 0x927   : > { %v1547_v7 = vpack.c.bf16 %v1476_v2, %v1476_v2  ;;  %v2742_v8 = vpop.f32.mrb[23].mxu1 }
 0x929   : > { %v1553_v9 = vsel %vm619_vm1, %v1547_v7, 0  ;;  %v2953_v7 = vld [vmem:[#allocation8 + $0x38] sm:$0xff]  }
 0x92a   : > { %2752 = vmatpush3.bf16.xpose.msra.mxu1 %v1553_v9 }
 0x92b   : > { %2763 = vmatprep.subr.bf16.mxu1 %v3182_v0 }
 0x931   : > { %2754 = vmatmul.mubr.msk.bf16.vlgmr.msra.gmra.mrb[24].mxu1 %vm619_vm1, %v1546_v11 }
 0x932   : > { %2767 = vmatprep.mubr.msk.bf16.mxu1 %vm3183_vm0, %v3182_v0  ;;  %2764 = vmatpush3.bf16.msra.mxu1 %v2946_v32 }
 0x933   : > { %2765 = vmatprep.subr.bf16.mxu1 %v3182_v0 }
 0x936   : > { %2766 = vmatpush3.bf16.msra.mxu1 %v2947_v37 }
 0x937   : > { %2779 = vmatprep.subr.bf16.mxu1 %v3182_v0 }
 0xa04   : > { %v1589_v14 = vpop.f32.mrb[24].mxu1 }
 0xa05   : > { %v2755_v15 = vpop.f32.mrb[25].mxu1  ;;  %v1595_v16 = vsel %vm862_vm2, %v1589_v14, -inf }
 0xa06   : > { %1596 = vmax.xlane.f32.xlu0 %v1595_v16  ;;  %v1592_v17 = vpop.f32.mrb[26].mxu1 }
 0xa07   : > { %v2756_v18 = vpop.f32.mrb[27].mxu1 }
 0xa93   : > { %v1597_v19 = vpop.xlane.xlu0 %1596 }
 0xa94   : > { %v1598_v20 = vsub.f32 %v1589_v14, %v1597_v19 }
 0xa96   : > { %v1599_v21 = vmul.f32 1.442695, %v1598_v20  ;;  %v2533_v20 = vld [vmem:[%s3825_s7 + $0x3] ss:$0 sm:$0xff] }
 0xa98   : > { %2974 = vpow2.f32 %v1599_v21 }
 0xaa2   : > { %v2975_v22 = vpop.eup %2974 }
 0xaa3   : > { %v1601_v23 = vsel %vm862_vm2, %v2975_v22, 0.0 }
 0xaa4   : > { %1602 = vadd.xlane.f32.xlu1 %v1601_v23 }
 0xb31   : > { %v1603_v33 = vpop.xlane.xlu1 %1602 }
 0xb32   : > { %2976 = vrcp.f32 %v1603_v33 }
 0xb3c   : > { %v2977_v34 = vpop.eup %2976 }
 0xb3d   : > { %v1605_v35 = vmul.f32 %v2977_v34, %v2975_v22 }
 0xb3f   : > { %v1606_v36 = vpack.c.bf16 %v1605_v35, %v1605_v35 }
 0xb41   : > { %2760 = vmatmul.mubr.msk.bf16.vlgmr.msra.gmra.mrb[36].mxu0 %vm862_vm2, %v1606_v36 }
 0xb42   : > { %2775 = vmatprep.mubr.msk.bf16.mxu0 %vm3183_vm0, %v3182_v0  ;;  %2772 = vmatpush3.bf16.msra.mxu0 %v2950_v38 }
 0xb43   : > { %2773 = vmatprep.subr.bf16.mxu0 %v3182_v0 }
 0xb46   : > { %2774 = vmatpush3.bf16.msra.mxu0 %v2951_v39 }
 0xb47   : > { %2787 = vmatprep.subr.bf16.mxu0 %v3182_v0 }
 0xb49   : > { %2776 = vmatmul.mubr.msk.bf16.vlgmr.msra.gmra.mrb[40].mxu0 %vm619_vm1, %v3503_v3 }
 0xb4a   : > { %2791 = vmatprep.mubr.msk.bf16.mxu0 %vm3183_vm0, %v3182_v0  ;;  %2788 = vmatpush3.bf16.msra.mxu0 %v2952_v6  ;;  %v2965_v6 = vld [vmem:[%s3831_s13 + $0x38] sm:$0xff]  }
 0xb4b   : > { %2789 = vmatprep.subr.bf16.mxu0 %v3182_v0 }
 0xb4e   : > { %2790 = vmatpush3.bf16.msra.mxu0 %v2953_v7  ;;  %v2544_v7 = vld [vmem:[%s3877_s17] ss:$0 sm:$0xff]  ;;  %s607_s17 = scalar_lea.vmem [#allocation11], %s2451_s1  ;;  %s3104_s1 = sshll.u32 %s3184_s28, 4  ;;  %s3105_s1 = int_to_ptr.vmem [resolvable:$false] %s3104_s1 }
 0xb4f   : > { %2801 = vmatprep.subr.bf16.mxu0 %v3182_v0  ;;  %s2339_s24 = sshll.u32 %s607_s17, 4  ;;  %s3775_s24 = int_to_ptr.vmem [resolvable:$true] %s2339_s24 }
 0xb50   : > { %s3100_s9 = scalar_lea.vmem %s3775_s24, 128  ;;  %p3107_p12 = scmp.lt.s32.totalorder %s3775_s24, %s3105_s1 }
 0xb51   : > { %2792 = vmatmul.mubr.msk.bf16.vlgmr.msra.gmra.mrb[44].mxu0 %vm619_vm1, %v3503_v3  ;;  %p3101_p10 = scmp.ne.s32.totalorder %s3775_s24, %s3100_s9 }
 0xb52   : > { %2803 = vmatprep.mubr.msk.bf16.mxu0 %vm3183_vm0, %v3182_v0 }
 0xb53   : > { %p3102_p3 = pnand %p3101_p10, %p3429_p5 }
 0xb55   : > { %p3103_p7 = pneg %p3102_p3 }
 0xc14   : > { %v1647_v40 = vpop.f32.mrb[36].mxu0 }
 0xc15   : > { %v1654_v42 = vpack.c.bf16 %v1647_v40, %v1647_v40  ;;  %v2761_v43 = vpop.f32.mrb[37].mxu0 }
 0xc16   : > { %v1650_v44 = vpop.f32.mrb[38].mxu0 }
 0xc17   : > { %v2762_v45 = vpop.f32.mrb[39].mxu0  ;;  %2768 = vmatmul.mubr.msk.bf16.vlgmr.msra.gmra.mrb[28].mxu1 %vm619_vm1, %v1654_v42 }
 0xc18   : > { %2780 = vmatpush3.bf16.msra.mxu1 %v2948_v41  ;;  %2783 = vmatprep.mubr.msk.bf16.mxu1 %vm3183_vm0, %v3182_v0 }
 0xc19   : > { %2781 = vmatprep.subr.bf16.mxu1 %v3182_v0 }
 0xc1c   : > { %2782 = vmatpush3.bf16.msra.mxu1 %v2949_v46  ;;  %v1776_v47 = vpop.f32.mrb[40].mxu0 }
 0xc1d   : > { %2795 = vmatprep.subr.bf16.mxu1 %v3182_v0  ;;  %v2777_v48 = vpop.f32.mrb[41].mxu0  ;;  %v1777_v4 = vadd.f32 %v2523_v62, %v1776_v47 }
 0xc1e   : > { %v1779_v49 = vpop.f32.mrb[42].mxu0 }
 0xc1f   : > { %2784 = vmatmul.mubr.msk.bf16.vlgmr.msra.gmra.mrb[32].mxu1 %vm619_vm1, %v3503_v3  ;;  %v2778_v50 = vpop.f32.mrb[43].mxu0  ;;  %v1912_v5 = vpack.c.bf16 %v1777_v4, %v1777_v4  ;;  %v2956_v49 = vld [vmem:[%s3829_s11] sm:$0xff]  }
 0xc20   : > { %2797 = vmatprep.mubr.msk.bf16.mxu1 %vm3183_vm0, %v3182_v0  ;;  %v2957_v50 = vld [vmem:[%s3829_s11 + $0x8] sm:$0xff]  }
 0xc24   : > { %v1906_v18 = vpop.f32.mrb[44].mxu0 }
 0xc25   : > { %v2793_v3 = vpop.f32.mrb[45].mxu0  ;;  %v1907_v22 = vadd.f32 %v2533_v20, %v1906_v18 }
 0xc26   : > { %v1909_v19 = vpop.f32.mrb[46].mxu0 }
 0xc27   : > { %v2794_v21 = vpop.f32.mrb[47].mxu0  ;;  %v1914_v23 = vpack.c.bf16 %v1907_v22, %v1907_v22 }
 0xc29   : > { %v1977_v24 = vsel %vm878_vm3, %v1914_v23, 0 }
 0xc2a   : > { %2802 = vmatpush3.bf16.msra.mxu0 %v1977_v24 }
 0xc2b   : > { %2815 = vmatprep.subr.bf16.mxu0 %v3182_v0 }
 0xcea   : > { %v1709_v52 = vpop.f32.mrb[28].mxu1 }
 0xceb   : > { %v1715_v53 = vadd.f32 %v1709_v52, %v1653_v51  ;;  %v2769_v54 = vpop.f32.mrb[29].mxu1  ;;  %v2958_v51 = vld [vmem:[%s3831_s13] sm:$0xff]   ;;  %v2959_v52 = vld [vmem:[%s3831_s13 + $0x8] sm:$0xff]  }
 0xcec   : > { %v1712_v55 = vpop.f32.mrb[30].mxu1  ;;  %v2961_v54 = vld [vmem:[%s3831_s13 + $0x18] sm:$0xff]  }
 0xced   : > { %1716 = vst.msk [vmem:[#allocation2] sm:$0xff] %vm619_vm1, %v1715_v53  ;;  %v2770_v56 = vpop.f32.mrb[31].mxu1  ;;  %v2960_v53 = vld [vmem:[%s3831_s13 + $0x10] sm:$0xff]   ;;  %v2962_v55 = vld [vmem:[%s3831_s13 + $0x20] sm:$0xff]  }
 0xcee   : > { %v2963_v56 = vld [vmem:[%s3831_s13 + $0x28] sm:$0xff]  }
 0xcf2   : > { %v1841_v58 = vpop.f32.mrb[32].mxu1 }
 0xcf3   : > { %v1842_v59 = vadd.f32 %v2528_v57, %v1841_v58  ;;  %v2785_v60 = vpop.f32.mrb[33].mxu1 }
 0xcf4   : > { %v1844_v61 = vpop.f32.mrb[34].mxu1  ;;  %v2019_v36 = vld [vmem:[#allocation2] sm:$0xff] }
 0xcf5   : > { %v1913_v63 = vpack.c.bf16 %v1842_v59, %v1842_v59  ;;  %v2786_v1 = vpop.f32.mrb[35].mxu1  ;;  %v2542_v61 = vld [vmem:[%s3875_s0] ss:$0 sm:$0xff] }
 0xcf7   : > { %v1919_v2 = vsel %vm619_vm1, %v1913_v63, 0  ;;  %v2543_v63 = vld [vmem:[%s3876_s22] ss:$0 sm:$0xff]  ;;  %s2326_s22 = scalar_lea.sflag [#allocation5], %s3474_s20 }
 0xcf8   : > { %2796 = vmatpush3.bf16.xpose.msra.mxu1 %v1919_v2 }
 0xcf9   : > { %2807 = vmatprep.subr.bf16.mxu1 %v3182_v0 }
 0xcff   : > { %2798 = vmatmul.mubr.msk.bf16.vlgmr.msra.gmra.mrb[36].mxu1 %vm619_vm1, %v1912_v5  ;;  %v2964_v5 = vld [vmem:[%s3831_s13 + $0x30] sm:$0xff]  }
 0xd00   : > { %2811 = vmatprep.mubr.msk.bf16.mxu1 %vm3183_vm0, %v3182_v0  ;;  %2808 = vmatpush3.bf16.msra.mxu1 %v2954_v25 }
 0xd01   : > { %2809 = vmatprep.subr.bf16.mxu1 %v3182_v0 }
 0xd04   : > { %2810 = vmatpush3.bf16.msra.mxu1 %v2955_v30  ;;  %v2557_v30 = vld [vmem:[%s3879_s30] ss:$0 sm:$0xff]  ;;  %s3106_s30 = scalar_lea.vmem %s3105_s1, 256 }
 0xd05   : > { %2823 = vmatprep.subr.bf16.mxu1 %v3182_v0  ;;  %p3108_p1 = scmp.lt.s32.totalorder %s3106_s30, %s3100_s9 }
 0xd07   : > { %p3109_p2 = por %p3108_p1, %p3107_p12 }
 0xd09   : > { %p3110_p4 = pnand %p3109_p2, %p3103_p7 }
 0xdd2   : > { %v1955_v8 = vpop.f32.mrb[36].mxu1 }
 0xdd3   : > { %v2799_v9 = vpop.f32.mrb[37].mxu1  ;;  %v1961_v10 = vsel %vm862_vm2, %v1955_v8, -inf }
 0xdd4   : > { %1962 = vmax.xlane.f32.xlu0 %v1961_v10  ;;  %v1958_v11 = vpop.f32.mrb[38].mxu1 }
 0xdd5   : > { %v2800_v12 = vpop.f32.mrb[39].mxu1 }
 0xe61   : > { %v1963_v13 = vpop.xlane.xlu0 %1962 }
 0xe62   : > { %v1964_v14 = vsub.f32 %v1955_v8, %v1963_v13 }
 0xe64   : > { %v1965_v15 = vmul.f32 1.442695, %v1964_v14 }
 0xe66   : > { %2978 = vpow2.f32 %v1965_v15 }
 0xe70   : > { %v2979_v16 = vpop.eup %2978 }
 0xe71   : > { %v1967_v17 = vsel %vm862_vm2, %v2979_v16, 0.0 }
 0xe72   : > { %1968 = vadd.xlane.f32.xlu1 %v1967_v17 }
 0xeff   : > { %v1969_v26 = vpop.xlane.xlu1 %1968 }
 0xf00   : > { %2980 = vrcp.f32 %v1969_v26 }
 0xf0a   : > { %v2981_v27 = vpop.eup %2980 }
 0xf0b   : > { %v1971_v28 = vmul.f32 %v2981_v27, %v2979_v16 }
 0xf0d   : > { %v1972_v29 = vpack.c.bf16 %v1971_v28, %v1971_v28 }
 0xf0f   : > { %2804 = vmatmul.mubr.msk.bf16.vlgmr.msra.gmra.mrb[48].mxu0 %vm862_vm2, %v1972_v29 }
 0xf10   : > { %2819 = vmatprep.mubr.msk.bf16.mxu0 %vm3183_vm0, %v3182_v0  ;;  %2816 = vmatpush3.bf16.msra.mxu0 %v2956_v49 }
 0xf11   : > { %2817 = vmatprep.subr.bf16.mxu0 %v3182_v0 }
 0xf14   : > { %2818 = vmatpush3.bf16.msra.mxu0 %v2957_v50 }
 0xfe2   : > { %v2013_v31 = vpop.f32.mrb[48].mxu0 }
 0xfe3   : > { %v2020_v32 = vpack.c.bf16 %v2013_v31, %v2013_v31  ;;  %v2805_v33 = vpop.f32.mrb[49].mxu0 }
 0xfe4   : > { %v2016_v34 = vpop.f32.mrb[50].mxu0 }
 0xfe5   : > { %v2806_v35 = vpop.f32.mrb[51].mxu0  ;;  %2812 = vmatmul.mubr.msk.bf16.vlgmr.msra.gmra.mrb[40].mxu1 %vm619_vm1, %v2020_v32  ;;  %v2558_v32 = vld [vmem:[%s3880_s19] ss:$0 sm:$0xff] }
 0xfe6   : > { %2839 = vmatprep.mubr.msk.bf16.mxu1 %vm3183_vm0, %v3182_v0  ;;  %2824 = vmatpush3.bf16.msra.mxu1 %v2958_v51 }
 0xfe7   : > { %2825 = vmatprep.subr.bf16.mxu1 %v3182_v0 }
 0xfea   : > { %2826 = vmatpush3.bf16.msra.mxu1 %v2959_v52 }
 0xfeb   : > { %2827 = vmatprep.subr.bf16.mxu1 %v3182_v0 }
 0xfee   : > { %2828 = vmatpush3.bf16.msra.mxu1 %v2960_v53 }
 0xfef   : > { %2829 = vmatprep.subr.bf16.mxu1 %v3182_v0 }
 0xff2   : > { %2830 = vmatpush3.bf16.msra.mxu1 %v2961_v54 }
 0xff3   : > { %2831 = vmatprep.subr.bf16.mxu1 %v3182_v0 }
 0xff6   : > { %2832 = vmatpush3.bf16.msra.mxu1 %v2962_v55 }
 0xff7   : > { %2833 = vmatprep.subr.bf16.mxu1 %v3182_v0 }
 0xffa   : > { %2834 = vmatpush3.bf16.msra.mxu1 %v2963_v56 }
 0xffb   : > { %2835 = vmatprep.subr.bf16.mxu1 %v3182_v0 }
 0xffe   : > { %2836 = vmatpush3.bf16.msra.mxu1 %v2964_v5 }
 0xfff   : > { %2837 = vmatprep.subr.bf16.mxu1 %v3182_v0  ;;  %v2548_v0 = vld [vmem:[%s3878_s18] ss:$0 sm:$0xff] }
0x1002   : > { %2838 = vmatpush3.bf16.msra.mxu1 %v2965_v6 }
0x10b8   : > { %v2075_v37 = vpop.f32.mrb[40].mxu1 }
0x10b9   : > { %v2081_v38 = vadd.f32 %v2075_v37, %v2019_v36  ;;  %v2813_v39 = vpop.f32.mrb[41].mxu1 }
0x10ba   : > { %v2078_v40 = vpop.f32.mrb[42].mxu1 }
0x10bb   : > { %2082 = vst.msk [vmem:[#allocation2] sm:$0xff] %vm619_vm1, %v2081_v38  ;;  %v2814_v41 = vpop.f32.mrb[43].mxu1 }
0x10c2   : > { %v2083_v42 = vld [vmem:[#allocation2] sm:$0xff] }
0x10c3   : > { %v2086_v43 = vsel %vm619_vm1, %v2083_v42, 0.0 }
0x10c4   : > { %2087 = vadd.xlane.f32.xlu0 %v2086_v43 }
0x1151   : > { %v2088_v44 = vpop.xlane.xlu0 %2087 }
0x1152   : > { %v2090_v45 = vmul.f32 0.03125, %v2088_v44 }
0x1154   : > { %v2091_v46 = vsub.f32 %v2083_v42, %v2090_v45 }
0x1156   : > { %v2092_v47 = vmul.f32 %v2091_v46, %v2091_v46 }
0x1158   : > { %v2093_v48 = vsel %vm619_vm1, %v2092_v47, 0.0 }
0x1159   : > { %2094 = vadd.xlane.f32.xlu1 %v2093_v48 }
0x11e6   : > { %v2095_v57 = vpop.xlane.xlu1 %2094 }
0x11e7   : > { %v2096_v58 = vmul.f32 0.03125, %v2095_v57 }
0x11e9   : > { %v2097_v59 = vadd.f32 1e-05, %v2096_v58 }
0x11eb   : > { %2982 = vrsqrt.f32 %v2097_v59 }
0x11f5   : > { %v2983_v60 = vpop.eup %2982 }
0x11f6   : > { %v2099_v62 = vmul.f32 %v2983_v60, %v2091_v46 }
0x11f8   : > { %v2106_v1 = vmul.f32 %v2542_v61, %v2099_v62 }
0x11fa   : > { %v2113_v2 = vadd.f32 %v2543_v63, %v2106_v1 }
0x11fc   : > { %v2114_v4 = vpack.c.bf16 %v2113_v2, %v2113_v2 }
0x11fe   : > { %2820 = vmatmul.mubr.msk.bf16.vlgmr.msra.gmra.mrb[52].mxu0 %vm619_vm1, %v2114_v4 }
0x12d1   : > { %v2175_v8 = vpop.f32.mrb[52].mxu0 }
0x12d2   : > { %v2176_v9 = vadd.f32 %v2544_v7, %v2175_v8  ;;  %v2821_v10 = vpop.f32.mrb[53].mxu0 }
0x12d3   : > { %v2178_v11 = vpop.f32.mrb[54].mxu0 }
0x12d4   : > { %v2181_v12 = vmax.f32 %v2176_v9, 0.0  ;;  %v2822_v13 = vpop.f32.mrb[55].mxu0 }
0x12d6   : > { %v2182_v14 = vpack.c.bf16 %v2181_v12, %v2181_v12 }
0x12d8   : > { %2840 = vmatmul.mubr.bf16.vlgmr.msra.gmra.mrb[44].mxu1 %v2182_v14 }
0x13ab   : > { %v2288_v15 = vpop.f32.mrb[44].mxu1 }
0x13ac   : > { %v2289_v16 = vadd.f32 %v2548_v0, %v2288_v15  ;;  %v2841_v17 = vpop.f32.mrb[45].mxu1 }
0x13ad   : > { %v2291_v18 = vpop.f32.mrb[46].mxu1 }
0x13ae   : > { %v2842_v3 = vpop.f32.mrb[47].mxu1  ;;  %v2294_v19 = vadd.f32 %v2289_v16, %v2113_v2 }
0x13b0   : > { %v2297_v20 = vsel %vm619_vm1, %v2294_v19, 0.0 }
0x13b1   : > { %2298 = vadd.xlane.f32.xlu0 %v2297_v20 }
0x143e   : > { %v2299_v21 = vpop.xlane.xlu0 %2298 }
0x143f   : > { %v2300_v22 = vmul.f32 0.03125, %v2299_v21 }
0x1441   : > { %v2301_v23 = vsub.f32 %v2294_v19, %v2300_v22 }
0x1443   : > { %v2302_v24 = vmul.f32 %v2301_v23, %v2301_v23 }
0x1445   : > { %v2303_v25 = vsel %vm619_vm1, %v2302_v24, 0.0 }
0x1446   : > { %2304 = vadd.xlane.f32.xlu1 %v2303_v25 }
0x14d3   : > { %v2305_v26 = vpop.xlane.xlu1 %2304 }
0x14d4   : > { %v2306_v27 = vmul.f32 0.03125, %v2305_v26 }
0x14d6   : > { %v2307_v28 = vadd.f32 1e-05, %v2306_v27 }
0x14d8   : > { %2984 = vrsqrt.f32 %v2307_v28 }
0x14e2   : > { %v2985_v29 = vpop.eup %2984 }
0x14e3   : > { %v2309_v31 = vmul.f32 %v2985_v29, %v2301_v23 }
0x14e5   : > { %v2316_v33 = vmul.f32 %v2557_v30, %v2309_v31 }
0x14e7   : > { %v2323_v34 = vadd.f32 %v2558_v32, %v2316_v33 }
0x14e9   : > { %2324 = vst.msk [vmem:[%s607_s17] sm:$0xff] %vm619_vm1, %v2323_v34 }
0x14ea   : > { %3113 = shalt.err (!%p3110_p4)
}
0x14eb   : > { %s3114_s20 = scalar_lea.hbm %s3773_s3, 128  ;;  %s3118_s19 = scalar_lea.hbm %s3881_s2, 256 }
0x14ec   : > { %p3115_p0 = scmp.ne.s32.totalorder %s3773_s3, %s3114_s20  ;;  %p3119_p11 = scmp.lt.u32.totalorder %s3773_s3, %s3881_s2 }
0x14ed   : > { %p3120_p13 = scmp.lt.u32.totalorder %s3118_s19, %s3114_s20  ;;  %p3122_p10 = scmp.lt.u32.totalorder %s3114_s20, %s3773_s3 }
0x14ee   : > { %p3116_p9 = pnand %p3115_p0, %p3429_p5 }
0x14ef   : > { %p3121_p6 = por %p3120_p13, %p3119_p11 }
0x14f0   : > { %p3117_p8 = pneg %p3116_p9 }
0x14f1   : > { %p3123_p3 = por %p3122_p10, %p3121_p6 }
0x14f3   : > { %p3124_p7 = pnand %p3123_p3, %p3117_p8 }
0x14f5   : > { %3127 = shalt.err (!%p3124_p7)
}
0x14f6   : > { %2857 = dma.vmem_to_hbm [thread:$0]  (%p3429_p5), %s3775_s24, 128, %s3773_s3, %s2326_s22  }
0x14f7 PF: > { %s3882_s0 = sld [smem:[#allocation16_spill]]  ;;  %s3883_s18 = sld [smem:[#allocation17_spill]] }
0x14f8   : > { %p3885_p1 = scmp.ge.s32.totalorder %s3174_s27, 2 }
0x14fd   : > { %s2351_s9 = sand.u32 1, %s3882_s0   ;;  %p3884_p12 = scmp.ne.s32.totalorder %s3883_s18, 0 }
0x14fe   : > { %s2352_s28 = scalar_lea.sflag [#allocation5], %s2351_s9 }
0x14ff   : > { %p2874_p2 = pnand %p3885_p1, %p3884_p12 }
0x1501   : > { %3157 = dma.done.wait (!%p2874_p2), %s2352_s28, 128  }
0x1502   : > { %3159 = vsyncadd (!%p2874_p2), %s2352_s28, 4294967168  ;;  %p32_p4 = scmp.ge.s32.totalorder %s3415_s15, 4   ;;  %s3886_s24 = smov %s3166_s25 }
0x1503   : > { %s3887_s25 = smov %s3170_s26  ;;  %s3888_s26 = smov %s3425_s12 }
0x1504   : > { %s3889_s27 = smov %s3415_s15  ;;  %34 = sbr.rel (!%p32_p4) target bundleno = 19 (0x13), region = 166 }
0x150b   :  { %2357 = vsyncpa [#allocation4], 1 }
0x150c   :  { %2359 = vsyncpa [#allocation4 + $0x1], 1 }
0x150d   :  { %2360 = vsyncpa [#allocation7], 1 }
0x150e   :  { %2361 = vsyncpa [#allocation10], 1 }
0x150f   :  { %2362 = vsyncpa [#allocation5], 1 }
0x1510   :  { %2364 = vsyncpa [#allocation5 + $0x1], 1 }

</bundles_post_ra>
